<compile_context>
chip_gen: v7x
topology: tpu7x:2x2x1
jax: 0.10.0
libtpu: 0.0.40
codegen_flags: <defaults>
</compile_context>

<pallas_src>
import functools
import math

import numpy as np
import jax
import jax.numpy as jnp
from jax.experimental import pallas as pl
from jax.experimental.pallas import tpu as pltpu

# ----------------------------- config -----------------------------
N_LAYERS = 2
N_HEADS = 4
NODE_INPUT_DIM = 8
EDGE_INPUT_DIM = 8
NODE_DIM = 32
EDGE_DIM = 32          # must equal NODE_DIM (EdgeMHA.concatenate_heads reshapes to node_dim)
NODE_HID_DIM = 64
EDGE_HID_DIM = 64
IMG_SIZE = 64
NUM_SAMPLES = 7
PATCH_SIZE = 5.0

assert NODE_DIM == EDGE_DIM


def _round_up(x, m):
    return ((x + m - 1) // m) * m


# ----------------------------- Pallas matmul kernels -----------------------------
def _apply_act(r, act):
    if act == "relu":
        return jnp.maximum(r, 0.0)
    if act == "leaky_relu":
        return jnp.where(r >= 0.0, r, 0.01 * r)
    return r


def _mm_single_kernel(x_ref, w_ref, b_ref, o_ref, *, act):
    # whole K in one tile: no accumulator scratch, write straight to the output block.
    r = jnp.dot(x_ref[...], w_ref[...], preferred_element_type=jnp.float32)
    o_ref[...] = _apply_act(r + b_ref[...], act).astype(o_ref.dtype)


def _mm_multi_kernel(x_ref, w_ref, b_ref, o_ref, acc_ref, *, act):
    k = pl.program_id(2)

    @pl.when(k == 0)
    def _():
        acc_ref[...] = jnp.zeros_like(acc_ref)

    acc_ref[...] += jnp.dot(x_ref[...], w_ref[...],
                            preferred_element_type=jnp.float32)

    @pl.when(k == pl.num_programs(2) - 1)
    def _():
        o_ref[...] = _apply_act(acc_ref[...] + b_ref[...], act).astype(o_ref.dtype)


def _vmem_estimate(tm, tn, tk, nk, out_itemsize):
    # double-buffered bf16 input tiles + f32 bias + double-buffered output (+ acc).
    return (2 * (tm * tk + tk * tn) * 2
            + 2 * tn * 4
            + 2 * tm * tn * out_itemsize
            + (tm * tn * 4 if nk > 1 else 0))


def pallas_matmul(x, w, b, act=None, out_dtype=jnp.float32):
    """y = x @ w + b (optional relu / leaky_relu) for the FLOP-heavy matmuls.

    Inputs are cast to bf16 (MXU native, halves HBM->VMEM bytes); accumulation
    and the bias/activation epilogue stay f32.  Requires K % 128 == 0 so no K
    padding is ever materialized.  K <= 4096 runs as a single K step (no
    accumulator scratch); larger K uses the multi-step accumulator kernel.
    """
    M, K = x.shape
    Kw, N = w.shape
    assert K == Kw and K % 128 == 0

    x = x.astype(jnp.bfloat16)
    w = w.astype(jnp.bfloat16)      # no-op if weight was pre-cast in prepare_params
    b = b.astype(jnp.float32)

    # --- tiling: padding-free on K, lane-dense on N, tm capped for VMEM budgets ---
    Mp = _round_up(M, 16)           # bf16 packs 16 rows per sublane-vreg
    if Mp > 256:
        tm = 256                    # keep <=256 so v7x (64 MiB phys / 32 MiB scoped) has headroom
        Mp = _round_up(Mp, tm)
    else:
        tm = Mp
    Np = _round_up(N, 128)
    tn = 256 if Np % 256 == 0 else 128
    if K <= 4096:
        tk = K                      # single K step (covers conv1/conv2/enc2/router-fc)
    else:
        tk = next(t for t in (2048, 1024, 512, 256, 128) if K % t == 0)
    nk = K // tk

    # ensure >=2 parallel blocks when possible so both v7x TensorCores get work.
    if (Mp // tm) * (Np // tn) == 1:
        if Np // 128 >= 2:
            tn = 128
        elif Mp >= 32 and Mp % 32 == 0:
            tm = Mp // 2

    # pad only when actually needed (big weights are pre-padded in prepare_params).
    xp = x if Mp == M else jnp.pad(x, ((0, Mp - M), (0, 0)))
    wp = w if Np == N else jnp.pad(w, ((0, 0), (0, Np - N)))
    bp = b.reshape(1, N) if Np == N else jnp.pad(b, (0, Np - N)).reshape(1, Np)

    out_itemsize = jnp.dtype(out_dtype).itemsize
    cost = pl.CostEstimate(
        flops=2 * Mp * Np * K,
        transcendentals=0,
        bytes_accessed=Mp * K * 2 + K * Np * 2 + Mp * Np * out_itemsize)

    est = _vmem_estimate(tm, tn, tk, nk, out_itemsize)
    cp_kwargs = {}
    if est > 12 * 1024 * 1024:      # above the v5e scoped default comfort zone
        cp_kwargs["vmem_limit_bytes"] = int(min(64 * 1024 * 1024, 2 * est))

    if nk == 1:
        out = pl.pallas_call(
            functools.partial(_mm_single_kernel, act=act),
            out_shape=jax.ShapeDtypeStruct((Mp, Np), out_dtype),
            grid_spec=pltpu.PrefetchScalarGridSpec(
                num_scalar_prefetch=0,
                grid=(Mp // tm, Np // tn),
                in_specs=[
                    pl.BlockSpec((tm, tk), lambda i, j: (i, 0)),
                    pl.BlockSpec((tk, tn), lambda i, j: (0, j)),
                    pl.BlockSpec((1, tn), lambda i, j: (0, j)),
                ],
                out_specs=pl.BlockSpec((tm, tn), lambda i, j: (i, j)),
            ),
            compiler_params=pltpu.CompilerParams(
                dimension_semantics=("parallel", "parallel"), **cp_kwargs),
            cost_estimate=cost,
        )(xp, wp, bp)
    else:
        out = pl.pallas_call(
            functools.partial(_mm_multi_kernel, act=act),
            out_shape=jax.ShapeDtypeStruct((Mp, Np), out_dtype),
            grid_spec=pltpu.PrefetchScalarGridSpec(
                num_scalar_prefetch=0,
                grid=(Mp // tm, Np // tn, nk),
                in_specs=[
                    pl.BlockSpec((tm, tk), lambda i, j, k: (i, k)),
                    pl.BlockSpec((tk, tn), lambda i, j, k: (k, j)),
                    pl.BlockSpec((1, tn), lambda i, j, k: (0, j)),
                ],
                out_specs=pl.BlockSpec((tm, tn), lambda i, j, k: (i, j)),
                scratch_shapes=[pltpu.VMEM((tm, tn), jnp.float32)],
            ),
            compiler_params=pltpu.CompilerParams(
                dimension_semantics=("parallel", "parallel", "arbitrary"), **cp_kwargs),
            cost_estimate=cost,
        )(xp, wp, bp)

    if Mp == M and Np == N:
        return out
    return out[:M, :N]


def dense(x, w, b, act=None):
    """Dispatch: Pallas MXU kernel for big-K 2-D matmuls, plain JAX (XLA-fused)
    for the sub-tile 32/64-wide ones (skips launch + padding overhead)."""
    K = x.shape[-1]
    if x.ndim == 2 and K >= 256 and K % 128 == 0:
        return pallas_matmul(x, w, b, act=act)
    return _apply_act(x @ w + b, act)


def linear(p, x, act=None):
    return dense(x, p["w"], p["b"], act=act)


def layernorm(p, x, eps=1e-5):
    # plain JAX: every LN in this model is on <=16 rows x 32/64/128 features; XLA
    # fuses it into the consuming (tiny) matmul inside the single outer jit.
    mu = jnp.mean(x, axis=-1, keepdims=True)
    var = jnp.mean(jnp.square(x - mu), axis=-1, keepdims=True)
    return (x - mu) * jax.lax.rsqrt(var + eps) * p["g"] + p["b"]


# ----------------------------- backbone (synthetic) -----------------------------
def _im2col_nonoverlap(x_nhwc, k):
    Bn, H, W, C = x_nhwc.shape
    Ho, Wo = H // k, W // k
    p = x_nhwc.reshape(Bn, Ho, k, Wo, k, C).transpose(0, 1, 3, 2, 4, 5)
    return p.reshape(Bn * Ho * Wo, k * k * C), (Bn, Ho, Wo)


def conv_nonoverlap(x_nhwc, wm, b, k, act=None, out_dtype=jnp.float32):
    # Non-overlapping conv (stride == kernel) as NHWC im2col + Pallas matmul.
    # TODO(synk): at real ResNet feature-map sizes the im2col reshape/transpose
    # should move into the kernel via a per-patch BlockSpec index_map.
    patches, (Bn, Ho, Wo) = _im2col_nonoverlap(x_nhwc, k)
    out = pallas_matmul(patches, wm, b, act=act, out_dtype=out_dtype)
    return out.reshape(Bn, Ho, Wo, wm.shape[1])


def feature_extraction(params, images_nchw):
    # TODO(synk): pretrained ResNet101 backbone (IMAGENET1K_V1 weights) is
    # untranslatable here; replaced by a synthetic conv stack reproducing the
    # layer3/layer4 output layout (1024 ch @ stride 16, 2048 ch @ stride 32).
    x = images_nchw.transpose(0, 2, 3, 1)                       # NHWC once
    # conv1 output stays bf16: its heavy consumer is conv2's bf16 matmul.
    feat1 = conv_nonoverlap(x, params["conv1_wm"], params["conv1_b"], 16,
                            act="relu", out_dtype=jnp.bfloat16)
    feat2 = conv_nonoverlap(feat1, params["conv2_wm"], params["conv2_b"], 2,
                            act="relu", out_dtype=jnp.float32)
    return feat1, feat2                                         # NHWC feature maps


# ----------------------------- roi_align (4-corner gather) -----------------------------
def feat_align(feat_nhwc, bid, patch, output_size=2, sampling_ratio=2):
    # torchvision roi_align(aligned=True) bilinear sampling + AdaptiveAvgPool2d((1,1))
    # mean over all samples, expressed as a 4-corner gather + weighted sum
    # (O(R*S*C); invalid samples contribute 0 but still count in the divisor).
    B, H, W, C = feat_nhwc.shape
    scale = W / 256.0
    x1 = patch[:, 0] * scale - 0.5
    y1 = patch[:, 1] * scale - 0.5
    x2 = patch[:, 2] * scale - 0.5
    y2 = patch[:, 3] * scale - 0.5
    n = output_size * sampling_ratio
    frac = (jnp.arange(n, dtype=jnp.float32) + 0.5) / n
    ys = y1[:, None] + frac[None, :] * (y2 - y1)[:, None]
    xs = x1[:, None] + frac[None, :] * (x2 - x1)[:, None]
    R = patch.shape[0]
    Y = jnp.broadcast_to(ys[:, :, None], (R, n, n)).reshape(R, n * n)
    X = jnp.broadcast_to(xs[:, None, :], (R, n, n)).reshape(R, n * n)
    S = n * n

    valid = ((Y >= -1.0) & (Y <= H) & (X >= -1.0) & (X <= W)).astype(jnp.float32)
    y = jnp.clip(Y, 0.0, H - 1.0)
    x = jnp.clip(X, 0.0, W - 1.0)
    y0 = jnp.floor(y).astype(jnp.int32)
    x0 = jnp.floor(x).astype(jnp.int32)
    y1i = jnp.minimum(y0 + 1, H - 1)
    x1i = jnp.minimum(x0 + 1, W - 1)
    ly = y - y0.astype(jnp.float32)
    lx = x - x0.astype(jnp.float32)
    hy = 1.0 - ly
    hx = 1.0 - lx
    base = bid.astype(jnp.int32)[:, None] * (H * W)
    feat_flat = feat_nhwc.reshape(B * H * W, C).astype(jnp.float32)

    def corner(yy, xx, ww):
        idx = base + yy * W + xx                                 # (R, S)
        g = feat_flat[idx]                                       # (R, S, C) gather
        return (g * (ww * valid)[..., None]).sum(axis=1)         # (R, C)

    pooled = (corner(y0, x0, hy * hx) + corner(y0, x1i, hy * lx) +
              corner(y1i, x0, ly * hx) + corner(y1i, x1i, ly * lx))
    return pooled / S


def l2_normalize(x):
    return x / jnp.maximum(jnp.linalg.norm(x, axis=1, keepdims=True), 1e-12)


def build_vis_feat(feat1, feat2, bid, patch):
    p1 = l2_normalize(feat_align(feat1, bid, patch))
    p2 = l2_normalize(feat_align(feat2, bid, patch))
    return jnp.concatenate([p1, p2], axis=-1)


# ----------------------------- graph attention -----------------------------
def separate_heads(x, n_heads):
    M, D = x.shape
    return x.reshape(M, n_heads, D // n_heads).transpose(1, 0, 2)   # (H, M, hd)


def concat_heads(x):
    H, M, hd = x.shape
    return x.transpose(1, 0, 2).reshape(M, H * hd)


def segment_softmax(scores, index, num_segments):
    # scores (H, E), index (E,) — softmax per (head, segment)  (pyg semantics)
    s_t = scores.T
    smax = jax.ops.segment_max(s_t, index, num_segments=num_segments)
    smax = jnp.where(jnp.isneginf(smax), 0.0, smax)
    ex = jnp.exp(s_t - smax[index])
    ssum = jax.ops.segment_sum(ex, index, num_segments=num_segments)
    return (ex / (ssum[index] + 1e-16)).T


def _fused_qkv(p, names, x):
    # one (D, 3D) matmul instead of three (D, D) ones; tiny -> plain JAX / XLA-fused.
    w = jnp.concatenate([p[nm]["w"] for nm in names], axis=1)
    b = jnp.concatenate([p[nm]["b"] for nm in names], axis=0)
    return jnp.split(x @ w + b, 3, axis=1)


def node_mha(p, node, edge, edge_index, n_heads):
    N, node_dim = node.shape
    hd = node_dim // n_heads
    eQ, eK, eV = (separate_heads(t, n_heads)
                  for t in _fused_qkv(p, ("Weq", "Wek", "Wev"), edge))
    nQ, nK, nV = (separate_heads(t, n_heads)
                  for t in _fused_qkv(p, ("Wnq", "Wnk", "Wnv"), node))
    src, dst = edge_index[0], edge_index[1]
    Q = eQ + nQ[:, src, :]
    K = eK + nK[:, dst, :]
    score = (Q * K).sum(-1) / math.sqrt(hd)                 # (H, M)
    w = segment_softmax(score, src, N)
    V = eV + nV[:, dst, :]
    upd = jax.ops.segment_sum((w[..., None] * V).transpose(1, 0, 2), src,
                              num_segments=N).transpose(1, 0, 2)
    return linear(p["out"], concat_heads(upd))


def edge_mha(p, node, edge, edge_index, nei, n_heads):
    M, edge_dim = edge.shape
    hd = edge_dim // n_heads
    eQ, eK, eV = (separate_heads(t, n_heads)
                  for t in _fused_qkv(p, ("Weq", "Wek", "Wev"), edge))
    nQ, nK, nV = (separate_heads(t, n_heads)
                  for t in _fused_qkv(p, ("Wnq", "Wnk", "Wnv"), node))
    s0, s1 = nei[:, 0], nei[:, 1]
    Q = eQ[:, s0, :] + nQ[:, edge_index[0, s0], :] + nQ[:, edge_index[1, s0], :]
    K = eK[:, s1, :] + nK[:, edge_index[0, s1], :] + nK[:, edge_index[1, s1], :]
    score = (Q * K).sum(-1) / math.sqrt(hd)                 # (H, P)
    w = segment_softmax(score, s0, M)
    V = eV[:, s1, :] + nV[:, edge_index[0, s1], :] + nV[:, edge_index[1, s1], :]
    upd = jax.ops.segment_sum((w[..., None] * V).transpose(1, 0, 2), s0,
                              num_segments=M).transpose(1, 0, 2)
    return linear(p["out"], concat_heads(upd))


def lpgnn_layer(p, node, edge, edge_index, nei, n_heads):
    node_p = node_mha(p["node_mha"],
                      layernorm(p["node_attn_ln1"], node),
                      layernorm(p["edge_attn_ln1"], edge),
                      edge_index, n_heads) + node
    h = linear(p["node_ffn_fc1"], layernorm(p["node_ffn_ln"], node_p), act="relu")
    node_new = linear(p["node_ffn_fc2"], h) + node_p
    edge_p = edge_mha(p["edge_mha"],
                      layernorm(p["node_attn_ln2"], node_new),
                      layernorm(p["edge_attn_ln2"], edge),
                      edge_index, nei, n_heads) + edge
    h = linear(p["edge_ffn_fc1"], layernorm(p["edge_ffn_ln"], edge_p), act="relu")
    edge_new = linear(p["edge_ffn_fc2"], h) + edge_p
    return node_new, edge_new


# ----------------------------- transformer encoder (router), batched -----------------------------
def encoder_layer(p, x, mask, n_heads):
    # post-norm TransformerEncoderLayer (relu FFN), batched over graphs with a key mask.
    # TODO(synk): dropout (p=0.1) omitted — eval-mode semantics.
    B, S, D = x.shape
    hd = D // n_heads
    q = linear(p["mha"]["wq"], x).reshape(B, S, n_heads, hd).transpose(0, 2, 1, 3)
    k = linear(p["mha"]["wk"], x).reshape(B, S, n_heads, hd).transpose(0, 2, 1, 3)
    v = linear(p["mha"]["wv"], x).reshape(B, S, n_heads, hd).transpose(0, 2, 1, 3)
    scores = jnp.einsum("bhqd,bhkd->bhqk", q, k) / math.sqrt(hd)
    scores = jnp.where(mask[:, None, None, :] > 0, scores, -1e9)
    attn = jax.nn.softmax(scores, axis=-1)
    o = jnp.einsum("bhqk,bhkd->bhqd", attn, v).transpose(0, 2, 1, 3).reshape(B, S, D)
    o = linear(p["mha"]["wo"], o)
    x = layernorm(p["norm1"], x + o)
    ff = linear(p["linear2"], linear(p["linear1"], x, act="relu"))
    return layernorm(p["norm2"], x + ff)


def unit(p, x):
    return linear(p["fc"], layernorm(p["norm"], x), act="leaky_relu")


def router(p, node_tensors, img_feat, router_idx, router_mask, n_heads):
    # batched padded pass over all graphs at once (replaces per-graph Python loop).
    x = node_tensors[router_idx]                           # (B, S_max, node_dim)
    for lp_ in p["encoder_layers"]:
        x = encoder_layer(lp_, x, router_mask, n_heads)
    node_tensors0 = x[:, 0, :]                             # first node of every graph
    # router fc: K=3072 -> Pallas; weight pre-padded to 128 lanes in prepare_params.
    out_img = pallas_matmul(img_feat, p["fc_w"], p["fc_b"])[:, :NODE_DIM]
    feats = jnp.concatenate([node_tensors0, out_img], axis=1)
    feats = unit(p["unit3"], unit(p["unit2"], unit(p["unit1"], feats)))
    logits = linear(p["head"], feats)
    return feats, logits


# ----------------------------- host-side graph bookkeeping -----------------------------
def build_edge_point_idx2(edge_index_np, num_samples, node_bid_np):
    tails, heads = edge_index_np[0], edge_index_np[1]
    M = edge_index_np.shape[1]
    epig, gepi, sepi = [], [], []
    for i in range(M):
        if tails[i] != heads[i]:
            epig.extend([i] * num_samples)
            gepi.extend([len(epig) - num_samples + j for j in range(num_samples)])
        else:
            epig.append(i)
            sepi.append(len(epig) - 1)
    edge_point_bid = node_bid_np[tails][epig]
    generic_idx = np.where(tails != heads)[0]
    self_idx = np.where(tails == heads)[0]
    return (np.array(epig, np.int32), edge_point_bid.astype(np.int32),
            np.array(gepi, np.int32), np.array(sepi, np.int32),
            tails[generic_idx], heads[generic_idx], tails[self_idx])


def compute_neighbor_edge_index(edge_index_np, N):
    M = edge_index_np.shape[1]
    inc = np.zeros((M, N), np.float32)
    inc[np.arange(M), edge_index_np[0]] = 1.0
    inc[np.arange(M), edge_index_np[1]] = 1.0
    nbr = inc @ inc.T
    return np.argwhere(nbr > 0).astype(np.int32)            # row-major like torch.nonzero


def build_router_index(node_bid_np):
    counts = np.bincount(node_bid_np)
    B = counts.shape[0]
    S = int(counts.max())
    starts = np.concatenate([[0], np.cumsum(counts)[:-1]])
    idx = np.zeros((B, S), np.int32)
    mask = np.zeros((B, S), np.float32)
    for b in range(B):
        c = int(counts[b])
        idx[b, :c] = starts[b] + np.arange(c, dtype=np.int32)
        mask[b, :c] = 1.0
    return idx, mask


def build_edge_patch2(pos, patch_size, num_samples, node_patch,
                      gepi, sepi, g_tails, g_heads, s_tails, P):
    gct = pos[g_tails]
    gch = pos[g_heads]
    t = jnp.linspace(0.0, 1.0, num_samples).reshape(-1, 1)
    pts = (1.0 - t) * gct[:, None, :] + t * gch[:, None, :]  # (G, S, 2)
    g_patches = jnp.concatenate([pts - patch_size / 2, pts + patch_size / 2],
                                axis=-1).reshape(-1, 4)
    s_patches = node_patch[s_tails]
    edge_patches = jnp.zeros((P, 4), jnp.float32)
    edge_patches = edge_patches.at[sepi].set(s_patches)
    edge_patches = edge_patches.at[gepi].set(g_patches)
    return edge_patches


# ----------------------------- device forward (single jit) -----------------------------
@jax.jit
def _device_forward(params, node_x, edge_attr, images, edge_index, nei, node_bid,
                    epig, ep_bid, gepi, sepi, g_tails, g_heads, s_tails,
                    router_idx, router_mask):
    N = node_x.shape[0]
    M = edge_index.shape[1]
    P = epig.shape[0]

    feat1, feat2 = feature_extraction(params, images)        # NHWC feature maps

    pos = node_x[:, :2] * 256.0
    node_patch = jnp.concatenate([pos - PATCH_SIZE / 2, pos + PATCH_SIZE / 2], axis=-1)
    edge_patch = build_edge_patch2(pos, PATCH_SIZE, NUM_SAMPLES, node_patch,
                                   gepi, sepi, g_tails, g_heads, s_tails, P)

    # node patches + edge sample-point patches go through ONE vis-feature pass
    all_patch = jnp.concatenate([node_patch, edge_patch], axis=0)     # (N+P, 4)
    all_bid = jnp.concatenate([node_bid, ep_bid], axis=0)
    vis = build_vis_feat(feat1, feat2, all_bid, all_patch)            # (N+P, 3072)
    node_t2 = vis[:N]
    cnts = jax.ops.segment_sum(jnp.ones((P,), jnp.float32), epig, num_segments=M)
    edge_t2 = jax.ops.segment_sum(vis[N:], epig, num_segments=M) / cnts[:, None]

    img_feat = jnp.concatenate([feat1.astype(jnp.float32).mean(axis=(1, 2)),
                                feat2.astype(jnp.float32).mean(axis=(1, 2))], axis=-1)

    # fused node_enc2 + edge_enc2: one (N+M, 3072) x (3072, 128-padded) Pallas matmul
    enc2_in = jnp.concatenate([node_t2, edge_t2], axis=0)
    enc2_out = pallas_matmul(enc2_in, params["enc2_w"], params["enc2_b"])
    node_t = linear(params["node_enc1"], node_x) + enc2_out[:N, :NODE_DIM]
    edge_t = linear(params["edge_enc1"], edge_attr) + enc2_out[N:, NODE_DIM:2 * NODE_DIM]

    for lp_ in params["layers"]:
        node_t, edge_t = lpgnn_layer(lp_, node_t, edge_t, edge_index, nei, N_HEADS)

    features, logits = router(params["router"], node_t, img_feat,
                              router_idx, router_mask, N_HEADS)
    z = jax.nn.softmax(logits, axis=1)
    return z, features


def lp_model_forward(params, node_x, edge_attr, edge_index_np, node_bid_np, images):
    N = node_x.shape[0]
    # host-side, data-dependent graph bookkeeping (numpy)
    (epig, ep_bid, gepi, sepi,
     g_tails, g_heads, s_tails) = build_edge_point_idx2(edge_index_np, NUM_SAMPLES,
                                                        node_bid_np)
    nei = compute_neighbor_edge_index(edge_index_np, N)
    router_idx, router_mask = build_router_index(node_bid_np)
    return _device_forward(
        params, node_x, edge_attr, images,
        jnp.asarray(edge_index_np, jnp.int32), jnp.asarray(nei, jnp.int32),
        jnp.asarray(node_bid_np, jnp.int32),
        jnp.asarray(epig, jnp.int32), jnp.asarray(ep_bid, jnp.int32),
        jnp.asarray(gepi, jnp.int32), jnp.asarray(sepi, jnp.int32),
        jnp.asarray(g_tails, jnp.int32), jnp.asarray(g_heads, jnp.int32),
        jnp.asarray(s_tails, jnp.int32),
        jnp.asarray(router_idx, jnp.int32), jnp.asarray(router_mask, jnp.float32))


# ----------------------------- parameter init / prep -----------------------------
def init_linear(key, in_dim, out_dim):
    k1, k2 = jax.random.split(key)
    lim = 1.0 / math.sqrt(in_dim)
    return {"w": jax.random.uniform(k1, (in_dim, out_dim), jnp.float32, -lim, lim),
            "b": jax.random.uniform(k2, (out_dim,), jnp.float32, -lim, lim)}


def init_ln(dim):
    return {"g": jnp.ones((dim,), jnp.float32), "b": jnp.zeros((dim,), jnp.float32)}


def init_params(key):
    keys = iter(jax.random.split(key, 256))
    nk = lambda: next(keys)
    nd, ed, nh, eh = NODE_DIM, EDGE_DIM, NODE_HID_DIM, EDGE_HID_DIM
    p = {
        "conv1_w": jax.random.normal(nk(), (1024, 3, 16, 16), jnp.float32) * 0.05,
        "conv1_b": jnp.zeros((1024,), jnp.float32),
        "conv2_w": jax.random.normal(nk(), (2048, 1024, 2, 2), jnp.float32) * 0.02,
        "conv2_b": jnp.zeros((2048,), jnp.float32),
        "node_enc1": init_linear(nk(), NODE_INPUT_DIM, nd),
        "node_enc2": init_linear(nk(), 3072, nd),
        "edge_enc1": init_linear(nk(), EDGE_INPUT_DIM, ed),
        "edge_enc2": init_linear(nk(), 3072, ed),
    }

    def mha_params(node_in, edge_in, out_dim):
        return {"Wnq": init_linear(nk(), node_in, out_dim),
                "Wnk": init_linear(nk(), node_in, out_dim),
                "Wnv": init_linear(nk(), node_in, out_dim),
                "Weq": init_linear(nk(), edge_in, out_dim),
                "Wek": init_linear(nk(), edge_in, out_dim),
                "Wev": init_linear(nk(), edge_in, out_dim),
                "out": init_linear(nk(), out_dim, out_dim)}

    layers = []
    for _ in range(N_LAYERS):
        layers.append({
            "node_attn_ln1": init_ln(nd), "edge_attn_ln1": init_ln(ed),
            "node_mha": mha_params(nd, ed, nd),
            "node_ffn_ln": init_ln(nd),
            "node_ffn_fc1": init_linear(nk(), nd, nh),
            "node_ffn_fc2": init_linear(nk(), nh, nd),
            "node_attn_ln2": init_ln(nd), "edge_attn_ln2": init_ln(ed),
            "edge_mha": mha_params(nd, ed, ed),
            "edge_ffn_ln": init_ln(ed),
            "edge_ffn_fc1": init_linear(nk(), ed, eh),
            "edge_ffn_fc2": init_linear(nk(), eh, ed),
        })
    p["layers"] = layers

    enc_layers = []
    for _ in range(4):
        enc_layers.append({
            "mha": {"wq": init_linear(nk(), nd, nd), "wk": init_linear(nk(), nd, nd),
                    "wv": init_linear(nk(), nd, nd), "wo": init_linear(nk(), nd, nd)},
            "norm1": init_ln(nd), "norm2": init_ln(nd),
            "linear1": init_linear(nk(), nd, nh),
            "linear2": init_linear(nk(), nh, nd),
        })
    p["router"] = {
        "encoder_layers": enc_layers,
        "fc": init_linear(nk(), 3072, nd),
        "head": init_linear(nk(), nd, 5),
        "unit1": {"norm": init_ln(nd * 2), "fc": init_linear(nk(), nd * 2, nd * 4)},
        "unit2": {"norm": init_ln(nd * 4), "fc": init_linear(nk(), nd * 4, nd * 2)},
        "unit3": {"norm": init_ln(nd * 2), "fc": init_linear(nk(), nd * 2, nd)},
    }
    return p


def prepare_params(p):
    """One-time weight prep (hoisted out of the forward): conv weights to NHWC
    im2col matmul layout + bf16, node/edge enc2 fused along N, and all narrow-N
    Pallas weights/biases pre-padded to a 128-lane multiple (no per-forward
    padded copies)."""
    q = dict(p)
    q["conv1_wm"] = jnp.transpose(p["conv1_w"], (2, 3, 1, 0)).reshape(
        -1, p["conv1_w"].shape[0]).astype(jnp.bfloat16)          # (768, 1024)
    q["conv2_wm"] = jnp.transpose(p["conv2_w"], (2, 3, 1, 0)).reshape(
        -1, p["conv2_w"].shape[0]).astype(jnp.bfloat16)          # (4096, 2048)

    n_pad = _round_up(2 * NODE_DIM, 128)
    enc2_w = jnp.concatenate([p["node_enc2"]["w"], p["edge_enc2"]["w"]], axis=1)
    enc2_b = jnp.concatenate([p["node_enc2"]["b"], p["edge_enc2"]["b"]], axis=0)
    q["enc2_w"] = jnp.zeros((3072, n_pad), jnp.bfloat16).at[:, :2 * NODE_DIM].set(
        enc2_w.astype(jnp.bfloat16))                             # (3072, 128)
    q["enc2_b"] = jnp.zeros((n_pad,), jnp.float32).at[:2 * NODE_DIM].set(enc2_b)

    router = dict(p["router"])
    fc = router.pop("fc")
    fc_pad = _round_up(NODE_DIM, 128)
    router["fc_w"] = jnp.zeros((3072, fc_pad), jnp.bfloat16).at[:, :NODE_DIM].set(
        fc["w"].astype(jnp.bfloat16))                            # (3072, 128)
    router["fc_b"] = jnp.zeros((fc_pad,), jnp.float32).at[:NODE_DIM].set(fc["b"])
    q["router"] = router

    for k_ in ("conv1_w", "conv2_w", "node_enc2", "edge_enc2"):
        q.pop(k_)
    return q


# ----------------------------- main -----------------------------
if __name__ == "__main__":
    key = jax.random.PRNGKey(0)
    kx, ke, ki, kp = jax.random.split(key, 4)

    B = 2
    nodes_per_batch = 4
    N = B * nodes_per_batch
    node_bid_np = np.repeat(np.arange(B), nodes_per_batch).astype(np.int32)

    edges = []
    for b in range(B):
        off = b * nodes_per_batch
        for i in range(nodes_per_batch):                       # generic edges (ring)
            edges.append((off + i, off + (i + 1) % nodes_per_batch))
        for i in range(nodes_per_batch):                       # self edges
            edges.append((off + i, off + i))
    edge_index_np = np.array(edges, np.int32).T                # (2, M)
    M = edge_index_np.shape[1]

    node_x = jax.random.uniform(kx, (N, NODE_INPUT_DIM), jnp.float32)      # x[:, :2] in [0,1)
    edge_attr = jax.random.uniform(ke, (M, EDGE_INPUT_DIM), jnp.float32)
    images = jax.random.uniform(ki, (B, 3, IMG_SIZE, IMG_SIZE), jnp.float32)

    params = prepare_params(init_params(kp))

    z, style_features = lp_model_forward(params, node_x, edge_attr,
                                         edge_index_np, node_bid_np, images)
    jax.block_until_ready((z, style_features))
    assert z.shape == (B, 5) and style_features.shape == (B, NODE_DIM)
    assert bool(jnp.all(jnp.isfinite(z))) and bool(jnp.all(jnp.isfinite(style_features)))
    print("KERNEL_OK")
</pallas_src>

<mosaic_0001>
module attributes {stable_mosaic.version = 11 : i64} {
  func.func private @main(%arg0: i32) attributes {dimension_semantics = [#tpu.dimension_semantics<core_parallel>], iteration_bounds = array<i64: 2>, tpu.core_type = #tpu.core_type<sc_scalar_subcore>, window_params = []} {
    return
  }
}

module attributes {stable_mosaic.version = 11 : i64} {
  func.func private @main(%arg0: i32) attributes {dimension_semantics = [#tpu.dimension_semantics<core_parallel>], iteration_bounds = array<i64: 2>, tpu.core_type = #tpu.core_type<sc_scalar_subcore>, window_params = []} {
    return
  }
}

module attributes {stable_mosaic.version = 11 : i64} {
  func.func @_mm_single_kernel(%arg0: i32, %arg1: i32, %arg2: memref<32x768xbf16, #tpu.memory_space<vmem>>, %arg3: memref<768x256xbf16, #tpu.memory_space<vmem>>, %arg4: memref<1x256xf32, #tpu.memory_space<vmem>>, %arg5: memref<32x256xbf16, #tpu.memory_space<vmem>>) attributes {dimension_semantics = [#tpu.dimension_semantics<parallel>, #tpu.dimension_semantics<parallel>], iteration_bounds = array<i64: 1, 4>, scalar_prefetch = 0 : i64, scratch_operands = 0 : i64, tpu.core_type = #tpu.core_type<tc>, window_params = [{transform_indices = @transform_0, window_bounds = array<i64: 32, 768>}, {transform_indices = @transform_1, window_bounds = array<i64: 768, 256>}, {transform_indices = @transform_2, window_bounds = array<i64: 1, 256>}, {transform_indices = @transform_3, window_bounds = array<i64: 32, 256>}]} {
    %c0 = arith.constant 0 : index
    %c0_0 = arith.constant 0 : index
    %0 = vector.load %arg2[%c0, %c0_0] : memref<32x768xbf16, #tpu.memory_space<vmem>>, vector<32x768xbf16>
    %c0_1 = arith.constant 0 : index
    %c0_2 = arith.constant 0 : index
    %1 = vector.load %arg3[%c0_1, %c0_2] : memref<768x256xbf16, #tpu.memory_space<vmem>>, vector<768x256xbf16>
    %cst = arith.constant dense<0.000000e+00> : vector<32x256xf32>
    %2 = tpu.matmul %0, %1, %cst {dimension_numbers = #tpu.dot_dimension_numbers<[1], [0], [0], [1], [0, 0, 1, 1], [], []>} : vector<32x768xbf16>, vector<768x256xbf16>, vector<32x256xf32> -> vector<32x256xf32>
    %c0_3 = arith.constant 0 : index
    %c0_4 = arith.constant 0 : index
    %3 = vector.load %arg4[%c0_3, %c0_4] : memref<1x256xf32, #tpu.memory_space<vmem>>, vector<1x256xf32>
    %4 = vector.broadcast %3 : vector<1x256xf32> to vector<32x256xf32>
    %5 = arith.addf %2, %4 : vector<32x256xf32>
    %cst_5 = arith.constant 0.000000e+00 : f32
    %6 = vector.broadcast %cst_5 : f32 to vector<32x256xf32>
    %7 = arith.maximumf %5, %6 : vector<32x256xf32>
    %8 = arith.truncf %7 : vector<32x256xf32> to vector<32x256xbf16>
    %c0_6 = arith.constant 0 : index
    %c0_7 = arith.constant 0 : index
    %9 = vector.load %arg5[%c0_6, %c0_7] : memref<32x256xbf16, #tpu.memory_space<vmem>>, vector<32x256xbf16>
    tpu.vector_store %arg5[%c0_6, %c0_7], %8 {strides = array<i32>} : memref<32x256xbf16, #tpu.memory_space<vmem>>, vector<32x256xbf16>,
    return
  }
  func.func @transform_0(%arg0: i32, %arg1: i32) -> (i32, i32) {
    %c0_i32 = arith.constant 0 : i32
    %c0_i32_0 = arith.constant 0 : i32
    return %arg0, %c0_i32 : i32, i32
  }
  func.func @transform_1(%arg0: i32, %arg1: i32) -> (i32, i32) {
    %c0_i32 = arith.constant 0 : i32
    %c0_i32_0 = arith.constant 0 : i32
    return %c0_i32, %arg1 : i32, i32
  }
  func.func @transform_2(%arg0: i32, %arg1: i32) -> (i32, i32) {
    %c0_i32 = arith.constant 0 : i32
    %c0_i32_0 = arith.constant 0 : i32
    return %c0_i32, %arg1 : i32, i32
  }
  func.func @transform_3(%arg0: i32, %arg1: i32) -> (i32, i32) {
    %c0_i32 = arith.constant 0 : i32
    return %arg0, %arg1 : i32, i32
  }
}

module attributes {stable_mosaic.version = 11 : i64} {
  func.func @_mm_single_kernel(%arg0: i32, %arg1: i32, %arg2: memref<16x4096xbf16, #tpu.memory_space<vmem>>, %arg3: memref<4096x256xbf16, #tpu.memory_space<vmem>>, %arg4: memref<1x256xf32, #tpu.memory_space<vmem>>, %arg5: memref<16x256xf32, #tpu.memory_space<vmem>>) attributes {dimension_semantics = [#tpu.dimension_semantics<parallel>, #tpu.dimension_semantics<parallel>], iteration_bounds = array<i64: 1, 8>, scalar_prefetch = 0 : i64, scratch_operands = 0 : i64, tpu.core_type = #tpu.core_type<tc>, window_params = [{transform_indices = @transform_0, window_bounds = array<i64: 16, 4096>}, {transform_indices = @transform_1, window_bounds = array<i64: 4096, 256>}, {transform_indices = @transform_2, window_bounds = array<i64: 1, 256>}, {transform_indices = @transform_3, window_bounds = array<i64: 16, 256>}]} {
    %c0 = arith.constant 0 : index
    %c0_0 = arith.constant 0 : index
    %0 = vector.load %arg2[%c0, %c0_0] : memref<16x4096xbf16, #tpu.memory_space<vmem>>, vector<16x4096xbf16>
    %c0_1 = arith.constant 0 : index
    %c0_2 = arith.constant 0 : index
    %1 = vector.load %arg3[%c0_1, %c0_2] : memref<4096x256xbf16, #tpu.memory_space<vmem>>, vector<4096x256xbf16>
    %cst = arith.constant dense<0.000000e+00> : vector<16x256xf32>
    %2 = tpu.matmul %0, %1, %cst {dimension_numbers = #tpu.dot_dimension_numbers<[1], [0], [0], [1], [0, 0, 1, 1], [], []>} : vector<16x4096xbf16>, vector<4096x256xbf16>, vector<16x256xf32> -> vector<16x256xf32>
    %c0_3 = arith.constant 0 : index
    %c0_4 = arith.constant 0 : index
    %3 = vector.load %arg4[%c0_3, %c0_4] : memref<1x256xf32, #tpu.memory_space<vmem>>, vector<1x256xf32>
    %4 = vector.broadcast %3 : vector<1x256xf32> to vector<16x256xf32>
    %5 = arith.addf %2, %4 : vector<16x256xf32>
    %cst_5 = arith.constant 0.000000e+00 : f32
    %6 = vector.broadcast %cst_5 : f32 to vector<16x256xf32>
    %7 = arith.maximumf %5, %6 : vector<16x256xf32>
    %c0_6 = arith.constant 0 : index
    %c0_7 = arith.constant 0 : index
    %8 = vector.load %arg5[%c0_6, %c0_7] : memref<16x256xf32, #tpu.memory_space<vmem>>, vector<16x256xf32>
    tpu.vector_store %arg5[%c0_6, %c0_7], %7 {strides = array<i32>} : memref<16x256xf32, #tpu.memory_space<vmem>>, vector<16x256xf32>,
    return
  }
  func.func @transform_0(%arg0: i32, %arg1: i32) -> (i32, i32) {
    %c0_i32 = arith.constant 0 : i32
    %c0_i32_0 = arith.constant 0 : i32
    return %arg0, %c0_i32 : i32, i32
  }
  func.func @transform_1(%arg0: i32, %arg1: i32) -> (i32, i32) {
    %c0_i32 = arith.constant 0 : i32
    %c0_i32_0 = arith.constant 0 : i32
    return %c0_i32, %arg1 : i32, i32
  }
  func.func @transform_2(%arg0: i32, %arg1: i32) -> (i32, i32) {
    %c0_i32 = arith.constant 0 : i32
    %c0_i32_0 = arith.constant 0 : i32
    return %c0_i32, %arg1 : i32, i32
  }
  func.func @transform_3(%arg0: i32, %arg1: i32) -> (i32, i32) {
    %c0_i32 = arith.constant 0 : i32
    return %arg0, %arg1 : i32, i32
  }
}

module attributes {stable_mosaic.version = 11 : i64} {
  func.func @_mm_single_kernel(%arg0: i32, %arg1: i32, %arg2: memref<16x3072xbf16, #tpu.memory_space<vmem>>, %arg3: memref<3072x128xbf16, #tpu.memory_space<vmem>>, %arg4: memref<1x128xf32, #tpu.memory_space<vmem>>, %arg5: memref<16x128xf32, #tpu.memory_space<vmem>>) attributes {dimension_semantics = [#tpu.dimension_semantics<parallel>, #tpu.dimension_semantics<parallel>], iteration_bounds = array<i64: 1, 1>, scalar_prefetch = 0 : i64, scratch_operands = 0 : i64, tpu.core_type = #tpu.core_type<tc>, window_params = [{transform_indices = @transform_0, window_bounds = array<i64: 16, 3072>}, {transform_indices = @transform_1, window_bounds = array<i64: 3072, 128>}, {transform_indices = @transform_2, window_bounds = array<i64: 1, 128>}, {transform_indices = @transform_3, window_bounds = array<i64: 16, 128>}]} {
    %c0 = arith.constant 0 : index
    %c0_0 = arith.constant 0 : index
    %0 = vector.load %arg2[%c0, %c0_0] : memref<16x3072xbf16, #tpu.memory_space<vmem>>, vector<16x3072xbf16>
    %c0_1 = arith.constant 0 : index
    %c0_2 = arith.constant 0 : index
    %1 = vector.load %arg3[%c0_1, %c0_2] : memref<3072x128xbf16, #tpu.memory_space<vmem>>, vector<3072x128xbf16>
    %cst = arith.constant dense<0.000000e+00> : vector<16x128xf32>
    %2 = tpu.matmul %0, %1, %cst {dimension_numbers = #tpu.dot_dimension_numbers<[1], [0], [0], [1], [0, 0, 1, 1], [], []>} : vector<16x3072xbf16>, vector<3072x128xbf16>, vector<16x128xf32> -> vector<16x128xf32>
    %c0_3 = arith.constant 0 : index
    %c0_4 = arith.constant 0 : index
    %3 = vector.load %arg4[%c0_3, %c0_4] : memref<1x128xf32, #tpu.memory_space<vmem>>, vector<1x128xf32>
    %4 = vector.broadcast %3 : vector<1x128xf32> to vector<16x128xf32>
    %5 = arith.addf %2, %4 : vector<16x128xf32>
    %c0_5 = arith.constant 0 : index
    %c0_6 = arith.constant 0 : index
    %6 = vector.load %arg5[%c0_5, %c0_6] : memref<16x128xf32, #tpu.memory_space<vmem>>, vector<16x128xf32>
    tpu.vector_store %arg5[%c0_5, %c0_6], %5 {strides = array<i32>} : memref<16x128xf32, #tpu.memory_space<vmem>>, vector<16x128xf32>,
    return
  }
  func.func @transform_0(%arg0: i32, %arg1: i32) -> (i32, i32) {
    %c0_i32 = arith.constant 0 : i32
    %c0_i32_0 = arith.constant 0 : i32
    return %arg0, %c0_i32 : i32, i32
  }
  func.func @transform_1(%arg0: i32, %arg1: i32) -> (i32, i32) {
    %c0_i32 = arith.constant 0 : i32
    %c0_i32_0 = arith.constant 0 : i32
    return %c0_i32, %arg1 : i32, i32
  }
  func.func @transform_2(%arg0: i32, %arg1: i32) -> (i32, i32) {
    %c0_i32 = arith.constant 0 : i32
    %c0_i32_0 = arith.constant 0 : i32
    return %c0_i32, %arg1 : i32, i32
  }
  func.func @transform_3(%arg0: i32, %arg1: i32) -> (i32, i32) {
    %c0_i32 = arith.constant 0 : i32
    return %arg0, %arg1 : i32, i32
  }
}

module attributes {stable_mosaic.version = 11 : i64} {
  func.func @_mm_single_kernel(%arg0: i32, %arg1: i32, %arg2: memref<16x3072xbf16, #tpu.memory_space<vmem>>, %arg3: memref<3072x128xbf16, #tpu.memory_space<vmem>>, %arg4: memref<1x128xf32, #tpu.memory_space<vmem>>, %arg5: memref<16x128xf32, #tpu.memory_space<vmem>>) attributes {dimension_semantics = [#tpu.dimension_semantics<parallel>, #tpu.dimension_semantics<parallel>], iteration_bounds = array<i64: 2, 1>, scalar_prefetch = 0 : i64, scratch_operands = 0 : i64, tpu.core_type = #tpu.core_type<tc>, window_params = [{transform_indices = @transform_0, window_bounds = array<i64: 16, 3072>}, {transform_indices = @transform_1, window_bounds = array<i64: 3072, 128>}, {transform_indices = @transform_2, window_bounds = array<i64: 1, 128>}, {transform_indices = @transform_3, window_bounds = array<i64: 16, 128>}]} {
    %c0 = arith.constant 0 : index
    %c0_0 = arith.constant 0 : index
    %0 = vector.load %arg2[%c0, %c0_0] : memref<16x3072xbf16, #tpu.memory_space<vmem>>, vector<16x3072xbf16>
    %c0_1 = arith.constant 0 : index
    %c0_2 = arith.constant 0 : index
    %1 = vector.load %arg3[%c0_1, %c0_2] : memref<3072x128xbf16, #tpu.memory_space<vmem>>, vector<3072x128xbf16>
    %cst = arith.constant dense<0.000000e+00> : vector<16x128xf32>
    %2 = tpu.matmul %0, %1, %cst {dimension_numbers = #tpu.dot_dimension_numbers<[1], [0], [0], [1], [0, 0, 1, 1], [], []>} : vector<16x3072xbf16>, vector<3072x128xbf16>, vector<16x128xf32> -> vector<16x128xf32>
    %c0_3 = arith.constant 0 : index
    %c0_4 = arith.constant 0 : index
    %3 = vector.load %arg4[%c0_3, %c0_4] : memref<1x128xf32, #tpu.memory_space<vmem>>, vector<1x128xf32>
    %4 = vector.broadcast %3 : vector<1x128xf32> to vector<16x128xf32>
    %5 = arith.addf %2, %4 : vector<16x128xf32>
    %c0_5 = arith.constant 0 : index
    %c0_6 = arith.constant 0 : index
    %6 = vector.load %arg5[%c0_5, %c0_6] : memref<16x128xf32, #tpu.memory_space<vmem>>, vector<16x128xf32>
    tpu.vector_store %arg5[%c0_5, %c0_6], %5 {strides = array<i32>} : memref<16x128xf32, #tpu.memory_space<vmem>>, vector<16x128xf32>,
    return
  }
  func.func @transform_0(%arg0: i32, %arg1: i32) -> (i32, i32) {
    %c0_i32 = arith.constant 0 : i32
    %c0_i32_0 = arith.constant 0 : i32
    return %arg0, %c0_i32 : i32, i32
  }
  func.func @transform_1(%arg0: i32, %arg1: i32) -> (i32, i32) {
    %c0_i32 = arith.constant 0 : i32
    %c0_i32_0 = arith.constant 0 : i32
    return %c0_i32, %arg1 : i32, i32
  }
  func.func @transform_2(%arg0: i32, %arg1: i32) -> (i32, i32) {
    %c0_i32 = arith.constant 0 : i32
    %c0_i32_0 = arith.constant 0 : i32
    return %c0_i32, %arg1 : i32, i32
  }
  func.func @transform_3(%arg0: i32, %arg1: i32) -> (i32, i32) {
    %c0_i32 = arith.constant 0 : i32
    return %arg0, %arg1 : i32, i32
  }
}

</mosaic_0001>

<bundles_post_ra>
// kernel: _device_forward.4
= control target key start
LH: loop header
LB: loop body
LE: loop exit
PB: predicated region body
PF: predicated region fallthrough
CT: control target
= control target key end

     0   :  { %s2098_s12 = smov 0   ;;  %s2100_s13 = smov 0   ;;  %s2508_s0 = inlined_call_operand.vmem [shape: bf16[32,768], index: 0, kind: input, shape index: {}]   ;;  %s2509_s1 = inlined_call_operand.vmem [shape: bf16[768,1024], index: 1, kind: input, shape index: {}]   ;;  %s2510_s2 = inlined_call_operand.vmem [shape: f32[1,1024], index: 2, kind: input, shape index: {}]   ;;  %s2511_s3 = inlined_call_operand.vmem [shape: bf16[32,1024], index: 3, kind: output, shape index: {}]  }
   0x1   :  { %s2102_s14 = smov 0   ;;  %s2104_s15 = smov 0  }
   0x2   :  { %s2106_s16 = smov 0  }
   0x3 LB: > { %s22_s17 = sadd.s32 1, %s2072_s15  ;;  %s1645_s18 = sadd.s32 4294967295, %s2076_s16   ;;  %s2076_s16 = sphi %s2106_s16, %s13_s16   ;;  %s2072_s15 = sphi %s2104_s15, %s2516_s15   ;;  %s2068_s14 = sphi %s2102_s14, %s2515_s14   ;;  %s2064_s13 = sphi %s2100_s13, %s2514_s13   ;;  %s2060_s12 = sphi %s2098_s12, %s2513_s12  }
   0x4   : > { %p23_p0 = scmp.ge.s32.totalorder %s22_s17, 4  ;;  %p65_p1 = scmp.ne.s32.totalorder %s2064_s13, %s2060_s12 }
   0x5   : > { %p66_p2 = scmp.eq.s32.totalorder %s2076_s16, 0  ;;  %p123_p4 = scmp.eq.s32.totalorder %s1645_s18, 3 }
   0x6   : > { %s2518_s17 = smov (%p23_p0, %s22_s17), 0  ;;  %s58_s20 = sadd.s32 1, %s2064_s13 }
   0x7   : > { %p67_p3 = por %p66_p2, %p65_p1  ;;  %s55_s19 = ssub.s32 %s2072_s15, %s2518_s17 }
   0x8   : > { %p56_p5 = scmp.eq.s32.totalorder %s55_s19, 0  ;;  %p2133_p6 = por %p123_p4, %p65_p1 }
   0x9   : > { %p1649_p7 = scmp.ge.s32.totalorder %s2076_s16, 4 }
   0xa   : > { %s2138_s22 = scalar_select %p56_p5, %s2064_s13, %s58_s20  }
   0xb   : > { %155 = sbr.rel (%p1649_p7) target bundleno = 118 (0x76), region = 20 }
  0x12   : > { %158 = sbr.rel (!%p67_p3) target bundleno = 118 (0x76), region = 24  ;;  %s160_s23 = sand.u32 (%p67_p3), 1, %s2064_s13  }
  0x13   : > { %s1772_s24 = sshll.u32 (%p67_p3), %s2072_s15, 3  ;;  %s1834_s25 = smul.u32 (%p67_p3), 768, %s160_s23 }
  0x14   : > { %s2146_s28 = scalar_lea.vmem (%p67_p3), %s2509_s1, %s1772_s24 }
  0x15   : > { %v383_v0 = vld [vmem:[%s2146_s28] sm:$0xff] (%p67_p3)  ;;  %s2154_s29 = scalar_lea.vmem (%p67_p3), [#allocation2], %s1834_s25 }
  0x16   : > { %v385_v1 = vld [vmem:[%s2146_s28 + $0x20] sm:$0xff] (%p67_p3)  ;;  %384 = vst [vmem:[%s2154_s29] sm:$0xff] (%p67_p3), %v383_v0 }
  0x17   : > { %v387_v2 = vld [vmem:[%s2146_s28 + $0x40] sm:$0xff] (%p67_p3)  ;;  %386 = vst [vmem:[%s2154_s29 + $0x8] sm:$0xff] (%p67_p3), %v385_v1 }
  0x18   : > { %v389_v3 = vld [vmem:[%s2146_s28 + $0x60] sm:$0xff] (%p67_p3)  ;;  %388 = vst [vmem:[%s2154_s29 + $0x10] sm:$0xff] (%p67_p3), %v387_v2 }
  0x19   : > { %v391_v4 = vld [vmem:[%s2146_s28 + $0x80] sm:$0xff]  ;;  %390 = vst [vmem:[%s2154_s29 + $0x18] sm:$0xff] %v389_v3 }
  0x1a   : > { %v393_v5 = vld [vmem:[%s2146_s28 + $0xa0] sm:$0xff]  ;;  %392 = vst [vmem:[%s2154_s29 + $0x20] sm:$0xff] %v391_v4 }
  0x1b   : > { %394 = vst [vmem:[%s2154_s29 + $0x28] sm:$0xff] %v393_v5  ;;  %v395_v6 = vld [vmem:[%s2146_s28 + $0xc0] sm:$0xff] }
  0x1c   : > { %v397_v7 = vld [vmem:[%s2146_s28 + $0xe0] sm:$0xff]  ;;  %396 = vst [vmem:[%s2154_s29 + $0x30] sm:$0xff] %v395_v6 }
  0x1d   : > { %v399_v8 = vld [vmem:[%s2146_s28 + $0x100] sm:$0xff]  ;;  %398 = vst [vmem:[%s2154_s29 + $0x38] sm:$0xff] %v397_v7 }
  0x1e   : > { %400 = vst [vmem:[%s2154_s29 + $0x40] sm:$0xff] %v399_v8  ;;  %v401_v9 = vld [vmem:[%s2146_s28 + $0x120] sm:$0xff] }
  0x1f   : > { %v403_v10 = vld [vmem:[%s2146_s28 + $0x140] sm:$0xff]  ;;  %402 = vst [vmem:[%s2154_s29 + $0x48] sm:$0xff] %v401_v9 }
  0x20   : > { %v405_v11 = vld [vmem:[%s2146_s28 + $0x160] sm:$0xff]  ;;  %404 = vst [vmem:[%s2154_s29 + $0x50] sm:$0xff] %v403_v10 }
  0x21   : > { %406 = vst [vmem:[%s2154_s29 + $0x58] sm:$0xff] %v405_v11  ;;  %v407_v12 = vld [vmem:[%s2146_s28 + $0x180] sm:$0xff] }
  0x22   : > { %v409_v13 = vld [vmem:[%s2146_s28 + $0x1a0] sm:$0xff]  ;;  %408 = vst [vmem:[%s2154_s29 + $0x60] sm:$0xff] %v407_v12 }
  0x23   : > { %v411_v14 = vld [vmem:[%s2146_s28 + $0x1c0] sm:$0xff]  ;;  %410 = vst [vmem:[%s2154_s29 + $0x68] sm:$0xff] %v409_v13 }
  0x24   : > { %412 = vst [vmem:[%s2154_s29 + $0x70] sm:$0xff] %v411_v14  ;;  %v413_v15 = vld [vmem:[%s2146_s28 + $0x1e0] sm:$0xff] }
  0x25   : > { %v415_v16 = vld [vmem:[%s2146_s28 + $0x200] sm:$0xff]  ;;  %414 = vst [vmem:[%s2154_s29 + $0x78] sm:$0xff] %v413_v15 }
  0x26   : > { %v417_v17 = vld [vmem:[%s2146_s28 + $0x220] sm:$0xff]  ;;  %416 = vst [vmem:[%s2154_s29 + $0x80] sm:$0xff] %v415_v16 }
  0x27   : > { %418 = vst [vmem:[%s2154_s29 + $0x88] sm:$0xff] %v417_v17  ;;  %v419_v18 = vld [vmem:[%s2146_s28 + $0x240] sm:$0xff] }
  0x28   : > { %v421_v19 = vld [vmem:[%s2146_s28 + $0x260] sm:$0xff]  ;;  %420 = vst [vmem:[%s2154_s29 + $0x90] sm:$0xff] %v419_v18 }
  0x29   : > { %v423_v20 = vld [vmem:[%s2146_s28 + $0x280] sm:$0xff]  ;;  %422 = vst [vmem:[%s2154_s29 + $0x98] sm:$0xff] %v421_v19 }
  0x2a   : > { %424 = vst [vmem:[%s2154_s29 + $0xa0] sm:$0xff] %v423_v20  ;;  %v425_v21 = vld [vmem:[%s2146_s28 + $0x2a0] sm:$0xff] }
  0x2b   : > { %v427_v22 = vld [vmem:[%s2146_s28 + $0x2c0] sm:$0xff]  ;;  %426 = vst [vmem:[%s2154_s29 + $0xa8] sm:$0xff] %v425_v21 }
  0x2c   : > { %v429_v23 = vld [vmem:[%s2146_s28 + $0x2e0] sm:$0xff]  ;;  %428 = vst [vmem:[%s2154_s29 + $0xb0] sm:$0xff] %v427_v22 }
  0x2d   : > { %430 = vst [vmem:[%s2154_s29 + $0xb8] sm:$0xff] %v429_v23  ;;  %v431_v24 = vld [vmem:[%s2146_s28 + $0x300] sm:$0xff] }
  0x2e   : > { %v433_v25 = vld [vmem:[%s2146_s28 + $0x320] sm:$0xff]  ;;  %432 = vst [vmem:[%s2154_s29 + $0xc0] sm:$0xff] %v431_v24 }
  0x2f   : > { %v435_v26 = vld [vmem:[%s2146_s28 + $0x340] sm:$0xff]  ;;  %434 = vst [vmem:[%s2154_s29 + $0xc8] sm:$0xff] %v433_v25 }
  0x30   : > { %436 = vst [vmem:[%s2154_s29 + $0xd0] sm:$0xff] %v435_v26  ;;  %v437_v27 = vld [vmem:[%s2146_s28 + $0x360] sm:$0xff] }
  0x31   : > { %v439_v28 = vld [vmem:[%s2146_s28 + $0x380] sm:$0xff]  ;;  %438 = vst [vmem:[%s2154_s29 + $0xd8] sm:$0xff] %v437_v27 }
  0x32   : > { %v441_v29 = vld [vmem:[%s2146_s28 + $0x3a0] sm:$0xff]  ;;  %440 = vst [vmem:[%s2154_s29 + $0xe0] sm:$0xff] %v439_v28 }
  0x33   : > { %442 = vst [vmem:[%s2154_s29 + $0xe8] sm:$0xff] %v441_v29  ;;  %v443_v30 = vld [vmem:[%s2146_s28 + $0x3c0] sm:$0xff] }
  0x34   : > { %v445_v31 = vld [vmem:[%s2146_s28 + $0x3e0] sm:$0xff]  ;;  %444 = vst [vmem:[%s2154_s29 + $0xf0] sm:$0xff] %v443_v30 }
  0x35   : > { %v447_v32 = vld [vmem:[%s2146_s28 + $0x400] sm:$0xff]  ;;  %446 = vst [vmem:[%s2154_s29 + $0xf8] sm:$0xff] %v445_v31 }
  0x36   : > { %448 = vst [vmem:[%s2154_s29 + $0x100] sm:$0xff] %v447_v32  ;;  %v449_v33 = vld [vmem:[%s2146_s28 + $0x420] sm:$0xff] }
  0x37   : > { %v451_v34 = vld [vmem:[%s2146_s28 + $0x440] sm:$0xff]  ;;  %450 = vst [vmem:[%s2154_s29 + $0x108] sm:$0xff] %v449_v33 }
  0x38   : > { %v453_v35 = vld [vmem:[%s2146_s28 + $0x460] sm:$0xff]  ;;  %452 = vst [vmem:[%s2154_s29 + $0x110] sm:$0xff] %v451_v34 }
  0x39   : > { %454 = vst [vmem:[%s2154_s29 + $0x118] sm:$0xff] %v453_v35  ;;  %v455_v36 = vld [vmem:[%s2146_s28 + $0x480] sm:$0xff] }
  0x3a   : > { %v457_v37 = vld [vmem:[%s2146_s28 + $0x4a0] sm:$0xff]  ;;  %456 = vst [vmem:[%s2154_s29 + $0x120] sm:$0xff] %v455_v36 }
  0x3b   : > { %v459_v38 = vld [vmem:[%s2146_s28 + $0x4c0] sm:$0xff]  ;;  %458 = vst [vmem:[%s2154_s29 + $0x128] sm:$0xff] %v457_v37 }
  0x3c   : > { %460 = vst [vmem:[%s2154_s29 + $0x130] sm:$0xff] %v459_v38  ;;  %v461_v39 = vld [vmem:[%s2146_s28 + $0x4e0] sm:$0xff] }
  0x3d   : > { %v463_v40 = vld [vmem:[%s2146_s28 + $0x500] sm:$0xff]  ;;  %462 = vst [vmem:[%s2154_s29 + $0x138] sm:$0xff] %v461_v39 }
  0x3e   : > { %v465_v41 = vld [vmem:[%s2146_s28 + $0x520] sm:$0xff]  ;;  %464 = vst [vmem:[%s2154_s29 + $0x140] sm:$0xff] %v463_v40 }
  0x3f   : > { %466 = vst [vmem:[%s2154_s29 + $0x148] sm:$0xff] %v465_v41  ;;  %v467_v42 = vld [vmem:[%s2146_s28 + $0x540] sm:$0xff] }
  0x40   : > { %v469_v43 = vld [vmem:[%s2146_s28 + $0x560] sm:$0xff]  ;;  %468 = vst [vmem:[%s2154_s29 + $0x150] sm:$0xff] %v467_v42 }
  0x41   : > { %v471_v44 = vld [vmem:[%s2146_s28 + $0x580] sm:$0xff]  ;;  %470 = vst [vmem:[%s2154_s29 + $0x158] sm:$0xff] %v469_v43 }
  0x42   : > { %472 = vst [vmem:[%s2154_s29 + $0x160] sm:$0xff] %v471_v44  ;;  %v473_v45 = vld [vmem:[%s2146_s28 + $0x5a0] sm:$0xff] }
  0x43   : > { %v475_v46 = vld [vmem:[%s2146_s28 + $0x5c0] sm:$0xff]  ;;  %474 = vst [vmem:[%s2154_s29 + $0x168] sm:$0xff] %v473_v45 }
  0x44   : > { %v477_v47 = vld [vmem:[%s2146_s28 + $0x5e0] sm:$0xff]  ;;  %476 = vst [vmem:[%s2154_s29 + $0x170] sm:$0xff] %v475_v46 }
  0x45   : > { %478 = vst [vmem:[%s2154_s29 + $0x178] sm:$0xff] %v477_v47  ;;  %v479_v48 = vld [vmem:[%s2146_s28 + $0x600] sm:$0xff] }
  0x46   : > { %v481_v49 = vld [vmem:[%s2146_s28 + $0x620] sm:$0xff]  ;;  %480 = vst [vmem:[%s2154_s29 + $0x180] sm:$0xff] %v479_v48 }
  0x47   : > { %v483_v50 = vld [vmem:[%s2146_s28 + $0x640] sm:$0xff]  ;;  %482 = vst [vmem:[%s2154_s29 + $0x188] sm:$0xff] %v481_v49 }
  0x48   : > { %484 = vst [vmem:[%s2154_s29 + $0x190] sm:$0xff] %v483_v50  ;;  %v485_v51 = vld [vmem:[%s2146_s28 + $0x660] sm:$0xff] }
  0x49   : > { %v487_v52 = vld [vmem:[%s2146_s28 + $0x680] sm:$0xff]  ;;  %486 = vst [vmem:[%s2154_s29 + $0x198] sm:$0xff] %v485_v51 }
  0x4a   : > { %v489_v53 = vld [vmem:[%s2146_s28 + $0x6a0] sm:$0xff]  ;;  %488 = vst [vmem:[%s2154_s29 + $0x1a0] sm:$0xff] %v487_v52 }
  0x4b   : > { %490 = vst [vmem:[%s2154_s29 + $0x1a8] sm:$0xff] %v489_v53  ;;  %v491_v54 = vld [vmem:[%s2146_s28 + $0x6c0] sm:$0xff] }
  0x4c   : > { %v493_v55 = vld [vmem:[%s2146_s28 + $0x6e0] sm:$0xff]  ;;  %492 = vst [vmem:[%s2154_s29 + $0x1b0] sm:$0xff] %v491_v54 }
  0x4d   : > { %v495_v56 = vld [vmem:[%s2146_s28 + $0x700] sm:$0xff]  ;;  %494 = vst [vmem:[%s2154_s29 + $0x1b8] sm:$0xff] %v493_v55 }
  0x4e   : > { %496 = vst [vmem:[%s2154_s29 + $0x1c0] sm:$0xff] %v495_v56  ;;  %v497_v57 = vld [vmem:[%s2146_s28 + $0x720] sm:$0xff] }
  0x4f   : > { %v499_v58 = vld [vmem:[%s2146_s28 + $0x740] sm:$0xff]  ;;  %498 = vst [vmem:[%s2154_s29 + $0x1c8] sm:$0xff] %v497_v57 }
  0x50   : > { %v501_v59 = vld [vmem:[%s2146_s28 + $0x760] sm:$0xff]  ;;  %500 = vst [vmem:[%s2154_s29 + $0x1d0] sm:$0xff] %v499_v58 }
  0x51   : > { %502 = vst [vmem:[%s2154_s29 + $0x1d8] sm:$0xff] %v501_v59  ;;  %v503_v60 = vld [vmem:[%s2146_s28 + $0x780] sm:$0xff] }
  0x52   : > { %v505_v61 = vld [vmem:[%s2146_s28 + $0x7a0] sm:$0xff]  ;;  %504 = vst [vmem:[%s2154_s29 + $0x1e0] sm:$0xff] %v503_v60 }
  0x53   : > { %v507_v62 = vld [vmem:[%s2146_s28 + $0x7c0] sm:$0xff]  ;;  %506 = vst [vmem:[%s2154_s29 + $0x1e8] sm:$0xff] %v505_v61 }
  0x54   : > { %508 = vst [vmem:[%s2154_s29 + $0x1f0] sm:$0xff] %v507_v62  ;;  %v509_v63 = vld [vmem:[%s2146_s28 + $0x7e0] sm:$0xff] }
  0x55   : > { %v511_v0 = vld [vmem:[%s2146_s28 + $0x800] sm:$0xff]  ;;  %510 = vst [vmem:[%s2154_s29 + $0x1f8] sm:$0xff] %v509_v63 }
  0x56   : > { %v513_v1 = vld [vmem:[%s2146_s28 + $0x820] sm:$0xff]  ;;  %512 = vst [vmem:[%s2154_s29 + $0x200] sm:$0xff] %v511_v0 }
  0x57   : > { %514 = vst [vmem:[%s2154_s29 + $0x208] sm:$0xff] %v513_v1  ;;  %v515_v2 = vld [vmem:[%s2146_s28 + $0x840] sm:$0xff] }
  0x58   : > { %v517_v3 = vld [vmem:[%s2146_s28 + $0x860] sm:$0xff]  ;;  %516 = vst [vmem:[%s2154_s29 + $0x210] sm:$0xff] %v515_v2 }
  0x59   : > { %v519_v4 = vld [vmem:[%s2146_s28 + $0x880] sm:$0xff]  ;;  %518 = vst [vmem:[%s2154_s29 + $0x218] sm:$0xff] %v517_v3 }
  0x5a   : > { %520 = vst [vmem:[%s2154_s29 + $0x220] sm:$0xff] %v519_v4  ;;  %v521_v5 = vld [vmem:[%s2146_s28 + $0x8a0] sm:$0xff] }
  0x5b   : > { %v523_v6 = vld [vmem:[%s2146_s28 + $0x8c0] sm:$0xff]  ;;  %522 = vst [vmem:[%s2154_s29 + $0x228] sm:$0xff] %v521_v5 }
  0x5c   : > { %v525_v7 = vld [vmem:[%s2146_s28 + $0x8e0] sm:$0xff]  ;;  %524 = vst [vmem:[%s2154_s29 + $0x230] sm:$0xff] %v523_v6 }
  0x5d   : > { %526 = vst [vmem:[%s2154_s29 + $0x238] sm:$0xff] %v525_v7  ;;  %v527_v8 = vld [vmem:[%s2146_s28 + $0x900] sm:$0xff] }
  0x5e   : > { %v529_v9 = vld [vmem:[%s2146_s28 + $0x920] sm:$0xff]  ;;  %528 = vst [vmem:[%s2154_s29 + $0x240] sm:$0xff] %v527_v8 }
  0x5f   : > { %v531_v10 = vld [vmem:[%s2146_s28 + $0x940] sm:$0xff]  ;;  %530 = vst [vmem:[%s2154_s29 + $0x248] sm:$0xff] %v529_v9 }
  0x60   : > { %532 = vst [vmem:[%s2154_s29 + $0x250] sm:$0xff] %v531_v10  ;;  %v533_v11 = vld [vmem:[%s2146_s28 + $0x960] sm:$0xff] }
  0x61   : > { %v535_v12 = vld [vmem:[%s2146_s28 + $0x980] sm:$0xff]  ;;  %534 = vst [vmem:[%s2154_s29 + $0x258] sm:$0xff] %v533_v11 }
  0x62   : > { %v537_v13 = vld [vmem:[%s2146_s28 + $0x9a0] sm:$0xff]  ;;  %536 = vst [vmem:[%s2154_s29 + $0x260] sm:$0xff] %v535_v12 }
  0x63   : > { %538 = vst [vmem:[%s2154_s29 + $0x268] sm:$0xff] %v537_v13  ;;  %v539_v14 = vld [vmem:[%s2146_s28 + $0x9c0] sm:$0xff] }
  0x64   : > { %v541_v15 = vld [vmem:[%s2146_s28 + $0x9e0] sm:$0xff]  ;;  %540 = vst [vmem:[%s2154_s29 + $0x270] sm:$0xff] %v539_v14 }
  0x65   : > { %v543_v16 = vld [vmem:[%s2146_s28 + $0xa00] sm:$0xff]  ;;  %542 = vst [vmem:[%s2154_s29 + $0x278] sm:$0xff] %v541_v15 }
  0x66   : > { %544 = vst [vmem:[%s2154_s29 + $0x280] sm:$0xff] %v543_v16  ;;  %v545_v17 = vld [vmem:[%s2146_s28 + $0xa20] sm:$0xff] }
  0x67   : > { %v547_v18 = vld [vmem:[%s2146_s28 + $0xa40] sm:$0xff]  ;;  %546 = vst [vmem:[%s2154_s29 + $0x288] sm:$0xff] %v545_v17 }
  0x68   : > { %v549_v19 = vld [vmem:[%s2146_s28 + $0xa60] sm:$0xff]  ;;  %548 = vst [vmem:[%s2154_s29 + $0x290] sm:$0xff] %v547_v18 }
  0x69   : > { %550 = vst [vmem:[%s2154_s29 + $0x298] sm:$0xff] %v549_v19  ;;  %v551_v20 = vld [vmem:[%s2146_s28 + $0xa80] sm:$0xff] }
  0x6a   : > { %v553_v21 = vld [vmem:[%s2146_s28 + $0xaa0] sm:$0xff]  ;;  %552 = vst [vmem:[%s2154_s29 + $0x2a0] sm:$0xff] %v551_v20 }
  0x6b   : > { %v555_v22 = vld [vmem:[%s2146_s28 + $0xac0] sm:$0xff]  ;;  %554 = vst [vmem:[%s2154_s29 + $0x2a8] sm:$0xff] %v553_v21 }
  0x6c   : > { %556 = vst [vmem:[%s2154_s29 + $0x2b0] sm:$0xff] %v555_v22  ;;  %v557_v23 = vld [vmem:[%s2146_s28 + $0xae0] sm:$0xff] }
  0x6d   : > { %v559_v24 = vld [vmem:[%s2146_s28 + $0xb00] sm:$0xff]  ;;  %558 = vst [vmem:[%s2154_s29 + $0x2b8] sm:$0xff] %v557_v23 }
  0x6e   : > { %v561_v25 = vld [vmem:[%s2146_s28 + $0xb20] sm:$0xff]  ;;  %560 = vst [vmem:[%s2154_s29 + $0x2c0] sm:$0xff] %v559_v24 }
  0x6f   : > { %562 = vst [vmem:[%s2154_s29 + $0x2c8] sm:$0xff] %v561_v25  ;;  %v563_v26 = vld [vmem:[%s2146_s28 + $0xb40] sm:$0xff] }
  0x70   : > { %v565_v27 = vld [vmem:[%s2146_s28 + $0xb60] sm:$0xff]  ;;  %564 = vst [vmem:[%s2154_s29 + $0x2d0] sm:$0xff] %v563_v26 }
  0x71   : > { %v567_v28 = vld [vmem:[%s2146_s28 + $0xb80] sm:$0xff]  ;;  %566 = vst [vmem:[%s2154_s29 + $0x2d8] sm:$0xff] %v565_v27 }
  0x72   : > { %568 = vst [vmem:[%s2154_s29 + $0x2e0] sm:$0xff] %v567_v28  ;;  %v569_v29 = vld [vmem:[%s2146_s28 + $0xba0] sm:$0xff] }
  0x73   : > { %v571_v30 = vld [vmem:[%s2146_s28 + $0xbc0] sm:$0xff]  ;;  %570 = vst [vmem:[%s2154_s29 + $0x2e8] sm:$0xff] %v569_v29 }
  0x74   : > { %v573_v31 = vld [vmem:[%s2146_s28 + $0xbe0] sm:$0xff]  ;;  %572 = vst [vmem:[%s2154_s29 + $0x2f0] sm:$0xff] %v571_v30 }
  0x75   : > { %574 = vst [vmem:[%s2154_s29 + $0x2f8] sm:$0xff] %v573_v31 }
  0x76 PF: > { %p1652_p8 = scmp.ge.s32.totalorder %s2076_s16, 1  ;;  %p587_p9 = scmp.lt.s32.totalorder %s2076_s16, 5 }
  0x78   : > { %p588_p10 = pnand %p1652_p8, %p587_p9 }
  0x79   : > { %s594_s30 = sand.u32 (!%p588_p10), 1, %s2060_s12   ;;  %v1974_v32 = vld [vmem:[%s2508_s0 + $0x4] ss:$24 sps:$4 sm:$0xff] (!%p588_p10)   ;;  %s1654_s19 = sshll.u32 (!%p588_p10), %s2068_s14, 1 }
  0x7a   : > { %591 = sbr.rel (%p588_p10) target bundleno = 486 (0x1e6), region = 66  ;;  %v1977_v33 = vld [vmem:[%s2508_s0 + $0xc] ss:$24 sps:$4 sm:$0xff] (!%p588_p10)   ;;  %1333 = vmatprep.mubr.bf16.mxu1 (!%p588_p10), %v1974_v32  ;;  %p635_p11 = scmp.lt.s32.totalorder (!%p588_p10), %s1654_s19, 7 }
  0x7b   : > { %s1835_s4 = smul.u32 (!%p588_p10), 768, %s594_s30  ;;  %1386 = vmatprep.mubr.bf16.mxu0 (!%p588_p10), %v1977_v33  ;;  %s1653_s24 = sshll.u32 (!%p588_p10), %s594_s30, 5 }
  0x7c   : > { %s625_s12 = scalar_lea.vmem (!%p588_p10), [#allocation3], %s1653_s24 }
  0x7d   : > { %s2353_s9 = scalar_lea.vmem (!%p588_p10), [#allocation2], %s1835_s4 }
  0x7e   : > { %v1876_v34 = vld [vmem:[%s2353_s9 + $0x4] ss:$8 sps:$4 sm:$0xff] (!%p588_p10)   ;;  %v1880_v36 = vld [vmem:[%s2353_s9] ss:$8 sps:$4 sm:$0xff] (!%p588_p10)   ;;  %v1882_v38 = vld [vmem:[%s2353_s9 + $0x14] ss:$8 sps:$4 sm:$0xff] (!%p588_p10)  }
  0x7f   : > { %v1878_v35 = vld [vmem:[%s2353_s9 + $0x104] ss:$8 sps:$4 sm:$0xff] (!%p588_p10)   ;;  %1301 = vmatprep.subr.bf16.mxu1 (!%p588_p10), %v1876_v34  ;;  %v1881_v37 = vld [vmem:[%s2353_s9 + $0x100] ss:$8 sps:$4 sm:$0xff] (!%p588_p10)   ;;  %v1884_v39 = vld [vmem:[%s2353_s9 + $0x114] ss:$8 sps:$4 sm:$0xff] (!%p588_p10)  }
  0x80   : > { %1354 = vmatprep.subr.bf16.mxu0 (!%p588_p10), %v1878_v35  ;;  %1302 = vmatpush1.bf16.msra.mxu1 (!%p588_p10), %v1880_v36  ;;  %v1886_v40 = vld [vmem:[%s2353_s9 + $0x10] ss:$8 sps:$4 sm:$0xff] (!%p588_p10)   ;;  %v1888_v42 = vld [vmem:[%s2353_s9 + $0x24] ss:$8 sps:$4 sm:$0xff] (!%p588_p10)   ;;  %v1892_v44 = vld [vmem:[%s2353_s9 + $0x20] ss:$8 sps:$4 sm:$0xff] (!%p588_p10)  }
  0x81   : > { %1355 = vmatpush1.bf16.msra.mxu0 %v1881_v37  ;;  %1303 = vmatprep.subr.bf16.mxu1 %v1882_v38  ;;  %v1887_v41 = vld [vmem:[%s2353_s9 + $0x110] ss:$8 sps:$4 sm:$0xff]   ;;  %v1890_v43 = vld [vmem:[%s2353_s9 + $0x124] ss:$8 sps:$4 sm:$0xff]   ;;  %v1893_v45 = vld [vmem:[%s2353_s9 + $0x120] ss:$8 sps:$4 sm:$0xff]  }
  0x82   : > { %1356 = vmatprep.subr.bf16.mxu0 %v1884_v39  ;;  %v1894_v46 = vld [vmem:[%s2353_s9 + $0x34] ss:$8 sps:$4 sm:$0xff]   ;;  %v1898_v48 = vld [vmem:[%s2353_s9 + $0x30] ss:$8 sps:$4 sm:$0xff]   ;;  %v1900_v50 = vld [vmem:[%s2353_s9 + $0x44] ss:$8 sps:$4 sm:$0xff]  }
  0x83   : > { %v1896_v47 = vld [vmem:[%s2353_s9 + $0x134] ss:$8 sps:$4 sm:$0xff]   ;;  %v1899_v49 = vld [vmem:[%s2353_s9 + $0x130] ss:$8 sps:$4 sm:$0xff]   ;;  %v1902_v51 = vld [vmem:[%s2353_s9 + $0x144] ss:$8 sps:$4 sm:$0xff]  }
  0x84   : > { %1304 = vmatpush1.bf16.msra.mxu1 %v1886_v40  ;;  %v1904_v52 = vld [vmem:[%s2353_s9 + $0x40] ss:$8 sps:$4 sm:$0xff]   ;;  %v1906_v54 = vld [vmem:[%s2353_s9 + $0x54] ss:$8 sps:$4 sm:$0xff]   ;;  %v1910_v56 = vld [vmem:[%s2353_s9 + $0x50] ss:$8 sps:$4 sm:$0xff]  }
  0x85   : > { %1357 = vmatpush1.bf16.msra.mxu0 %v1887_v41  ;;  %1305 = vmatprep.subr.bf16.mxu1 %v1888_v42  ;;  %v1905_v53 = vld [vmem:[%s2353_s9 + $0x140] ss:$8 sps:$4 sm:$0xff]   ;;  %v1908_v55 = vld [vmem:[%s2353_s9 + $0x154] ss:$8 sps:$4 sm:$0xff]   ;;  %v1911_v57 = vld [vmem:[%s2353_s9 + $0x150] ss:$8 sps:$4 sm:$0xff]  }
  0x86   : > { %1358 = vmatprep.subr.bf16.mxu0 %v1890_v43  ;;  %v1912_v58 = vld [vmem:[%s2353_s9 + $0x64] ss:$8 sps:$4 sm:$0xff]   ;;  %v1916_v60 = vld [vmem:[%s2353_s9 + $0x60] ss:$8 sps:$4 sm:$0xff]   ;;  %v1918_v62 = vld [vmem:[%s2353_s9 + $0x74] ss:$8 sps:$4 sm:$0xff]  }
  0x87   : > { %v1914_v59 = vld [vmem:[%s2353_s9 + $0x164] ss:$8 sps:$4 sm:$0xff]   ;;  %v1917_v61 = vld [vmem:[%s2353_s9 + $0x160] ss:$8 sps:$4 sm:$0xff]   ;;  %v1920_v63 = vld [vmem:[%s2353_s9 + $0x174] ss:$8 sps:$4 sm:$0xff]  }
  0x88   : > { %1306 = vmatpush1.bf16.msra.mxu1 %v1892_v44  ;;  %v1922_v0 = vld [vmem:[%s2353_s9 + $0x70] ss:$8 sps:$4 sm:$0xff]   ;;  %v1924_v2 = vld [vmem:[%s2353_s9 + $0x84] ss:$8 sps:$4 sm:$0xff]   ;;  %v1928_v4 = vld [vmem:[%s2353_s9 + $0x80] ss:$8 sps:$4 sm:$0xff]  }
  0x89   : > { %1359 = vmatpush1.bf16.msra.mxu0 %v1893_v45  ;;  %1307 = vmatprep.subr.bf16.mxu1 %v1894_v46  ;;  %v1923_v1 = vld [vmem:[%s2353_s9 + $0x170] ss:$8 sps:$4 sm:$0xff]   ;;  %v1926_v3 = vld [vmem:[%s2353_s9 + $0x184] ss:$8 sps:$4 sm:$0xff]   ;;  %v1929_v5 = vld [vmem:[%s2353_s9 + $0x180] ss:$8 sps:$4 sm:$0xff]  }
  0x8a   : > { %1360 = vmatprep.subr.bf16.mxu0 %v1896_v47  ;;  %v1930_v6 = vld [vmem:[%s2353_s9 + $0x94] ss:$8 sps:$4 sm:$0xff]   ;;  %v1934_v8 = vld [vmem:[%s2353_s9 + $0x90] ss:$8 sps:$4 sm:$0xff]   ;;  %v1936_v10 = vld [vmem:[%s2353_s9 + $0xa4] ss:$8 sps:$4 sm:$0xff]  }
  0x8b   : > { %v1932_v7 = vld [vmem:[%s2353_s9 + $0x194] ss:$8 sps:$4 sm:$0xff]   ;;  %v1935_v9 = vld [vmem:[%s2353_s9 + $0x190] ss:$8 sps:$4 sm:$0xff]   ;;  %v1938_v11 = vld [vmem:[%s2353_s9 + $0x1a4] ss:$8 sps:$4 sm:$0xff]  }
  0x8c   : > { %1308 = vmatpush1.bf16.msra.mxu1 %v1898_v48  ;;  %v1940_v12 = vld [vmem:[%s2353_s9 + $0xa0] ss:$8 sps:$4 sm:$0xff]   ;;  %v1942_v14 = vld [vmem:[%s2353_s9 + $0xb4] ss:$8 sps:$4 sm:$0xff]   ;;  %v1946_v16 = vld [vmem:[%s2353_s9 + $0xb0] ss:$8 sps:$4 sm:$0xff]  }
  0x8d   : > { %1361 = vmatpush1.bf16.msra.mxu0 %v1899_v49  ;;  %1309 = vmatprep.subr.bf16.mxu1 %v1900_v50  ;;  %v1941_v13 = vld [vmem:[%s2353_s9 + $0x1a0] ss:$8 sps:$4 sm:$0xff]   ;;  %v1944_v15 = vld [vmem:[%s2353_s9 + $0x1b4] ss:$8 sps:$4 sm:$0xff]   ;;  %v1947_v17 = vld [vmem:[%s2353_s9 + $0x1b0] ss:$8 sps:$4 sm:$0xff]  }
  0x8e   : > { %1362 = vmatprep.subr.bf16.mxu0 %v1902_v51  ;;  %v1948_v18 = vld [vmem:[%s2353_s9 + $0xc4] ss:$8 sps:$4 sm:$0xff]   ;;  %v1952_v20 = vld [vmem:[%s2353_s9 + $0xc0] ss:$8 sps:$4 sm:$0xff]   ;;  %v1954_v22 = vld [vmem:[%s2353_s9 + $0xd4] ss:$8 sps:$4 sm:$0xff]  }
  0x8f   : > { %v1950_v19 = vld [vmem:[%s2353_s9 + $0x1c4] ss:$8 sps:$4 sm:$0xff]   ;;  %v1953_v21 = vld [vmem:[%s2353_s9 + $0x1c0] ss:$8 sps:$4 sm:$0xff]   ;;  %v1956_v23 = vld [vmem:[%s2353_s9 + $0x1d4] ss:$8 sps:$4 sm:$0xff]  }
  0x90   : > { %1310 = vmatpush1.bf16.msra.mxu1 %v1904_v52  ;;  %v1958_v24 = vld [vmem:[%s2353_s9 + $0xd0] ss:$8 sps:$4 sm:$0xff]   ;;  %v1960_v26 = vld [vmem:[%s2353_s9 + $0xe4] ss:$8 sps:$4 sm:$0xff]   ;;  %v1964_v28 = vld [vmem:[%s2353_s9 + $0xe0] ss:$8 sps:$4 sm:$0xff]  }
  0x91   : > { %1363 = vmatpush1.bf16.msra.mxu0 %v1905_v53  ;;  %1311 = vmatprep.subr.bf16.mxu1 %v1906_v54  ;;  %v1959_v25 = vld [vmem:[%s2353_s9 + $0x1d0] ss:$8 sps:$4 sm:$0xff]   ;;  %v1962_v27 = vld [vmem:[%s2353_s9 + $0x1e4] ss:$8 sps:$4 sm:$0xff]   ;;  %v1965_v29 = vld [vmem:[%s2353_s9 + $0x1e0] ss:$8 sps:$4 sm:$0xff]  }
  0x92   : > { %1364 = vmatprep.subr.bf16.mxu0 %v1908_v55  ;;  %v1966_v30 = vld [vmem:[%s2353_s9 + $0xf4] ss:$8 sps:$4 sm:$0xff]   ;;  %v1970_v32 = vld [vmem:[%s2353_s9 + $0xf0] ss:$8 sps:$4 sm:$0xff]   ;;  %v1980_v34 = vld [vmem:[%s2353_s9 + $0x204] ss:$8 sps:$4 sm:$0xff]  }
  0x93   : > { %v1968_v31 = vld [vmem:[%s2353_s9 + $0x1f4] ss:$8 sps:$4 sm:$0xff]   ;;  %v1971_v33 = vld [vmem:[%s2353_s9 + $0x1f0] ss:$8 sps:$4 sm:$0xff]   ;;  %v1975_v36 = vld [vmem:[%s2508_s0 + $0x8] ss:$24 sps:$4 sm:$0xff]  }
  0x94   : > { %1312 = vmatpush1.bf16.msra.mxu1 %v1910_v56  ;;  %v1972_v35 = vld [vmem:[%s2508_s0] ss:$24 sps:$4 sm:$0xff]   ;;  %v1983_v38 = vld [vmem:[%s2353_s9 + $0x214] ss:$8 sps:$4 sm:$0xff]   ;;  %v1986_v42 = vld [vmem:[%s2353_s9 + $0x224] ss:$8 sps:$4 sm:$0xff]  }
  0x95   : > { %1365 = vmatpush1.bf16.msra.mxu0 %v1911_v57  ;;  %1313 = vmatprep.subr.bf16.mxu1 %v1912_v58  ;;  %v1978_v37 = vld [vmem:[%s2353_s9 + $0x200] ss:$8 sps:$4 sm:$0xff]   ;;  %v2017_v39 = vld [vmem:[%s2508_s0 + $0x34] ss:$24 sps:$4 sm:$0xff]   ;;  %v1981_v41 = vld [vmem:[%s2353_s9 + $0x210] ss:$8 sps:$4 sm:$0xff]  }
  0x96   : > { %1366 = vmatprep.subr.bf16.mxu0 %v1914_v59  ;;  %v2020_v40 = vld [vmem:[%s2508_s0 + $0x3c] ss:$24 sps:$4 sm:$0xff]   ;;  %v2019_v43 = vld [vmem:[%s2508_s0 + $0x30] ss:$24 sps:$4 sm:$0xff]   ;;  %v1992_v50 = vld [vmem:[%s2353_s9 + $0x244] ss:$8 sps:$4 sm:$0xff]  }
  0x97   : > { %v2025_v44 = vld [vmem:[%s2508_s0 + $0x38] ss:$24 sps:$4 sm:$0xff]   ;;  %v1984_v45 = vld [vmem:[%s2353_s9 + $0x220] ss:$8 sps:$4 sm:$0xff]   ;;  %v1989_v46 = vld [vmem:[%s2353_s9 + $0x234] ss:$8 sps:$4 sm:$0xff]  }
  0x98   : > { %1314 = vmatpush1.bf16.msra.mxu1 %v1916_v60  ;;  %v2034_v47 = vld [vmem:[%s2508_s0 + $0x14] ss:$24 sps:$4 sm:$0xff]   ;;  %v2037_v48 = vld [vmem:[%s2508_s0 + $0x44] ss:$24 sps:$4 sm:$0xff]   ;;  %v1987_v49 = vld [vmem:[%s2353_s9 + $0x230] ss:$8 sps:$4 sm:$0xff]  }
  0x99   : > { %1367 = vmatpush1.bf16.msra.mxu0 %v1917_v61  ;;  %1315 = vmatprep.subr.bf16.mxu1 %v1918_v62  ;;  %v1990_v51 = vld [vmem:[%s2353_s9 + $0x240] ss:$8 sps:$4 sm:$0xff]   ;;  %v1995_v52 = vld [vmem:[%s2353_s9 + $0x254] ss:$8 sps:$4 sm:$0xff]   ;;  %v1993_v53 = vld [vmem:[%s2353_s9 + $0x250] ss:$8 sps:$4 sm:$0xff]  }
  0x9a   : > { %1368 = vmatprep.subr.bf16.mxu0 %v1920_v63  ;;  %v1998_v54 = vld [vmem:[%s2353_s9 + $0x264] ss:$8 sps:$4 sm:$0xff]   ;;  %v1996_v55 = vld [vmem:[%s2353_s9 + $0x260] ss:$8 sps:$4 sm:$0xff]   ;;  %v2001_v56 = vld [vmem:[%s2353_s9 + $0x274] ss:$8 sps:$4 sm:$0xff]  }
  0x9b   : > { %v1999_v57 = vld [vmem:[%s2353_s9 + $0x270] ss:$8 sps:$4 sm:$0xff]   ;;  %v2004_v58 = vld [vmem:[%s2353_s9 + $0x284] ss:$8 sps:$4 sm:$0xff]   ;;  %v2002_v59 = vld [vmem:[%s2353_s9 + $0x280] ss:$8 sps:$4 sm:$0xff]  }
  0x9c   : > { %1316 = vmatpush1.bf16.msra.mxu1 %v1922_v0  ;;  %v2007_v60 = vld [vmem:[%s2353_s9 + $0x294] ss:$8 sps:$4 sm:$0xff]   ;;  %v2005_v61 = vld [vmem:[%s2353_s9 + $0x290] ss:$8 sps:$4 sm:$0xff]   ;;  %v2010_v62 = vld [vmem:[%s2353_s9 + $0x2a4] ss:$8 sps:$4 sm:$0xff]  }
  0x9d   : > { %1369 = vmatpush1.bf16.msra.mxu0 %v1923_v1  ;;  %1317 = vmatprep.subr.bf16.mxu1 %v1924_v2  ;;  %v2008_v63 = vld [vmem:[%s2353_s9 + $0x2a0] ss:$8 sps:$4 sm:$0xff]   ;;  %v2013_v0 = vld [vmem:[%s2353_s9 + $0x2b4] ss:$8 sps:$4 sm:$0xff]   ;;  %v2011_v1 = vld [vmem:[%s2353_s9 + $0x2b0] ss:$8 sps:$4 sm:$0xff]  }
  0x9e   : > { %1370 = vmatprep.subr.bf16.mxu0 %v1926_v3  ;;  %v2016_v2 = vld [vmem:[%s2353_s9 + $0x2c4] ss:$8 sps:$4 sm:$0xff]   ;;  %v2014_v3 = vld [vmem:[%s2353_s9 + $0x2c0] ss:$8 sps:$4 sm:$0xff]   ;;  %s2520_s19 = smov (!%p635_p11, %s1654_s19), 7  ;;  %s1777_s30 = sshll.u32 (%p2133_p6), %s2068_s14, 3 }
  0x9f   : > { %s637_s23 = scalar_lea.vmem %s2510_s2, %s2520_s19  ;;  %s1508_s27 = scalar_lea.vmem (%p2133_p6), %s2511_s3, %s1777_s30 }
  0xa0   : > { %1318 = vmatpush1.bf16.msra.mxu1 %v1928_v4  ;;  %v2024_v4 = vld [vmem:[%s2353_s9 + $0x2d4] ss:$8 sps:$4 sm:$0xff]  }
  0xa1   : > { %1371 = vmatpush1.bf16.msra.mxu0 %v1929_v5  ;;  %1319 = vmatprep.subr.bf16.mxu1 %v1930_v6  ;;  %v2022_v5 = vld [vmem:[%s2353_s9 + $0x2d0] ss:$8 sps:$4 sm:$0xff]   ;;  %v2028_v6 = vld [vmem:[%s2353_s9 + $0x2e4] ss:$8 sps:$4 sm:$0xff]  }
  0xa2   : > { %1372 = vmatprep.subr.bf16.mxu0 %v1932_v7  ;;  %v2026_v7 = vld [vmem:[%s2353_s9 + $0x2e0] ss:$8 sps:$4 sm:$0xff]  }
  0xa4   : > { %1320 = vmatpush1.bf16.msra.mxu1 %v1934_v8  ;;  %v2031_v8 = vld [vmem:[%s2353_s9 + $0x2f4] ss:$8 sps:$4 sm:$0xff]  }
  0xa5   : > { %1373 = vmatpush1.bf16.msra.mxu0 %v1935_v9  ;;  %1321 = vmatprep.subr.bf16.mxu1 %v1936_v10  ;;  %v2029_v9 = vld [vmem:[%s2353_s9 + $0x2f0] ss:$8 sps:$4 sm:$0xff]  }
  0xa6   : > { %1374 = vmatprep.subr.bf16.mxu0 %v1938_v11  ;;  %v2032_v10 = vld [vmem:[%s2508_s0 + $0x10] ss:$24 sps:$4 sm:$0xff]   ;;  %v2035_v11 = vld [vmem:[%s2508_s0 + $0x40] ss:$24 sps:$4 sm:$0xff]  }
  0xa8   : > { %1322 = vmatpush1.bf16.msra.mxu1 %v1940_v12  ;;  %v751_v12 = vlaneseq }
  0xa9   : > { %1375 = vmatpush1.bf16.msra.mxu0 %v1941_v13  ;;  %1323 = vmatprep.subr.bf16.mxu1 %v1942_v14 }
  0xaa   : > { %1376 = vmatprep.subr.bf16.mxu0 %v1944_v15  ;;  %v752_v13 = vshrl.u32 %v751_v12, 7 }
  0xac   : > { %1324 = vmatpush1.bf16.msra.mxu1 %v1946_v16 }
  0xad   : > { %1377 = vmatpush1.bf16.msra.mxu0 %v1947_v17  ;;  %1325 = vmatprep.subr.bf16.mxu1 %v1948_v18  ;;  %v753_v17 = vsub.s32 0, %v752_v13 }
  0xae   : > { %1378 = vmatprep.subr.bf16.mxu0 %v1950_v19  ;;  %v749_v19 = vld [vmem:[%s637_s23] sm:$0x3] }
  0xb0   : > { %1326 = vmatpush1.bf16.msra.mxu1 %v1952_v20  ;;  %v757_v20 = vsub.s32 1, %v752_v13 }
  0xb1   : > { %1379 = vmatpush1.bf16.msra.mxu0 %v1953_v21  ;;  %1327 = vmatprep.subr.bf16.mxu1 %v1954_v22  ;;  %v754_v21 = vrot.slane %v749_v19, %v753_v17 }
  0xb2   : > { %1380 = vmatprep.subr.bf16.mxu0 %v1956_v23  ;;  %v758_v22 = vrot.slane %v749_v19, %v757_v20 }
  0xb4   : > { %1328 = vmatpush1.bf16.msra.mxu1 %v1958_v24 }
  0xb5   : > { %1381 = vmatpush1.bf16.msra.mxu0 %v1959_v25  ;;  %1329 = vmatprep.subr.bf16.mxu1 %v1960_v26 }
  0xb6   : > { %1382 = vmatprep.subr.bf16.mxu0 %v1962_v27 }
  0xb8   : > { %1330 = vmatpush1.bf16.msra.mxu1 %v1964_v28 }
  0xb9   : > { %1383 = vmatpush1.bf16.msra.mxu0 %v1965_v29  ;;  %1331 = vmatprep.subr.bf16.mxu1 %v1966_v30 }
  0xba   : > { %1384 = vmatprep.subr.bf16.mxu0 %v1968_v31 }
  0xbc   : > { %1332 = vmatpush1.bf16.msra.mxu1 %v1970_v32 }
  0xbd   : > { %1385 = vmatpush1.bf16.msra.mxu0 %v1971_v33  ;;  %1778 = vmatprep.subr.bf16.mxu1 %v1980_v34 }
  0xbe   : > { %1407 = vmatprep.subr.bf16.mxu0 %v1980_v34 }
  0xbf   : > { %1334 = vmatmul.mubr.bf16.vlgmr.msra.gmra.mrb[0].mxu1 %v1972_v35 }
  0xc0   : > { %1387 = vmatmul.mubr.bf16.vlgmr.msra.gmra.mrb[0].mxu0 %v1975_v36  ;;  %1794 = vmatpush1.bf16.msra.mxu1 %v1978_v37 }
  0xc1   : > { %1408 = vmatpush1.bf16.msra.mxu0 %v1978_v37  ;;  %1779 = vmatprep.subr.bf16.mxu1 %v1983_v38 }
  0xc2   : > { %1409 = vmatprep.subr.bf16.mxu0 %v1983_v38  ;;  %1343 = vmatprep.mubr.bf16.mxu1 %v2017_v39 }
  0xc3   : > { %1396 = vmatprep.mubr.bf16.mxu0 %v2020_v40 }
  0xc4   : > { %1795 = vmatpush1.bf16.msra.mxu1 %v1981_v41 }
  0xc5   : > { %1410 = vmatpush1.bf16.msra.mxu0 %v1981_v41  ;;  %1780 = vmatprep.subr.bf16.mxu1 %v1986_v42 }
  0xc6   : > { %1411 = vmatprep.subr.bf16.mxu0 %v1986_v42 }
  0xc7   : > { %1344 = vmatmul.mubr.bf16.gmra.mrb[4].mxu1 %v2019_v43 }
  0xc8   : > { %1397 = vmatmul.mubr.bf16.gmra.mrb[4].mxu0 %v2025_v44  ;;  %1796 = vmatpush1.bf16.msra.mxu1 %v1984_v45 }
  0xc9   : > { %1412 = vmatpush1.bf16.msra.mxu0 %v1984_v45  ;;  %1781 = vmatprep.subr.bf16.mxu1 %v1989_v46 }
  0xca   : > { %1413 = vmatprep.subr.bf16.mxu0 %v1989_v46  ;;  %1439 = vmatprep.mubr.bf16.mxu0 %v2034_v47 }
  0xcb   : > { %1449 = vmatprep.mubr.bf16.mxu1 %v2037_v48 }
  0xcc   : > { %1797 = vmatpush1.bf16.msra.mxu1 %v1987_v49 }
  0xcd   : > { %1414 = vmatpush1.bf16.msra.mxu0 %v1987_v49  ;;  %1782 = vmatprep.subr.bf16.mxu1 %v1992_v50 }
  0xce   : > { %1415 = vmatprep.subr.bf16.mxu0 %v1992_v50 }
  0xd0   : > { %1798 = vmatpush1.bf16.msra.mxu1 %v1990_v51 }
  0xd1   : > { %1416 = vmatpush1.bf16.msra.mxu0 %v1990_v51  ;;  %1783 = vmatprep.subr.bf16.mxu1 %v1995_v52 }
  0xd2   : > { %1417 = vmatprep.subr.bf16.mxu0 %v1995_v52 }
  0xd4   : > { %1799 = vmatpush1.bf16.msra.mxu1 %v1993_v53 }
  0xd5   : > { %1418 = vmatpush1.bf16.msra.mxu0 %v1993_v53  ;;  %1784 = vmatprep.subr.bf16.mxu1 %v1998_v54 }
  0xd6   : > { %1419 = vmatprep.subr.bf16.mxu0 %v1998_v54 }
  0xd8   : > { %1800 = vmatpush1.bf16.msra.mxu1 %v1996_v55 }
  0xd9   : > { %1420 = vmatpush1.bf16.msra.mxu0 %v1996_v55  ;;  %1785 = vmatprep.subr.bf16.mxu1 %v2001_v56 }
  0xda   : > { %1421 = vmatprep.subr.bf16.mxu0 %v2001_v56 }
  0xdc   : > { %1801 = vmatpush1.bf16.msra.mxu1 %v1999_v57 }
  0xdd   : > { %1422 = vmatpush1.bf16.msra.mxu0 %v1999_v57  ;;  %1786 = vmatprep.subr.bf16.mxu1 %v2004_v58 }
  0xde   : > { %1423 = vmatprep.subr.bf16.mxu0 %v2004_v58 }
  0xe0   : > { %1802 = vmatpush1.bf16.msra.mxu1 %v2002_v59 }
  0xe1   : > { %1424 = vmatpush1.bf16.msra.mxu0 %v2002_v59  ;;  %1787 = vmatprep.subr.bf16.mxu1 %v2007_v60 }
  0xe2   : > { %1425 = vmatprep.subr.bf16.mxu0 %v2007_v60 }
  0xe4   : > { %1803 = vmatpush1.bf16.msra.mxu1 %v2005_v61 }
  0xe5   : > { %1426 = vmatpush1.bf16.msra.mxu0 %v2005_v61  ;;  %1788 = vmatprep.subr.bf16.mxu1 %v2010_v62 }
  0xe6   : > { %1427 = vmatprep.subr.bf16.mxu0 %v2010_v62 }
  0xe8   : > { %1804 = vmatpush1.bf16.msra.mxu1 %v2008_v63 }
  0xe9   : > { %1428 = vmatpush1.bf16.msra.mxu0 %v2008_v63  ;;  %1789 = vmatprep.subr.bf16.mxu1 %v2013_v0 }
  0xea   : > { %1429 = vmatprep.subr.bf16.mxu0 %v2013_v0 }
  0xec   : > { %1805 = vmatpush1.bf16.msra.mxu1 %v2011_v1 }
  0xed   : > { %1430 = vmatpush1.bf16.msra.mxu0 %v2011_v1  ;;  %1790 = vmatprep.subr.bf16.mxu1 %v2016_v2 }
  0xee   : > { %1431 = vmatprep.subr.bf16.mxu0 %v2016_v2 }
  0xf0   : > { %1806 = vmatpush1.bf16.msra.mxu1 %v2014_v3 }
  0xf1   : > { %1432 = vmatpush1.bf16.msra.mxu0 %v2014_v3  ;;  %1791 = vmatprep.subr.bf16.mxu1 %v2024_v4 }
  0xf2   : > { %1433 = vmatprep.subr.bf16.mxu0 %v2024_v4 }
  0xf4   : > { %1807 = vmatpush1.bf16.msra.mxu1 %v2022_v5 }
  0xf5   : > { %1434 = vmatpush1.bf16.msra.mxu0 %v2022_v5  ;;  %1792 = vmatprep.subr.bf16.mxu1 %v2028_v6 }
  0xf6   : > { %1435 = vmatprep.subr.bf16.mxu0 %v2028_v6 }
  0xf8   : > { %1808 = vmatpush1.bf16.msra.mxu1 %v2026_v7 }
  0xf9   : > { %1436 = vmatpush1.bf16.msra.mxu0 %v2026_v7  ;;  %1793 = vmatprep.subr.bf16.mxu1 %v2031_v8 }
  0xfa   : > { %1437 = vmatprep.subr.bf16.mxu0 %v2031_v8 }
  0xfc   : > { %1809 = vmatpush1.bf16.msra.mxu1 %v2029_v9 }
  0xfd   : > { %1438 = vmatpush1.bf16.msra.mxu0 %v2029_v9 }
  0xff   : > { %1450 = vmatmul.mubr.bf16.vlgmr.msra.gmra.mrb[8].mxu1 %v2035_v11 }
 0x100   : > { %1440 = vmatmul.mubr.bf16.vlgmr.msra.gmra.mrb[0].mxu0 %v2032_v10 }
 0x192   : > { %v1335_v14 = vpop.f32.mrb[0].mxu1 }
 0x193   : > { %v1337_v15 = vpop.f32.mrb[1].mxu1  ;;  %v1336_v39 = vadd.f32 %v1335_v14, %v754_v21 }
 0x194   : > { %v1339_v16 = vpop.f32.mrb[2].mxu1  ;;  %v1338_v40 = vadd.f32 %v1337_v15, %v758_v22 }
 0x195   : > { %v1341_v18 = vpop.f32.mrb[3].mxu1  ;;  %v1340_v43 = vadd.f32 %v1339_v16, %v754_v21 }
 0x196   : > { %v1342_v48 = vadd.f32 %v1341_v18, %v758_v22 }
 0x19a   : > { %v1345_v23 = vpop.f32.mrb[4].mxu1 }
 0x19b   : > { %v1398_v24 = vpop.f32.mrb[4].mxu0  ;;  %v1346_v25 = vadd.f32 %v1345_v23, %v754_v21  ;;  %v1347_v26 = vpop.f32.mrb[5].mxu1 }
 0x19c   : > { %v1400_v27 = vpop.f32.mrb[5].mxu0  ;;  %v1348_v28 = vadd.f32 %v1347_v26, %v758_v22  ;;  %v1349_v29 = vpop.f32.mrb[6].mxu1 }
 0x19d   : > { %v1402_v30 = vpop.f32.mrb[6].mxu0  ;;  %v1350_v31 = vadd.f32 %v1349_v29, %v754_v21  ;;  %v1399_v32 = vadd.f32 %v1398_v24, %v1346_v25  ;;  %v1351_v33 = vpop.f32.mrb[7].mxu1 }
 0x19e   : > { %v1404_v34 = vpop.f32.mrb[7].mxu0  ;;  %v1352_v35 = vadd.f32 %v1351_v33, %v758_v22  ;;  %v1401_v36 = vadd.f32 %v1400_v27, %v1348_v28 }
 0x19f   : > { %v1403_v37 = vadd.f32 %v1402_v30, %v1350_v31 }
 0x1a0   : > { %v1405_v38 = vadd.f32 %v1404_v34, %v1352_v35 }
 0x1d2   : > { %v1451_v42 = vpop.f32.mrb[8].mxu1 }
 0x1d3   : > { %v1441_v41 = vpop.f32.mrb[0].mxu0  ;;  %v1452_v45 = vadd.f32 %v1451_v42, %v1399_v32  ;;  %v1453_v47 = vpop.f32.mrb[9].mxu1 }
 0x1d4   : > { %v1811_v44 = vadd.f32 %v1441_v41, %v1336_v39  ;;  %v1443_v46 = vpop.f32.mrb[1].mxu0  ;;  %v1454_v50 = vadd.f32 %v1453_v47, %v1401_v36  ;;  %v1455_v52 = vpop.f32.mrb[10].mxu1 }
 0x1d5   : > { %v1813_v49 = vadd.f32 %v1443_v46, %v1338_v40  ;;  %v1445_v51 = vpop.f32.mrb[2].mxu0  ;;  %v1464_v54 = vmax.f32 %v1452_v45, 0.0  ;;  %v1456_v56 = vadd.f32 %v1455_v52, %v1403_v37  ;;  %v1457_v58 = vpop.f32.mrb[11].mxu1 }
 0x1d6   : > { %v1460_v53 = vmax.f32 %v1811_v44, 0.0  ;;  %v1815_v55 = vadd.f32 %v1445_v51, %v1340_v43  ;;  %v1447_v57 = vpop.f32.mrb[3].mxu0  ;;  %v1465_v60 = vmax.f32 %v1454_v50, 0.0  ;;  %v1458_v62 = vadd.f32 %v1457_v58, %v1405_v38 }
 0x1d7   : > { %v1461_v59 = vmax.f32 %v1813_v49, 0.0  ;;  %v1817_v61 = vadd.f32 %v1447_v57, %v1342_v48  ;;  %v1466_v0 = vmax.f32 %v1456_v56, 0.0  ;;  %1502 = sbr.rel (!%p2133_p6) target bundleno = 486 (0x1e6), region = 74 }
 0x1d8   : > { %v1462_v63 = vmax.f32 %v1815_v55, 0.0  ;;  %v1775_v2 = vpack.c.bf16 %v1465_v60, %v1464_v54  ;;  %v1467_v4 = vmax.f32 %v1458_v62, 0.0 }
 0x1d9   : > { %v1773_v1 = vpack.c.bf16 %v1461_v59, %v1460_v53  ;;  %v1463_v3 = vmax.f32 %v1817_v61, 0.0 }
 0x1da   : > { %1494 = vst [vmem:[%s625_s12 + $0x10] sm:$0xff] %v1775_v2  ;;  %v1776_v6 = vpack.c.bf16 %v1467_v4, %v1466_v0 }
 0x1db   : > { %1492 = vst [vmem:[%s625_s12] sm:$0xff] %v1773_v1  ;;  %v1774_v5 = vpack.c.bf16 %v1463_v3, %v1462_v63 }
 0x1dc   : > { %1495 = vst [vmem:[%s625_s12 + $0x18] sm:$0xff] %v1776_v6 }
 0x1dd   : > { %1493 = vst [vmem:[%s625_s12 + $0x8] sm:$0xff] %v1774_v5 }
 0x1e1   : > { %v1546_v9 = vld [vmem:[%s625_s12 + $0x10] sm:$0xff] }
 0x1e2   : > { %v1542_v7 = vld [vmem:[%s625_s12] sm:$0xff]  ;;  %1547 = vst [vmem:[%s1508_s27 + $0x40] sm:$0xff] %v1546_v9 }
 0x1e3   : > { %v1548_v10 = vld [vmem:[%s625_s12 + $0x18] sm:$0xff]  ;;  %1543 = vst [vmem:[%s1508_s27] sm:$0xff] %v1542_v7 }
 0x1e4   : > { %v1544_v8 = vld [vmem:[%s625_s12 + $0x8] sm:$0xff]  ;;  %1549 = vst [vmem:[%s1508_s27 + $0x60] sm:$0xff] %v1548_v10 }
 0x1e5   : > { %1545 = vst [vmem:[%s1508_s27 + $0x20] sm:$0xff] %v1544_v8 }
 0x1e6 PF: > { %s13_s16 = sadd.s32 1, %s2076_s16   ;;  %s2513_s12 = smov %s2064_s13 }
 0x1e7   : > { %p10_p12 = scmp.ge.s32.totalorder %s13_s16, 6   ;;  %s2514_s13 = smov %s2138_s22 }
 0x1e8   : > { %s2515_s14 = smov %s2072_s15  ;;  %s2516_s15 = smov %s2518_s17 }
 0x1e9   :  { %12 = sbr.rel (!%p10_p12) target bundleno = 3 (0x3), region = 149 }

// kernel: _device_forward.5
= control target key start
LH: loop header
LB: loop body
LE: loop exit
PB: predicated region body
PF: predicated region fallthrough
CT: control target
= control target key end

     0   :  { %8 = vsyncpa [#allocation3], 0  ;;  %s6772_s0 = inlined_call_operand.vmem [shape: bf16[16,4096], index: 0, kind: input, shape index: {}]   ;;  %s6773_s1 = inlined_call_operand.hbm [shape: bf16[4096,2048], index: 1, kind: input, shape index: {}]   ;;  %s6774_s2 = inlined_call_operand.vmem [shape: f32[1,2048], index: 2, kind: input, shape index: {}]   ;;  %s6775_s3 = inlined_call_operand.vmem [shape: f32[16,2048], index: 3, kind: output, shape index: {}]  }
   0x1   :  { %10 = vsyncpa [#allocation3 + $0x1], 0  ;;  %s5910_s12 = smov 0   ;;  %s5912_s13 = smov 0  }
   0x2   :  { %s5914_s14 = smov 0   ;;  %s5916_s15 = smov 0  }
   0x3   :  { %s5918_s16 = smov 0   ;;  %s5920_s17 = smov 0  }
   0x4 LB: > { %s4351_s18 = sadd.s32 4294967295, %s5884_s17   ;;  %s25_s19 = sadd.s32 1, %s5880_s16  ;;  %s5884_s17 = sphi %s5920_s17, %s16_s17   ;;  %s5880_s16 = sphi %s5918_s16, %s6786_s16   ;;  %s5876_s15 = sphi %s5916_s15, %s6785_s15   ;;  %s5872_s14 = sphi %s5914_s14, %s6784_s14   ;;  %s5868_s13 = sphi %s5912_s13, %s6783_s13   ;;  %s5864_s12 = sphi %s5910_s12, %s6782_s12  }
   0x5   : > { %p26_p0 = scmp.ge.s32.totalorder %s25_s19, 8  ;;  %s61_s20 = sadd.s32 1, %s5872_s14 }
   0x6   : > { %p68_p1 = scmp.ne.s32.totalorder %s5872_s14, %s5868_s13  ;;  %p69_p2 = scmp.eq.s32.totalorder %s5884_s17, 0 }
   0x7   : > { %s6788_s19 = smov (%p26_p0, %s25_s19), 0  ;;  %p74_p4 = scmp.ne.s32.totalorder %s5868_s13, %s5864_s12 }
   0x8   : > { %p5946_p3 = por %p69_p2, %p68_p1  ;;  %s58_s22 = ssub.s32 %s5880_s16, %s6788_s19 }
   0x9   : > { %p75_p5 = scmp.eq.s32.totalorder %s4351_s18, 0  ;;  %p59_p6 = scmp.eq.s32.totalorder %s58_s22, 0 }
   0xa   : > { %p126_p7 = scmp.eq.s32.totalorder %s4351_s18, 7  ;;  %p4984_p10 = scmp.lt.s32.totalorder %s5884_s17, 8 }
   0xb   : > { %p5953_p8 = por %p75_p5, %p74_p4  ;;  %s162_s26 = sand.u32 1, %s5872_s14  }
   0xc   : > { %s5958_s24 = scalar_select %p59_p6, %s5872_s14, %s61_s20  }
   0xd   : > { %p5960_p9 = por %p126_p7, %p68_p1  ;;  %s4912_s27 = sshll.u32 %s5880_s16, 7 }
   0xe   : > { %s4356_s28 = sshll.u32 %s162_s26, 12  ;;  %s5970_s4 = scalar_lea.hbm %s6773_s1, %s4912_s27 }
   0xf   : > { %s6778_s25 = scalar_select %p5960_p9, 1, 0 }
  0x10   : > { %s166_s5 = scalar_lea.vmem [#allocation2], %s4356_s28  ;;  %p5974_p11 = pnand %p4984_p10, %p5946_p3 }
  0x11   : > { %s173_s6 = sshll.u32 %s166_s5, 4  ;;  %s5981_s8 = scalar_lea.sflag [#allocation3], %s162_s26  ;;  %s5978_s6 = int_to_ptr.vmem [resolvable:$true] %s173_s6 }
  0x12   : > { %s5804_s9 = scalar_lea.hbm %s5970_s4, 65536  ;;  %p5806_p0 = pneg %p5974_p11 }
  0x13   : > { %p5805_p13 = scmp.ne.s32.totalorder %s5970_s4, %s5804_s9  ;;  %s5809_s12 = scalar_lea.hbm %s6773_s1, 524288 }
  0x14   : > { %p5810_p3 = scmp.lt.u32.totalorder %s5970_s4, %s6773_s1  ;;  %p5811_p4 = scmp.lt.u32.totalorder %s5809_s12, %s5804_s9 }
  0x15   : > { %p5807_p1 = pnand %p5806_p0, %p5805_p13  ;;  %p5813_p6 = scmp.lt.u32.totalorder %s5804_s9, %s5970_s4 }
  0x16   : > { %p5812_p5 = por %p5811_p4, %p5810_p3 }
  0x17   : > { %p5808_p2 = pneg %p5807_p1 }
  0x18   : > { %p5814_p7 = por %p5813_p6, %p5812_p5 }
  0x1a   : > { %p5815_p10 = pnand %p5814_p7, %p5808_p2 }
  0x1c   : > { %5818 = shalt.err (!%p5815_p10)
}
  0x1d   : > { %s5819_s21 = scalar_lea.vmem %s5978_s6, 65536  ;;  %s5886_s22 = smov [#allocation2]  }
  0x1e   : > { %p5820_p13 = scmp.ne.s32.totalorder %s5978_s6, %s5819_s21  ;;  %s5824_s26 = sshll.u32 %s5886_s22, 4  ;;  %s5825_s26 = int_to_ptr.vmem [resolvable:$false] %s5824_s26 }
  0x1f   : > { %s5826_s27 = scalar_lea.vmem %s5825_s26, 131072  ;;  %p5827_p9 = scmp.lt.s32.totalorder %s5978_s6, %s5825_s26 }
  0x20   : > { %p5822_p1 = pnand %p5820_p13, %p5806_p0  ;;  %p5828_p3 = scmp.lt.s32.totalorder %s5826_s27, %s5819_s21 }
  0x22   : > { %p5823_p12 = pneg %p5822_p1  ;;  %p5829_p4 = por %p5828_p3, %p5827_p9 }
  0x24   : > { %p5830_p5 = pnand %p5829_p4, %p5823_p12 }
  0x26   : > { %5833 = shalt.err (!%p5830_p5)
}
  0x27   : > { %s5887_s28 = smov 1024   ;;  %s5888_s29 = smov 128  }
  0x28   : > { %s5889_s30 = smov 8   ;;  %p189_p0 = scmp.lt.s32.totalorder %s5884_s17, 9 }
  0x29   : > { %4983 = dma.hbm_to_vmem [thread:$0]  (!%p5974_p11), %s5970_s4, 65536, %s5978_s6, %s5981_s8, %s5887_s28, %s5888_s29, %s5889_s30  }
  0x2a   : > { %p6780_p2 = scmp.ge.s32.totalorder %s5884_s17, 1 }
  0x2c   : > { %p190_p6 = pnand %p6780_p2, %p189_p0 }
  0x2d   : > { %s6013_s5 = sand.u32 (!%p190_p6), 1, %s5868_s13  }
  0x2e   : > { %193 = sbr.rel (%p190_p6) target bundleno = 797 (0x31d), region = 32  ;;  %s4360_s9 = sshll.u32 (!%p190_p6), %s6013_s5, 12 }
  0x2f   : > { %s196_s10 = scalar_lea.sflag (!%p190_p6), [#allocation3], %s6013_s5  ;;  %s6017_s11 = scalar_lea.vmem (!%p190_p6), [#allocation2], %s4360_s9 }
  0x35   : > { %5859 = dma.done.wait (%p5953_p8), %s196_s10, 65536  }
  0x36   : > { %5861 = vsyncadd (%p5953_p8), %s196_s10, 4294901760  ;;  %v5036_v0 = vld [vmem:[%s6017_s11 + $0x4] ss:$8 sps:$4 sm:$0xff]   ;;  %v5040_v2 = vld [vmem:[%s6017_s11] ss:$8 sps:$4 sm:$0xff]   ;;  %s4362_s29 = sshll.u32 %s5876_s15, 1 }
  0x37   : > { %v5038_v1 = vld [vmem:[%s6017_s11 + $0x804] ss:$8 sps:$4 sm:$0xff]   ;;  %3522 = vmatprep.subr.bf16.mxu1 %v5036_v0  ;;  %v5041_v3 = vld [vmem:[%s6017_s11 + $0x800] ss:$8 sps:$4 sm:$0xff]   ;;  %v5042_v4 = vld [vmem:[%s6017_s11 + $0x14] ss:$8 sps:$4 sm:$0xff]  }
  0x38   : > { %3866 = vmatprep.subr.bf16.mxu0 %v5038_v1  ;;  %3523 = vmatpush1.bf16.msra.mxu1 %v5040_v2  ;;  %v5044_v5 = vld [vmem:[%s6017_s11 + $0x814] ss:$8 sps:$4 sm:$0xff]   ;;  %v5046_v6 = vld [vmem:[%s6017_s11 + $0x10] ss:$8 sps:$4 sm:$0xff]   ;;  %v5048_v8 = vld [vmem:[%s6017_s11 + $0x24] ss:$8 sps:$4 sm:$0xff]  }
  0x39   : > { %3867 = vmatpush1.bf16.msra.mxu0 %v5041_v3  ;;  %3524 = vmatprep.subr.bf16.mxu1 %v5042_v4  ;;  %v5047_v7 = vld [vmem:[%s6017_s11 + $0x810] ss:$8 sps:$4 sm:$0xff]   ;;  %v5050_v9 = vld [vmem:[%s6017_s11 + $0x824] ss:$8 sps:$4 sm:$0xff]   ;;  %v5052_v10 = vld [vmem:[%s6017_s11 + $0x20] ss:$8 sps:$4 sm:$0xff]  }
  0x3a   : > { %3868 = vmatprep.subr.bf16.mxu0 %v5044_v5  ;;  %v5053_v11 = vld [vmem:[%s6017_s11 + $0x820] ss:$8 sps:$4 sm:$0xff]   ;;  %v5054_v12 = vld [vmem:[%s6017_s11 + $0x34] ss:$8 sps:$4 sm:$0xff]   ;;  %v5058_v14 = vld [vmem:[%s6017_s11 + $0x30] ss:$8 sps:$4 sm:$0xff]  }
  0x3b   : > { %v5056_v13 = vld [vmem:[%s6017_s11 + $0x834] ss:$8 sps:$4 sm:$0xff]   ;;  %v5059_v15 = vld [vmem:[%s6017_s11 + $0x830] ss:$8 sps:$4 sm:$0xff]   ;;  %v5060_v16 = vld [vmem:[%s6017_s11 + $0x44] ss:$8 sps:$4 sm:$0xff]  }
  0x3c   : > { %3525 = vmatpush1.bf16.msra.mxu1 %v5046_v6  ;;  %v5062_v17 = vld [vmem:[%s6017_s11 + $0x844] ss:$8 sps:$4 sm:$0xff]   ;;  %v5064_v18 = vld [vmem:[%s6017_s11 + $0x40] ss:$8 sps:$4 sm:$0xff]   ;;  %v5066_v20 = vld [vmem:[%s6017_s11 + $0x54] ss:$8 sps:$4 sm:$0xff]  }
  0x3d   : > { %3869 = vmatpush1.bf16.msra.mxu0 %v5047_v7  ;;  %3526 = vmatprep.subr.bf16.mxu1 %v5048_v8  ;;  %v5065_v19 = vld [vmem:[%s6017_s11 + $0x840] ss:$8 sps:$4 sm:$0xff]   ;;  %v5068_v21 = vld [vmem:[%s6017_s11 + $0x854] ss:$8 sps:$4 sm:$0xff]   ;;  %v5070_v22 = vld [vmem:[%s6017_s11 + $0x50] ss:$8 sps:$4 sm:$0xff]  }
  0x3e   : > { %3870 = vmatprep.subr.bf16.mxu0 %v5050_v9  ;;  %v5071_v23 = vld [vmem:[%s6017_s11 + $0x850] ss:$8 sps:$4 sm:$0xff]   ;;  %v5072_v24 = vld [vmem:[%s6017_s11 + $0x64] ss:$8 sps:$4 sm:$0xff]   ;;  %v5076_v26 = vld [vmem:[%s6017_s11 + $0x60] ss:$8 sps:$4 sm:$0xff]  }
  0x3f   : > { %v5074_v25 = vld [vmem:[%s6017_s11 + $0x864] ss:$8 sps:$4 sm:$0xff]   ;;  %v5077_v27 = vld [vmem:[%s6017_s11 + $0x860] ss:$8 sps:$4 sm:$0xff]   ;;  %v5078_v28 = vld [vmem:[%s6017_s11 + $0x74] ss:$8 sps:$4 sm:$0xff]  }
  0x40   : > { %3527 = vmatpush1.bf16.msra.mxu1 %v5052_v10  ;;  %v5080_v29 = vld [vmem:[%s6017_s11 + $0x874] ss:$8 sps:$4 sm:$0xff]   ;;  %v5082_v30 = vld [vmem:[%s6017_s11 + $0x70] ss:$8 sps:$4 sm:$0xff]   ;;  %v5084_v32 = vld [vmem:[%s6017_s11 + $0x84] ss:$8 sps:$4 sm:$0xff]  }
  0x41   : > { %3871 = vmatpush1.bf16.msra.mxu0 %v5053_v11  ;;  %3528 = vmatprep.subr.bf16.mxu1 %v5054_v12  ;;  %v5083_v31 = vld [vmem:[%s6017_s11 + $0x870] ss:$8 sps:$4 sm:$0xff]   ;;  %v5086_v33 = vld [vmem:[%s6017_s11 + $0x884] ss:$8 sps:$4 sm:$0xff]   ;;  %v5088_v34 = vld [vmem:[%s6017_s11 + $0x80] ss:$8 sps:$4 sm:$0xff]  }
  0x42   : > { %3872 = vmatprep.subr.bf16.mxu0 %v5056_v13  ;;  %v5089_v35 = vld [vmem:[%s6017_s11 + $0x880] ss:$8 sps:$4 sm:$0xff]   ;;  %v5090_v36 = vld [vmem:[%s6017_s11 + $0x94] ss:$8 sps:$4 sm:$0xff]   ;;  %v5094_v38 = vld [vmem:[%s6017_s11 + $0x90] ss:$8 sps:$4 sm:$0xff]  }
  0x43   : > { %v5092_v37 = vld [vmem:[%s6017_s11 + $0x894] ss:$8 sps:$4 sm:$0xff]   ;;  %v5095_v39 = vld [vmem:[%s6017_s11 + $0x890] ss:$8 sps:$4 sm:$0xff]   ;;  %v5096_v40 = vld [vmem:[%s6017_s11 + $0xa4] ss:$8 sps:$4 sm:$0xff]  }
  0x44   : > { %3529 = vmatpush1.bf16.msra.mxu1 %v5058_v14  ;;  %v5098_v41 = vld [vmem:[%s6017_s11 + $0x8a4] ss:$8 sps:$4 sm:$0xff]   ;;  %v5100_v42 = vld [vmem:[%s6017_s11 + $0xa0] ss:$8 sps:$4 sm:$0xff]   ;;  %v5102_v44 = vld [vmem:[%s6017_s11 + $0xb4] ss:$8 sps:$4 sm:$0xff]  }
  0x45   : > { %3873 = vmatpush1.bf16.msra.mxu0 %v5059_v15  ;;  %3530 = vmatprep.subr.bf16.mxu1 %v5060_v16  ;;  %v5101_v43 = vld [vmem:[%s6017_s11 + $0x8a0] ss:$8 sps:$4 sm:$0xff]   ;;  %v5104_v45 = vld [vmem:[%s6017_s11 + $0x8b4] ss:$8 sps:$4 sm:$0xff]   ;;  %v5106_v46 = vld [vmem:[%s6017_s11 + $0xb0] ss:$8 sps:$4 sm:$0xff]  }
  0x46   : > { %3874 = vmatprep.subr.bf16.mxu0 %v5062_v17  ;;  %v5107_v47 = vld [vmem:[%s6017_s11 + $0x8b0] ss:$8 sps:$4 sm:$0xff]   ;;  %v246_v48 = vld [vmem:[%s6772_s0] sm:$0xff]  ;;  %v5114_v58 = vld [vmem:[%s6017_s11 + $0xd4] ss:$8 sps:$4 sm:$0xff]   ;;  %p240_p8 = scmp.lt.s32.totalorder %s4362_s29, 15 }
  0x47   : > { %v262_v49 = vld [vmem:[%s6772_s0 + $0x80] sm:$0xff]  ;;  %v5116_v59 = vld [vmem:[%s6017_s11 + $0x8d4] ss:$8 sps:$4 sm:$0xff]   ;;  %v5118_v60 = vld [vmem:[%s6017_s11 + $0xd0] ss:$8 sps:$4 sm:$0xff]   ;;  %s4361_s10 = sshll.u32 %s6013_s5, 5 }
  0x48   : > { %3531 = vmatpush1.bf16.msra.mxu1 %v5064_v18  ;;  %v5108_v50 = vld [vmem:[%s6017_s11 + $0xc4] ss:$8 sps:$4 sm:$0xff]   ;;  %v4364_v52 = vcombine.high %v246_v48, %v262_v49  ;;  %v5112_v56 = vld [vmem:[%s6017_s11 + $0xc0] ss:$8 sps:$4 sm:$0xff]   ;;  %v5119_v61 = vld [vmem:[%s6017_s11 + $0x8d0] ss:$8 sps:$4 sm:$0xff]   ;;  %v4363_v8 = vcombine.low %v246_v48, %v262_v49 }
  0x49   : > { %3875 = vmatpush1.bf16.msra.mxu0 %v5065_v19  ;;  %3532 = vmatprep.subr.bf16.mxu1 %v5066_v20  ;;  %v5110_v51 = vld [vmem:[%s6017_s11 + $0x8c4] ss:$8 sps:$4 sm:$0xff]   ;;  %v5113_v57 = vld [vmem:[%s6017_s11 + $0x8c0] ss:$8 sps:$4 sm:$0xff]   ;;  %v5126_v2 = vld [vmem:[%s6017_s11 + $0xf4] ss:$8 sps:$4 sm:$0xff]  }
  0x4a   : > { %3876 = vmatprep.subr.bf16.mxu0 %v5068_v21  ;;  %v254_v53 = vld [vmem:[%s6772_s0 + $0x40] sm:$0xff]  ;;  %3554 = vmatprep.mubr.bf16.mxu1 %v4364_v52  ;;  %v5128_v3 = vld [vmem:[%s6017_s11 + $0x8f4] ss:$8 sps:$4 sm:$0xff]   ;;  %v5130_v4 = vld [vmem:[%s6017_s11 + $0xf0] ss:$8 sps:$4 sm:$0xff]   ;;  %s6790_s29 = smov (!%p240_p8, %s4362_s29), 15 }
  0x4b   : > { %v270_v54 = vld [vmem:[%s6772_s0 + $0xc0] sm:$0xff]  ;;  %v5131_v5 = vld [vmem:[%s6017_s11 + $0x8f0] ss:$8 sps:$4 sm:$0xff]   ;;  %v5140_v12 = vld [vmem:[%s6017_s11 + $0x114] ss:$8 sps:$4 sm:$0xff]   ;;  %s242_s9 = scalar_lea.vmem %s6774_s2, %s6790_s29  ;;  %s230_s23 = scalar_lea.vmem [#allocation4], %s4361_s10 }
  0x4c   : > { %3533 = vmatpush1.bf16.msra.mxu1 %v5070_v22  ;;  %v4380_v55 = vcombine.high %v254_v53, %v270_v54  ;;  %v5120_v62 = vld [vmem:[%s6017_s11 + $0xe4] ss:$8 sps:$4 sm:$0xff]   ;;  %v5124_v0 = vld [vmem:[%s6017_s11 + $0xe0] ss:$8 sps:$4 sm:$0xff]   ;;  %v4379_v10 = vcombine.low %v254_v53, %v270_v54  ;;  %v5143_v13 = vld [vmem:[%s6017_s11 + $0x914] ss:$8 sps:$4 sm:$0xff]  }
  0x4d   : > { %3877 = vmatpush1.bf16.msra.mxu0 %v5071_v23  ;;  %3534 = vmatprep.subr.bf16.mxu1 %v5072_v24  ;;  %v5122_v63 = vld [vmem:[%s6017_s11 + $0x8e4] ss:$8 sps:$4 sm:$0xff]   ;;  %v5125_v1 = vld [vmem:[%s6017_s11 + $0x8e0] ss:$8 sps:$4 sm:$0xff]   ;;  %v5138_v14 = vld [vmem:[%s6017_s11 + $0x110] ss:$8 sps:$4 sm:$0xff]  }
  0x4e   : > { %3878 = vmatprep.subr.bf16.mxu0 %v5074_v25  ;;  %3898 = vmatprep.mubr.bf16.mxu0 %v4380_v55  ;;  %v5134_v6 = vld [vmem:[%s6017_s11 + $0x104] ss:$8 sps:$4 sm:$0xff]   ;;  %v5132_v9 = vld [vmem:[%s6017_s11 + $0x100] ss:$8 sps:$4 sm:$0xff]   ;;  %v5141_v15 = vld [vmem:[%s6017_s11 + $0x910] ss:$8 sps:$4 sm:$0xff]  }
  0x4f   : > { %v5137_v7 = vld [vmem:[%s6017_s11 + $0x904] ss:$8 sps:$4 sm:$0xff]   ;;  %v5135_v11 = vld [vmem:[%s6017_s11 + $0x900] ss:$8 sps:$4 sm:$0xff]   ;;  %v5152_v20 = vld [vmem:[%s6017_s11 + $0x134] ss:$8 sps:$4 sm:$0xff]  }
  0x50   : > { %3535 = vmatpush1.bf16.msra.mxu1 %v5076_v26  ;;  %v5146_v16 = vld [vmem:[%s6017_s11 + $0x124] ss:$8 sps:$4 sm:$0xff]   ;;  %v5144_v18 = vld [vmem:[%s6017_s11 + $0x120] ss:$8 sps:$4 sm:$0xff]   ;;  %v5155_v21 = vld [vmem:[%s6017_s11 + $0x934] ss:$8 sps:$4 sm:$0xff]  }
  0x51   : > { %3879 = vmatpush1.bf16.msra.mxu0 %v5077_v27  ;;  %3536 = vmatprep.subr.bf16.mxu1 %v5078_v28  ;;  %v5149_v17 = vld [vmem:[%s6017_s11 + $0x924] ss:$8 sps:$4 sm:$0xff]   ;;  %v5147_v19 = vld [vmem:[%s6017_s11 + $0x920] ss:$8 sps:$4 sm:$0xff]   ;;  %v5150_v22 = vld [vmem:[%s6017_s11 + $0x130] ss:$8 sps:$4 sm:$0xff]  }
  0x52   : > { %3880 = vmatprep.subr.bf16.mxu0 %v5080_v29  ;;  %v5153_v23 = vld [vmem:[%s6017_s11 + $0x930] ss:$8 sps:$4 sm:$0xff]   ;;  %v5158_v24 = vld [vmem:[%s6017_s11 + $0x144] ss:$8 sps:$4 sm:$0xff]   ;;  %v5156_v26 = vld [vmem:[%s6017_s11 + $0x140] ss:$8 sps:$4 sm:$0xff]  }
  0x53   : > { %v5161_v25 = vld [vmem:[%s6017_s11 + $0x944] ss:$8 sps:$4 sm:$0xff]   ;;  %v5159_v27 = vld [vmem:[%s6017_s11 + $0x940] ss:$8 sps:$4 sm:$0xff]   ;;  %v5164_v28 = vld [vmem:[%s6017_s11 + $0x154] ss:$8 sps:$4 sm:$0xff]  }
  0x54   : > { %3537 = vmatpush1.bf16.msra.mxu1 %v5082_v30  ;;  %v5167_v29 = vld [vmem:[%s6017_s11 + $0x954] ss:$8 sps:$4 sm:$0xff]   ;;  %v5162_v30 = vld [vmem:[%s6017_s11 + $0x150] ss:$8 sps:$4 sm:$0xff]   ;;  %v5180_v48 = vld [vmem:[%s6017_s11 + $0x180] ss:$8 sps:$4 sm:$0xff]  }
  0x55   : > { %3881 = vmatpush1.bf16.msra.mxu0 %v5083_v31  ;;  %3538 = vmatprep.subr.bf16.mxu1 %v5084_v32  ;;  %v5165_v31 = vld [vmem:[%s6017_s11 + $0x950] ss:$8 sps:$4 sm:$0xff]   ;;  %v5170_v32 = vld [vmem:[%s6017_s11 + $0x164] ss:$8 sps:$4 sm:$0xff]   ;;  %v5183_v49 = vld [vmem:[%s6017_s11 + $0x980] ss:$8 sps:$4 sm:$0xff]  }
  0x56   : > { %3882 = vmatprep.subr.bf16.mxu0 %v5086_v33  ;;  %v5173_v33 = vld [vmem:[%s6017_s11 + $0x964] ss:$8 sps:$4 sm:$0xff]   ;;  %v5186_v52 = vld [vmem:[%s6017_s11 + $0x190] ss:$8 sps:$4 sm:$0xff]   ;;  %p6781_p9 = scmp.ne.s32.totalorder %s6778_s25, 0 }
  0x57   : > { %v5189_v53 = vld [vmem:[%s6017_s11 + $0x990] ss:$8 sps:$4 sm:$0xff]   ;;  %v5194_v54 = vld [vmem:[%s6017_s11 + $0x1a4] ss:$8 sps:$4 sm:$0xff]   ;;  %s4913_s5 = sshll.u32 (%p6781_p9), %s5876_s15, 4 }
  0x58   : > { %3539 = vmatpush1.bf16.msra.mxu1 %v5088_v34  ;;  %v5168_v34 = vld [vmem:[%s6017_s11 + $0x160] ss:$8 sps:$4 sm:$0xff]   ;;  %v5197_v55 = vld [vmem:[%s6017_s11 + $0x9a4] ss:$8 sps:$4 sm:$0xff]   ;;  %s4230_s7 = scalar_lea.vmem (%p6781_p9), %s6775_s3, %s4913_s5 }
  0x59   : > { %3883 = vmatpush1.bf16.msra.mxu0 %v5089_v35  ;;  %3540 = vmatprep.subr.bf16.mxu1 %v5090_v36  ;;  %v5171_v35 = vld [vmem:[%s6017_s11 + $0x960] ss:$8 sps:$4 sm:$0xff]  }
  0x5a   : > { %3884 = vmatprep.subr.bf16.mxu0 %v5092_v37  ;;  %v6130_v36 = vld [vmem:[%s6772_s0 + $0x8] sm:$0xff] }
  0x5b   : > { %v6135_v37 = vld [vmem:[%s6772_s0 + $0x88] sm:$0xff] }
  0x5c   : > { %3541 = vmatpush1.bf16.msra.mxu1 %v5094_v38  ;;  %v5176_v38 = vld [vmem:[%s6017_s11 + $0x174] ss:$8 sps:$4 sm:$0xff]  }
  0x5d   : > { %3885 = vmatpush1.bf16.msra.mxu0 %v5095_v39  ;;  %3542 = vmatprep.subr.bf16.mxu1 %v5096_v40  ;;  %v5179_v39 = vld [vmem:[%s6017_s11 + $0x974] ss:$8 sps:$4 sm:$0xff]   ;;  %v4366_v40 = vcombine.high %v6130_v36, %v6135_v37 }
  0x5e   : > { %3886 = vmatprep.subr.bf16.mxu0 %v5098_v41  ;;  %v6144_v41 = vld [vmem:[%s6772_s0 + $0x48] sm:$0xff] }
  0x60   : > { %3543 = vmatpush1.bf16.msra.mxu1 %v5100_v42  ;;  %v6149_v42 = vld [vmem:[%s6772_s0 + $0xc8] sm:$0xff] }
  0x61   : > { %3887 = vmatpush1.bf16.msra.mxu0 %v5101_v43  ;;  %3544 = vmatprep.subr.bf16.mxu1 %v5102_v44  ;;  %v4382_v43 = vcombine.high %v6144_v41, %v6149_v42  ;;  %v5174_v44 = vld [vmem:[%s6017_s11 + $0x170] ss:$8 sps:$4 sm:$0xff]  }
  0x62   : > { %3888 = vmatprep.subr.bf16.mxu0 %v5104_v45  ;;  %v5177_v45 = vld [vmem:[%s6017_s11 + $0x970] ss:$8 sps:$4 sm:$0xff]  }
  0x64   : > { %3545 = vmatpush1.bf16.msra.mxu1 %v5106_v46  ;;  %v5182_v46 = vld [vmem:[%s6017_s11 + $0x184] ss:$8 sps:$4 sm:$0xff]  }
  0x65   : > { %3889 = vmatpush1.bf16.msra.mxu0 %v5107_v47  ;;  %3546 = vmatprep.subr.bf16.mxu1 %v5108_v50  ;;  %v5185_v47 = vld [vmem:[%s6017_s11 + $0x984] ss:$8 sps:$4 sm:$0xff]   ;;  %v5188_v50 = vld [vmem:[%s6017_s11 + $0x194] ss:$8 sps:$4 sm:$0xff]  }
  0x66   : > { %3890 = vmatprep.subr.bf16.mxu0 %v5110_v51  ;;  %v5191_v51 = vld [vmem:[%s6017_s11 + $0x994] ss:$8 sps:$4 sm:$0xff]  }
  0x68   : > { %3547 = vmatpush1.bf16.msra.mxu1 %v5112_v56  ;;  %v5192_v56 = vld [vmem:[%s6017_s11 + $0x1a0] ss:$8 sps:$4 sm:$0xff]  }
  0x69   : > { %3891 = vmatpush1.bf16.msra.mxu0 %v5113_v57  ;;  %3548 = vmatprep.subr.bf16.mxu1 %v5114_v58  ;;  %v5195_v57 = vld [vmem:[%s6017_s11 + $0x9a0] ss:$8 sps:$4 sm:$0xff]   ;;  %v5200_v58 = vld [vmem:[%s6017_s11 + $0x1b4] ss:$8 sps:$4 sm:$0xff]  }
  0x6a   : > { %3892 = vmatprep.subr.bf16.mxu0 %v5116_v59  ;;  %v5203_v59 = vld [vmem:[%s6017_s11 + $0x9b4] ss:$8 sps:$4 sm:$0xff]  }
  0x6c   : > { %3549 = vmatpush1.bf16.msra.mxu1 %v5118_v60  ;;  %v5198_v60 = vld [vmem:[%s6017_s11 + $0x1b0] ss:$8 sps:$4 sm:$0xff]  }
  0x6d   : > { %3893 = vmatpush1.bf16.msra.mxu0 %v5119_v61  ;;  %3550 = vmatprep.subr.bf16.mxu1 %v5120_v62  ;;  %v5201_v61 = vld [vmem:[%s6017_s11 + $0x9b0] ss:$8 sps:$4 sm:$0xff]   ;;  %v5206_v62 = vld [vmem:[%s6017_s11 + $0x1c4] ss:$8 sps:$4 sm:$0xff]  }
  0x6e   : > { %3894 = vmatprep.subr.bf16.mxu0 %v5122_v63  ;;  %v5209_v63 = vld [vmem:[%s6017_s11 + $0x9c4] ss:$8 sps:$4 sm:$0xff]  }
  0x70   : > { %3551 = vmatpush1.bf16.msra.mxu1 %v5124_v0  ;;  %v5204_v0 = vld [vmem:[%s6017_s11 + $0x1c0] ss:$8 sps:$4 sm:$0xff]  }
  0x71   : > { %3895 = vmatpush1.bf16.msra.mxu0 %v5125_v1  ;;  %3552 = vmatprep.subr.bf16.mxu1 %v5126_v2  ;;  %v5207_v1 = vld [vmem:[%s6017_s11 + $0x9c0] ss:$8 sps:$4 sm:$0xff]   ;;  %v5212_v2 = vld [vmem:[%s6017_s11 + $0x1d4] ss:$8 sps:$4 sm:$0xff]  }
  0x72   : > { %3896 = vmatprep.subr.bf16.mxu0 %v5128_v3  ;;  %v5215_v3 = vld [vmem:[%s6017_s11 + $0x9d4] ss:$8 sps:$4 sm:$0xff]  }
  0x74   : > { %3553 = vmatpush1.bf16.msra.mxu1 %v5130_v4  ;;  %v5210_v4 = vld [vmem:[%s6017_s11 + $0x1d0] ss:$8 sps:$4 sm:$0xff]  }
  0x75   : > { %3897 = vmatpush1.bf16.msra.mxu0 %v5131_v5  ;;  %3565 = vmatprep.subr.bf16.mxu1 %v5134_v6  ;;  %v5213_v5 = vld [vmem:[%s6017_s11 + $0x9d0] ss:$8 sps:$4 sm:$0xff]   ;;  %v5218_v6 = vld [vmem:[%s6017_s11 + $0x1e4] ss:$8 sps:$4 sm:$0xff]  }
  0x76   : > { %3909 = vmatprep.subr.bf16.mxu0 %v5137_v7  ;;  %v5221_v7 = vld [vmem:[%s6017_s11 + $0x9e4] ss:$8 sps:$4 sm:$0xff]  }
  0x77   : > { %3555 = vmatmul.mubr.bf16.vlgmr.msra.gmra.mrb[0].mxu1 %v4363_v8  ;;  %v5216_v8 = vld [vmem:[%s6017_s11 + $0x1e0] ss:$8 sps:$4 sm:$0xff]  }
  0x78   : > { %3899 = vmatmul.mubr.bf16.vlgmr.msra.gmra.mrb[0].mxu0 %v4379_v10  ;;  %3566 = vmatpush1.bf16.msra.mxu1 %v5132_v9  ;;  %v5219_v9 = vld [vmem:[%s6017_s11 + $0x9e0] ss:$8 sps:$4 sm:$0xff]   ;;  %v5224_v10 = vld [vmem:[%s6017_s11 + $0x1f4] ss:$8 sps:$4 sm:$0xff]  }
  0x79   : > { %3910 = vmatpush1.bf16.msra.mxu0 %v5135_v11  ;;  %3567 = vmatprep.subr.bf16.mxu1 %v5140_v12  ;;  %v5227_v11 = vld [vmem:[%s6017_s11 + $0x9f4] ss:$8 sps:$4 sm:$0xff]   ;;  %v5222_v12 = vld [vmem:[%s6017_s11 + $0x1f0] ss:$8 sps:$4 sm:$0xff]  }
  0x7a   : > { %3911 = vmatprep.subr.bf16.mxu0 %v5143_v13  ;;  %3597 = vmatprep.mubr.bf16.mxu1 %v4366_v40  ;;  %v5225_v13 = vld [vmem:[%s6017_s11 + $0x9f0] ss:$8 sps:$4 sm:$0xff]   ;;  %v5252_v40 = vld [vmem:[%s6017_s11 + $0x240] ss:$8 sps:$4 sm:$0xff]  }
  0x7b   : > { %3941 = vmatprep.mubr.bf16.mxu0 %v4382_v43  ;;  %v5263_v43 = vld [vmem:[%s6017_s11 + $0xa54] ss:$8 sps:$4 sm:$0xff]  }
  0x7c   : > { %3568 = vmatpush1.bf16.msra.mxu1 %v5138_v14  ;;  %v5230_v14 = vld [vmem:[%s6017_s11 + $0x204] ss:$8 sps:$4 sm:$0xff]  }
  0x7d   : > { %3912 = vmatpush1.bf16.msra.mxu0 %v5141_v15  ;;  %3569 = vmatprep.subr.bf16.mxu1 %v5146_v16  ;;  %v5233_v15 = vld [vmem:[%s6017_s11 + $0xa04] ss:$8 sps:$4 sm:$0xff]   ;;  %v4365_v16 = vcombine.low %v6130_v36, %v6135_v37  ;;  %v5246_v36 = vld [vmem:[%s6017_s11 + $0x230] ss:$8 sps:$4 sm:$0xff]  }
  0x7e   : > { %3913 = vmatprep.subr.bf16.mxu0 %v5149_v17  ;;  %v5228_v17 = vld [vmem:[%s6017_s11 + $0x200] ss:$8 sps:$4 sm:$0xff]   ;;  %v5249_v37 = vld [vmem:[%s6017_s11 + $0xa30] ss:$8 sps:$4 sm:$0xff]  }
  0x80   : > { %3570 = vmatpush1.bf16.msra.mxu1 %v5144_v18  ;;  %v4381_v18 = vcombine.low %v6144_v41, %v6149_v42  ;;  %v5255_v41 = vld [vmem:[%s6017_s11 + $0xa40] ss:$8 sps:$4 sm:$0xff]   ;;  %v5260_v42 = vld [vmem:[%s6017_s11 + $0x254] ss:$8 sps:$4 sm:$0xff]  }
  0x81   : > { %3914 = vmatpush1.bf16.msra.mxu0 %v5147_v19  ;;  %3571 = vmatprep.subr.bf16.mxu1 %v5152_v20  ;;  %v5231_v19 = vld [vmem:[%s6017_s11 + $0xa00] ss:$8 sps:$4 sm:$0xff]   ;;  %v5236_v20 = vld [vmem:[%s6017_s11 + $0x214] ss:$8 sps:$4 sm:$0xff]  }
  0x82   : > { %3915 = vmatprep.subr.bf16.mxu0 %v5155_v21  ;;  %v5239_v21 = vld [vmem:[%s6017_s11 + $0xa14] ss:$8 sps:$4 sm:$0xff]  }
  0x84   : > { %3572 = vmatpush1.bf16.msra.mxu1 %v5150_v22  ;;  %v5234_v22 = vld [vmem:[%s6017_s11 + $0x210] ss:$8 sps:$4 sm:$0xff]  }
  0x85   : > { %3916 = vmatpush1.bf16.msra.mxu0 %v5153_v23  ;;  %3573 = vmatprep.subr.bf16.mxu1 %v5158_v24  ;;  %v5237_v23 = vld [vmem:[%s6017_s11 + $0xa10] ss:$8 sps:$4 sm:$0xff]  }
  0x86   : > { %3917 = vmatprep.subr.bf16.mxu0 %v5161_v25  ;;  %v6202_v24 = vld [vmem:[%s6772_s0 + $0x10] sm:$0xff] }
  0x87   : > { %v6207_v25 = vld [vmem:[%s6772_s0 + $0x90] sm:$0xff] }
  0x88   : > { %3574 = vmatpush1.bf16.msra.mxu1 %v5156_v26  ;;  %v5242_v26 = vld [vmem:[%s6017_s11 + $0x224] ss:$8 sps:$4 sm:$0xff]  }
  0x89   : > { %3918 = vmatpush1.bf16.msra.mxu0 %v5159_v27  ;;  %3575 = vmatprep.subr.bf16.mxu1 %v5164_v28  ;;  %v5245_v27 = vld [vmem:[%s6017_s11 + $0xa24] ss:$8 sps:$4 sm:$0xff]   ;;  %v4368_v28 = vcombine.high %v6202_v24, %v6207_v25 }
  0x8a   : > { %3919 = vmatprep.subr.bf16.mxu0 %v5167_v29  ;;  %v6216_v29 = vld [vmem:[%s6772_s0 + $0x50] sm:$0xff] }
  0x8c   : > { %3576 = vmatpush1.bf16.msra.mxu1 %v5162_v30  ;;  %v6221_v30 = vld [vmem:[%s6772_s0 + $0xd0] sm:$0xff] }
  0x8d   : > { %3920 = vmatpush1.bf16.msra.mxu0 %v5165_v31  ;;  %3577 = vmatprep.subr.bf16.mxu1 %v5170_v32  ;;  %v4384_v31 = vcombine.high %v6216_v29, %v6221_v30  ;;  %v5240_v32 = vld [vmem:[%s6017_s11 + $0x220] ss:$8 sps:$4 sm:$0xff]  }
  0x8e   : > { %3921 = vmatprep.subr.bf16.mxu0 %v5173_v33  ;;  %v5243_v33 = vld [vmem:[%s6017_s11 + $0xa20] ss:$8 sps:$4 sm:$0xff]  }
  0x90   : > { %3578 = vmatpush1.bf16.msra.mxu1 %v5168_v34  ;;  %v5248_v34 = vld [vmem:[%s6017_s11 + $0x234] ss:$8 sps:$4 sm:$0xff]  }
  0x91   : > { %3922 = vmatpush1.bf16.msra.mxu0 %v5171_v35  ;;  %3579 = vmatprep.subr.bf16.mxu1 %v5176_v38  ;;  %v5251_v35 = vld [vmem:[%s6017_s11 + $0xa34] ss:$8 sps:$4 sm:$0xff]   ;;  %v5254_v38 = vld [vmem:[%s6017_s11 + $0x244] ss:$8 sps:$4 sm:$0xff]  }
  0x92   : > { %3923 = vmatprep.subr.bf16.mxu0 %v5179_v39  ;;  %v5257_v39 = vld [vmem:[%s6017_s11 + $0xa44] ss:$8 sps:$4 sm:$0xff]  }
  0x94   : > { %3580 = vmatpush1.bf16.msra.mxu1 %v5174_v44  ;;  %v5258_v44 = vld [vmem:[%s6017_s11 + $0x250] ss:$8 sps:$4 sm:$0xff]  }
  0x95   : > { %3924 = vmatpush1.bf16.msra.mxu0 %v5177_v45  ;;  %3581 = vmatprep.subr.bf16.mxu1 %v5182_v46  ;;  %v5261_v45 = vld [vmem:[%s6017_s11 + $0xa50] ss:$8 sps:$4 sm:$0xff]   ;;  %v5266_v46 = vld [vmem:[%s6017_s11 + $0x264] ss:$8 sps:$4 sm:$0xff]  }
  0x96   : > { %3925 = vmatprep.subr.bf16.mxu0 %v5185_v47  ;;  %v5269_v47 = vld [vmem:[%s6017_s11 + $0xa64] ss:$8 sps:$4 sm:$0xff]  }
  0x98   : > { %3582 = vmatpush1.bf16.msra.mxu1 %v5180_v48  ;;  %v5264_v48 = vld [vmem:[%s6017_s11 + $0x260] ss:$8 sps:$4 sm:$0xff]  }
  0x99   : > { %3926 = vmatpush1.bf16.msra.mxu0 %v5183_v49  ;;  %3583 = vmatprep.subr.bf16.mxu1 %v5188_v50  ;;  %v5267_v49 = vld [vmem:[%s6017_s11 + $0xa60] ss:$8 sps:$4 sm:$0xff]   ;;  %v5272_v50 = vld [vmem:[%s6017_s11 + $0x274] ss:$8 sps:$4 sm:$0xff]  }
  0x9a   : > { %3927 = vmatprep.subr.bf16.mxu0 %v5191_v51  ;;  %v5275_v51 = vld [vmem:[%s6017_s11 + $0xa74] ss:$8 sps:$4 sm:$0xff]  }
  0x9c   : > { %3584 = vmatpush1.bf16.msra.mxu1 %v5186_v52  ;;  %v5270_v52 = vld [vmem:[%s6017_s11 + $0x270] ss:$8 sps:$4 sm:$0xff]  }
  0x9d   : > { %3928 = vmatpush1.bf16.msra.mxu0 %v5189_v53  ;;  %3585 = vmatprep.subr.bf16.mxu1 %v5194_v54  ;;  %v5273_v53 = vld [vmem:[%s6017_s11 + $0xa70] ss:$8 sps:$4 sm:$0xff]   ;;  %v5278_v54 = vld [vmem:[%s6017_s11 + $0x284] ss:$8 sps:$4 sm:$0xff]  }
  0x9e   : > { %3929 = vmatprep.subr.bf16.mxu0 %v5197_v55  ;;  %v5281_v55 = vld [vmem:[%s6017_s11 + $0xa84] ss:$8 sps:$4 sm:$0xff]  }
  0xa0   : > { %3586 = vmatpush1.bf16.msra.mxu1 %v5192_v56  ;;  %v5276_v56 = vld [vmem:[%s6017_s11 + $0x280] ss:$8 sps:$4 sm:$0xff]  }
  0xa1   : > { %3930 = vmatpush1.bf16.msra.mxu0 %v5195_v57  ;;  %3587 = vmatprep.subr.bf16.mxu1 %v5200_v58  ;;  %v5279_v57 = vld [vmem:[%s6017_s11 + $0xa80] ss:$8 sps:$4 sm:$0xff]   ;;  %v5284_v58 = vld [vmem:[%s6017_s11 + $0x294] ss:$8 sps:$4 sm:$0xff]  }
  0xa2   : > { %3931 = vmatprep.subr.bf16.mxu0 %v5203_v59  ;;  %v5287_v59 = vld [vmem:[%s6017_s11 + $0xa94] ss:$8 sps:$4 sm:$0xff]  }
  0xa4   : > { %3588 = vmatpush1.bf16.msra.mxu1 %v5198_v60  ;;  %v5282_v60 = vld [vmem:[%s6017_s11 + $0x290] ss:$8 sps:$4 sm:$0xff]  }
  0xa5   : > { %3932 = vmatpush1.bf16.msra.mxu0 %v5201_v61  ;;  %3589 = vmatprep.subr.bf16.mxu1 %v5206_v62  ;;  %v5285_v61 = vld [vmem:[%s6017_s11 + $0xa90] ss:$8 sps:$4 sm:$0xff]   ;;  %v5290_v62 = vld [vmem:[%s6017_s11 + $0x2a4] ss:$8 sps:$4 sm:$0xff]  }
  0xa6   : > { %3933 = vmatprep.subr.bf16.mxu0 %v5209_v63  ;;  %v5293_v63 = vld [vmem:[%s6017_s11 + $0xaa4] ss:$8 sps:$4 sm:$0xff]  }
  0xa8   : > { %3590 = vmatpush1.bf16.msra.mxu1 %v5204_v0  ;;  %v5288_v0 = vld [vmem:[%s6017_s11 + $0x2a0] ss:$8 sps:$4 sm:$0xff]  }
  0xa9   : > { %3934 = vmatpush1.bf16.msra.mxu0 %v5207_v1  ;;  %3591 = vmatprep.subr.bf16.mxu1 %v5212_v2  ;;  %v5291_v1 = vld [vmem:[%s6017_s11 + $0xaa0] ss:$8 sps:$4 sm:$0xff]   ;;  %v5296_v2 = vld [vmem:[%s6017_s11 + $0x2b4] ss:$8 sps:$4 sm:$0xff]  }
  0xaa   : > { %3935 = vmatprep.subr.bf16.mxu0 %v5215_v3  ;;  %v5299_v3 = vld [vmem:[%s6017_s11 + $0xab4] ss:$8 sps:$4 sm:$0xff]  }
  0xac   : > { %3592 = vmatpush1.bf16.msra.mxu1 %v5210_v4  ;;  %v5294_v4 = vld [vmem:[%s6017_s11 + $0x2b0] ss:$8 sps:$4 sm:$0xff]  }
  0xad   : > { %3936 = vmatpush1.bf16.msra.mxu0 %v5213_v5  ;;  %3593 = vmatprep.subr.bf16.mxu1 %v5218_v6  ;;  %v5297_v5 = vld [vmem:[%s6017_s11 + $0xab0] ss:$8 sps:$4 sm:$0xff]   ;;  %v5302_v6 = vld [vmem:[%s6017_s11 + $0x2c4] ss:$8 sps:$4 sm:$0xff]  }
  0xae   : > { %3937 = vmatprep.subr.bf16.mxu0 %v5221_v7  ;;  %v5305_v7 = vld [vmem:[%s6017_s11 + $0xac4] ss:$8 sps:$4 sm:$0xff]  }
  0xb0   : > { %3594 = vmatpush1.bf16.msra.mxu1 %v5216_v8  ;;  %v5300_v8 = vld [vmem:[%s6017_s11 + $0x2c0] ss:$8 sps:$4 sm:$0xff]  }
  0xb1   : > { %3938 = vmatpush1.bf16.msra.mxu0 %v5219_v9  ;;  %3595 = vmatprep.subr.bf16.mxu1 %v5224_v10  ;;  %v5303_v9 = vld [vmem:[%s6017_s11 + $0xac0] ss:$8 sps:$4 sm:$0xff]   ;;  %v5308_v10 = vld [vmem:[%s6017_s11 + $0x2d4] ss:$8 sps:$4 sm:$0xff]  }
  0xb2   : > { %3939 = vmatprep.subr.bf16.mxu0 %v5227_v11  ;;  %v5311_v11 = vld [vmem:[%s6017_s11 + $0xad4] ss:$8 sps:$4 sm:$0xff]  }
  0xb4   : > { %3596 = vmatpush1.bf16.msra.mxu1 %v5222_v12  ;;  %v5306_v12 = vld [vmem:[%s6017_s11 + $0x2d0] ss:$8 sps:$4 sm:$0xff]  }
  0xb5   : > { %3940 = vmatpush1.bf16.msra.mxu0 %v5225_v13  ;;  %3608 = vmatprep.subr.bf16.mxu1 %v5230_v14  ;;  %v5309_v13 = vld [vmem:[%s6017_s11 + $0xad0] ss:$8 sps:$4 sm:$0xff]   ;;  %v5314_v14 = vld [vmem:[%s6017_s11 + $0x2e4] ss:$8 sps:$4 sm:$0xff]  }
  0xb6   : > { %3952 = vmatprep.subr.bf16.mxu0 %v5233_v15  ;;  %v5317_v15 = vld [vmem:[%s6017_s11 + $0xae4] ss:$8 sps:$4 sm:$0xff]  }
  0xb7   : > { %3598 = vmatmul.mubr.bf16.vlgmr.msra.gmra.mrb[0].mxu1 %v4365_v16  ;;  %v5312_v16 = vld [vmem:[%s6017_s11 + $0x2e0] ss:$8 sps:$4 sm:$0xff]  }
  0xb8   : > { %3942 = vmatmul.mubr.bf16.vlgmr.msra.gmra.mrb[0].mxu0 %v4381_v18  ;;  %3609 = vmatpush1.bf16.msra.mxu1 %v5228_v17  ;;  %v5315_v17 = vld [vmem:[%s6017_s11 + $0xae0] ss:$8 sps:$4 sm:$0xff]   ;;  %v5320_v18 = vld [vmem:[%s6017_s11 + $0x2f4] ss:$8 sps:$4 sm:$0xff]  }
  0xb9   : > { %3953 = vmatpush1.bf16.msra.mxu0 %v5231_v19  ;;  %3610 = vmatprep.subr.bf16.mxu1 %v5236_v20  ;;  %v5323_v19 = vld [vmem:[%s6017_s11 + $0xaf4] ss:$8 sps:$4 sm:$0xff]   ;;  %v5318_v20 = vld [vmem:[%s6017_s11 + $0x2f0] ss:$8 sps:$4 sm:$0xff]  }
  0xba   : > { %3954 = vmatprep.subr.bf16.mxu0 %v5239_v21  ;;  %3640 = vmatprep.mubr.bf16.mxu1 %v4368_v28  ;;  %v5321_v21 = vld [vmem:[%s6017_s11 + $0xaf0] ss:$8 sps:$4 sm:$0xff]  }
  0xbb   : > { %3984 = vmatprep.mubr.bf16.mxu0 %v4384_v31  ;;  %v6286_v28 = vld [vmem:[%s6772_s0 + $0x18] sm:$0xff] }
  0xbc   : > { %3611 = vmatpush1.bf16.msra.mxu1 %v5234_v22  ;;  %v5326_v22 = vld [vmem:[%s6017_s11 + $0x304] ss:$8 sps:$4 sm:$0xff]   ;;  %v6291_v31 = vld [vmem:[%s6772_s0 + $0x98] sm:$0xff] }
  0xbd   : > { %3955 = vmatpush1.bf16.msra.mxu0 %v5237_v23  ;;  %3612 = vmatprep.subr.bf16.mxu1 %v5242_v26  ;;  %v5329_v23 = vld [vmem:[%s6017_s11 + $0xb04] ss:$8 sps:$4 sm:$0xff]   ;;  %v5324_v26 = vld [vmem:[%s6017_s11 + $0x300] ss:$8 sps:$4 sm:$0xff]  }
  0xbe   : > { %3956 = vmatprep.subr.bf16.mxu0 %v5245_v27  ;;  %v5327_v27 = vld [vmem:[%s6017_s11 + $0xb00] ss:$8 sps:$4 sm:$0xff]  }
  0xc0   : > { %3613 = vmatpush1.bf16.msra.mxu1 %v5240_v32  ;;  %v4367_v32 = vcombine.low %v6202_v24, %v6207_v25  ;;  %v5335_v24 = vld [vmem:[%s6017_s11 + $0xb14] ss:$8 sps:$4 sm:$0xff]   ;;  %v4370_v25 = vcombine.high %v6286_v28, %v6291_v31 }
  0xc1   : > { %3957 = vmatpush1.bf16.msra.mxu0 %v5243_v33  ;;  %3614 = vmatprep.subr.bf16.mxu1 %v5248_v34  ;;  %v4383_v33 = vcombine.low %v6216_v29, %v6221_v30  ;;  %v6300_v34 = vld [vmem:[%s6772_s0 + $0x58] sm:$0xff] }
  0xc2   : > { %3958 = vmatprep.subr.bf16.mxu0 %v5251_v35  ;;  %v6305_v35 = vld [vmem:[%s6772_s0 + $0xd8] sm:$0xff] }
  0xc3   : > { %v4386_v29 = vcombine.high %v6300_v34, %v6305_v35  ;;  %v5330_v30 = vld [vmem:[%s6017_s11 + $0x310] ss:$8 sps:$4 sm:$0xff]  }
  0xc4   : > { %3615 = vmatpush1.bf16.msra.mxu1 %v5246_v36  ;;  %v5332_v36 = vld [vmem:[%s6017_s11 + $0x314] ss:$8 sps:$4 sm:$0xff]  }
  0xc5   : > { %3959 = vmatpush1.bf16.msra.mxu0 %v5249_v37  ;;  %3616 = vmatprep.subr.bf16.mxu1 %v5254_v38  ;;  %v5333_v37 = vld [vmem:[%s6017_s11 + $0xb10] ss:$8 sps:$4 sm:$0xff]   ;;  %v5338_v38 = vld [vmem:[%s6017_s11 + $0x324] ss:$8 sps:$4 sm:$0xff]  }
  0xc6   : > { %3960 = vmatprep.subr.bf16.mxu0 %v5257_v39  ;;  %v5341_v39 = vld [vmem:[%s6017_s11 + $0xb24] ss:$8 sps:$4 sm:$0xff]  }
  0xc8   : > { %3617 = vmatpush1.bf16.msra.mxu1 %v5252_v40  ;;  %v5336_v40 = vld [vmem:[%s6017_s11 + $0x320] ss:$8 sps:$4 sm:$0xff]  }
  0xc9   : > { %3961 = vmatpush1.bf16.msra.mxu0 %v5255_v41  ;;  %3618 = vmatprep.subr.bf16.mxu1 %v5260_v42  ;;  %v5339_v41 = vld [vmem:[%s6017_s11 + $0xb20] ss:$8 sps:$4 sm:$0xff]   ;;  %v5344_v42 = vld [vmem:[%s6017_s11 + $0x334] ss:$8 sps:$4 sm:$0xff]  }
  0xca   : > { %3962 = vmatprep.subr.bf16.mxu0 %v5263_v43  ;;  %v5347_v43 = vld [vmem:[%s6017_s11 + $0xb34] ss:$8 sps:$4 sm:$0xff]  }
  0xcc   : > { %3619 = vmatpush1.bf16.msra.mxu1 %v5258_v44  ;;  %v5342_v44 = vld [vmem:[%s6017_s11 + $0x330] ss:$8 sps:$4 sm:$0xff]  }
  0xcd   : > { %3963 = vmatpush1.bf16.msra.mxu0 %v5261_v45  ;;  %3620 = vmatprep.subr.bf16.mxu1 %v5266_v46  ;;  %v5345_v45 = vld [vmem:[%s6017_s11 + $0xb30] ss:$8 sps:$4 sm:$0xff]   ;;  %v5350_v46 = vld [vmem:[%s6017_s11 + $0x344] ss:$8 sps:$4 sm:$0xff]  }
  0xce   : > { %3964 = vmatprep.subr.bf16.mxu0 %v5269_v47  ;;  %v5353_v47 = vld [vmem:[%s6017_s11 + $0xb44] ss:$8 sps:$4 sm:$0xff]  }
  0xd0   : > { %3621 = vmatpush1.bf16.msra.mxu1 %v5264_v48  ;;  %v5348_v48 = vld [vmem:[%s6017_s11 + $0x340] ss:$8 sps:$4 sm:$0xff]  }
  0xd1   : > { %3965 = vmatpush1.bf16.msra.mxu0 %v5267_v49  ;;  %3622 = vmatprep.subr.bf16.mxu1 %v5272_v50  ;;  %v5351_v49 = vld [vmem:[%s6017_s11 + $0xb40] ss:$8 sps:$4 sm:$0xff]   ;;  %v5356_v50 = vld [vmem:[%s6017_s11 + $0x354] ss:$8 sps:$4 sm:$0xff]  }
  0xd2   : > { %3966 = vmatprep.subr.bf16.mxu0 %v5275_v51  ;;  %v5359_v51 = vld [vmem:[%s6017_s11 + $0xb54] ss:$8 sps:$4 sm:$0xff]  }
  0xd4   : > { %3623 = vmatpush1.bf16.msra.mxu1 %v5270_v52  ;;  %v5354_v52 = vld [vmem:[%s6017_s11 + $0x350] ss:$8 sps:$4 sm:$0xff]  }
  0xd5   : > { %3967 = vmatpush1.bf16.msra.mxu0 %v5273_v53  ;;  %3624 = vmatprep.subr.bf16.mxu1 %v5278_v54  ;;  %v5357_v53 = vld [vmem:[%s6017_s11 + $0xb50] ss:$8 sps:$4 sm:$0xff]   ;;  %v5362_v54 = vld [vmem:[%s6017_s11 + $0x364] ss:$8 sps:$4 sm:$0xff]  }
  0xd6   : > { %3968 = vmatprep.subr.bf16.mxu0 %v5281_v55  ;;  %v5365_v55 = vld [vmem:[%s6017_s11 + $0xb64] ss:$8 sps:$4 sm:$0xff]  }
  0xd8   : > { %3625 = vmatpush1.bf16.msra.mxu1 %v5276_v56  ;;  %v5360_v56 = vld [vmem:[%s6017_s11 + $0x360] ss:$8 sps:$4 sm:$0xff]  }
  0xd9   : > { %3969 = vmatpush1.bf16.msra.mxu0 %v5279_v57  ;;  %3626 = vmatprep.subr.bf16.mxu1 %v5284_v58  ;;  %v5363_v57 = vld [vmem:[%s6017_s11 + $0xb60] ss:$8 sps:$4 sm:$0xff]   ;;  %v5368_v58 = vld [vmem:[%s6017_s11 + $0x374] ss:$8 sps:$4 sm:$0xff]  }
  0xda   : > { %3970 = vmatprep.subr.bf16.mxu0 %v5287_v59  ;;  %v5371_v59 = vld [vmem:[%s6017_s11 + $0xb74] ss:$8 sps:$4 sm:$0xff]  }
  0xdc   : > { %3627 = vmatpush1.bf16.msra.mxu1 %v5282_v60  ;;  %v5366_v60 = vld [vmem:[%s6017_s11 + $0x370] ss:$8 sps:$4 sm:$0xff]  }
  0xdd   : > { %3971 = vmatpush1.bf16.msra.mxu0 %v5285_v61  ;;  %3628 = vmatprep.subr.bf16.mxu1 %v5290_v62  ;;  %v5369_v61 = vld [vmem:[%s6017_s11 + $0xb70] ss:$8 sps:$4 sm:$0xff]   ;;  %v5374_v62 = vld [vmem:[%s6017_s11 + $0x384] ss:$8 sps:$4 sm:$0xff]  }
  0xde   : > { %3972 = vmatprep.subr.bf16.mxu0 %v5293_v63  ;;  %v5377_v63 = vld [vmem:[%s6017_s11 + $0xb84] ss:$8 sps:$4 sm:$0xff]  }
  0xe0   : > { %3629 = vmatpush1.bf16.msra.mxu1 %v5288_v0  ;;  %v5372_v0 = vld [vmem:[%s6017_s11 + $0x380] ss:$8 sps:$4 sm:$0xff]  }
  0xe1   : > { %3973 = vmatpush1.bf16.msra.mxu0 %v5291_v1  ;;  %3630 = vmatprep.subr.bf16.mxu1 %v5296_v2  ;;  %v5375_v1 = vld [vmem:[%s6017_s11 + $0xb80] ss:$8 sps:$4 sm:$0xff]   ;;  %v5380_v2 = vld [vmem:[%s6017_s11 + $0x394] ss:$8 sps:$4 sm:$0xff]  }
  0xe2   : > { %3974 = vmatprep.subr.bf16.mxu0 %v5299_v3  ;;  %v5383_v3 = vld [vmem:[%s6017_s11 + $0xb94] ss:$8 sps:$4 sm:$0xff]  }
  0xe4   : > { %3631 = vmatpush1.bf16.msra.mxu1 %v5294_v4  ;;  %v5378_v4 = vld [vmem:[%s6017_s11 + $0x390] ss:$8 sps:$4 sm:$0xff]  }
  0xe5   : > { %3975 = vmatpush1.bf16.msra.mxu0 %v5297_v5  ;;  %3632 = vmatprep.subr.bf16.mxu1 %v5302_v6  ;;  %v5381_v5 = vld [vmem:[%s6017_s11 + $0xb90] ss:$8 sps:$4 sm:$0xff]   ;;  %v5386_v6 = vld [vmem:[%s6017_s11 + $0x3a4] ss:$8 sps:$4 sm:$0xff]  }
  0xe6   : > { %3976 = vmatprep.subr.bf16.mxu0 %v5305_v7  ;;  %v5389_v7 = vld [vmem:[%s6017_s11 + $0xba4] ss:$8 sps:$4 sm:$0xff]  }
  0xe8   : > { %3633 = vmatpush1.bf16.msra.mxu1 %v5300_v8  ;;  %v5384_v8 = vld [vmem:[%s6017_s11 + $0x3a0] ss:$8 sps:$4 sm:$0xff]  }
  0xe9   : > { %3977 = vmatpush1.bf16.msra.mxu0 %v5303_v9  ;;  %3634 = vmatprep.subr.bf16.mxu1 %v5308_v10  ;;  %v5387_v9 = vld [vmem:[%s6017_s11 + $0xba0] ss:$8 sps:$4 sm:$0xff]   ;;  %v5392_v10 = vld [vmem:[%s6017_s11 + $0x3b4] ss:$8 sps:$4 sm:$0xff]  }
  0xea   : > { %3978 = vmatprep.subr.bf16.mxu0 %v5311_v11  ;;  %v5395_v11 = vld [vmem:[%s6017_s11 + $0xbb4] ss:$8 sps:$4 sm:$0xff]  }
  0xec   : > { %3635 = vmatpush1.bf16.msra.mxu1 %v5306_v12  ;;  %v5390_v12 = vld [vmem:[%s6017_s11 + $0x3b0] ss:$8 sps:$4 sm:$0xff]  }
  0xed   : > { %3979 = vmatpush1.bf16.msra.mxu0 %v5309_v13  ;;  %3636 = vmatprep.subr.bf16.mxu1 %v5314_v14  ;;  %v5393_v13 = vld [vmem:[%s6017_s11 + $0xbb0] ss:$8 sps:$4 sm:$0xff]   ;;  %v5398_v14 = vld [vmem:[%s6017_s11 + $0x3c4] ss:$8 sps:$4 sm:$0xff]  }
  0xee   : > { %3980 = vmatprep.subr.bf16.mxu0 %v5317_v15  ;;  %v5401_v15 = vld [vmem:[%s6017_s11 + $0xbc4] ss:$8 sps:$4 sm:$0xff]  }
  0xf0   : > { %3637 = vmatpush1.bf16.msra.mxu1 %v5312_v16  ;;  %v5396_v16 = vld [vmem:[%s6017_s11 + $0x3c0] ss:$8 sps:$4 sm:$0xff]  }
  0xf1   : > { %3981 = vmatpush1.bf16.msra.mxu0 %v5315_v17  ;;  %3638 = vmatprep.subr.bf16.mxu1 %v5320_v18  ;;  %v5399_v17 = vld [vmem:[%s6017_s11 + $0xbc0] ss:$8 sps:$4 sm:$0xff]   ;;  %v5404_v18 = vld [vmem:[%s6017_s11 + $0x3d4] ss:$8 sps:$4 sm:$0xff]  }
  0xf2   : > { %3982 = vmatprep.subr.bf16.mxu0 %v5323_v19  ;;  %v5407_v19 = vld [vmem:[%s6017_s11 + $0xbd4] ss:$8 sps:$4 sm:$0xff]  }
  0xf4   : > { %3639 = vmatpush1.bf16.msra.mxu1 %v5318_v20  ;;  %v5402_v20 = vld [vmem:[%s6017_s11 + $0x3d0] ss:$8 sps:$4 sm:$0xff]  }
  0xf5   : > { %3983 = vmatpush1.bf16.msra.mxu0 %v5321_v21  ;;  %3651 = vmatprep.subr.bf16.mxu1 %v5326_v22  ;;  %v5405_v21 = vld [vmem:[%s6017_s11 + $0xbd0] ss:$8 sps:$4 sm:$0xff]   ;;  %v5410_v22 = vld [vmem:[%s6017_s11 + $0x3e4] ss:$8 sps:$4 sm:$0xff]  }
  0xf6   : > { %3995 = vmatprep.subr.bf16.mxu0 %v5329_v23  ;;  %v5413_v23 = vld [vmem:[%s6017_s11 + $0xbe4] ss:$8 sps:$4 sm:$0xff]  }
  0xf7   : > { %3641 = vmatmul.mubr.bf16.vlgmr.msra.gmra.mrb[0].mxu1 %v4367_v32  ;;  %v5416_v32 = vld [vmem:[%s6017_s11 + $0x3f4] ss:$8 sps:$4 sm:$0xff]  }
  0xf8   : > { %3985 = vmatmul.mubr.bf16.vlgmr.msra.gmra.mrb[0].mxu0 %v4383_v33  ;;  %3652 = vmatpush1.bf16.msra.mxu1 %v5324_v26  ;;  %v5408_v26 = vld [vmem:[%s6017_s11 + $0x3e0] ss:$8 sps:$4 sm:$0xff]   ;;  %v5419_v33 = vld [vmem:[%s6017_s11 + $0xbf4] ss:$8 sps:$4 sm:$0xff]  }
  0xf9   : > { %3996 = vmatpush1.bf16.msra.mxu0 %v5327_v27  ;;  %3653 = vmatprep.subr.bf16.mxu1 %v5332_v36  ;;  %v5411_v27 = vld [vmem:[%s6017_s11 + $0xbe0] ss:$8 sps:$4 sm:$0xff]   ;;  %v5414_v36 = vld [vmem:[%s6017_s11 + $0x3f0] ss:$8 sps:$4 sm:$0xff]  }
  0xfa   : > { %3997 = vmatprep.subr.bf16.mxu0 %v5335_v24  ;;  %3683 = vmatprep.mubr.bf16.mxu1 %v4370_v25  ;;  %v5417_v24 = vld [vmem:[%s6017_s11 + $0xbf0] ss:$8 sps:$4 sm:$0xff]   ;;  %v5422_v25 = vld [vmem:[%s6017_s11 + $0x404] ss:$8 sps:$4 sm:$0xff]  }
  0xfb   : > { %4027 = vmatprep.mubr.bf16.mxu0 %v4386_v29  ;;  %v5425_v29 = vld [vmem:[%s6017_s11 + $0xc04] ss:$8 sps:$4 sm:$0xff]  }
  0xfc   : > { %3654 = vmatpush1.bf16.msra.mxu1 %v5330_v30  ;;  %v5420_v30 = vld [vmem:[%s6017_s11 + $0x400] ss:$8 sps:$4 sm:$0xff]  }
  0xfd   : > { %3998 = vmatpush1.bf16.msra.mxu0 %v5333_v37  ;;  %3655 = vmatprep.subr.bf16.mxu1 %v5338_v38  ;;  %v5423_v37 = vld [vmem:[%s6017_s11 + $0xc00] ss:$8 sps:$4 sm:$0xff]  }
  0xfe   : > { %3999 = vmatprep.subr.bf16.mxu0 %v5341_v39  ;;  %v6378_v38 = vld [vmem:[%s6772_s0 + $0x20] sm:$0xff] }
  0xff   : > { %v6383_v39 = vld [vmem:[%s6772_s0 + $0xa0] sm:$0xff] }
 0x100   : > { %3656 = vmatpush1.bf16.msra.mxu1 %v5336_v40  ;;  %v4369_v40 = vcombine.low %v6286_v28, %v6291_v31  ;;  %v5431_v28 = vld [vmem:[%s6017_s11 + $0xc14] ss:$8 sps:$4 sm:$0xff]   ;;  %v4372_v31 = vcombine.high %v6378_v38, %v6383_v39 }
 0x101   : > { %4000 = vmatpush1.bf16.msra.mxu0 %v5339_v41  ;;  %3657 = vmatprep.subr.bf16.mxu1 %v5344_v42  ;;  %v4385_v41 = vcombine.low %v6300_v34, %v6305_v35  ;;  %v6392_v42 = vld [vmem:[%s6772_s0 + $0x60] sm:$0xff]  ;;  %v5426_v35 = vld [vmem:[%s6017_s11 + $0x410] ss:$8 sps:$4 sm:$0xff]  }
 0x102   : > { %4001 = vmatprep.subr.bf16.mxu0 %v5347_v43  ;;  %v6397_v43 = vld [vmem:[%s6772_s0 + $0xe0] sm:$0xff] }
 0x103   : > { %v4388_v34 = vcombine.high %v6392_v42, %v6397_v43 }
 0x104   : > { %3658 = vmatpush1.bf16.msra.mxu1 %v5342_v44  ;;  %v5428_v44 = vld [vmem:[%s6017_s11 + $0x414] ss:$8 sps:$4 sm:$0xff]  }
 0x105   : > { %4002 = vmatpush1.bf16.msra.mxu0 %v5345_v45  ;;  %3659 = vmatprep.subr.bf16.mxu1 %v5350_v46  ;;  %v5429_v45 = vld [vmem:[%s6017_s11 + $0xc10] ss:$8 sps:$4 sm:$0xff]   ;;  %v5434_v46 = vld [vmem:[%s6017_s11 + $0x424] ss:$8 sps:$4 sm:$0xff]  }
 0x106   : > { %4003 = vmatprep.subr.bf16.mxu0 %v5353_v47  ;;  %v5437_v47 = vld [vmem:[%s6017_s11 + $0xc24] ss:$8 sps:$4 sm:$0xff]  }
 0x108   : > { %3660 = vmatpush1.bf16.msra.mxu1 %v5348_v48  ;;  %v5432_v48 = vld [vmem:[%s6017_s11 + $0x420] ss:$8 sps:$4 sm:$0xff]  }
 0x109   : > { %4004 = vmatpush1.bf16.msra.mxu0 %v5351_v49  ;;  %3661 = vmatprep.subr.bf16.mxu1 %v5356_v50  ;;  %v5435_v49 = vld [vmem:[%s6017_s11 + $0xc20] ss:$8 sps:$4 sm:$0xff]   ;;  %v5440_v50 = vld [vmem:[%s6017_s11 + $0x434] ss:$8 sps:$4 sm:$0xff]  }
 0x10a   : > { %4005 = vmatprep.subr.bf16.mxu0 %v5359_v51  ;;  %v5443_v51 = vld [vmem:[%s6017_s11 + $0xc34] ss:$8 sps:$4 sm:$0xff]  }
 0x10c   : > { %3662 = vmatpush1.bf16.msra.mxu1 %v5354_v52  ;;  %v5438_v52 = vld [vmem:[%s6017_s11 + $0x430] ss:$8 sps:$4 sm:$0xff]  }
 0x10d   : > { %4006 = vmatpush1.bf16.msra.mxu0 %v5357_v53  ;;  %3663 = vmatprep.subr.bf16.mxu1 %v5362_v54  ;;  %v5441_v53 = vld [vmem:[%s6017_s11 + $0xc30] ss:$8 sps:$4 sm:$0xff]   ;;  %v5446_v54 = vld [vmem:[%s6017_s11 + $0x444] ss:$8 sps:$4 sm:$0xff]  }
 0x10e   : > { %4007 = vmatprep.subr.bf16.mxu0 %v5365_v55  ;;  %v5449_v55 = vld [vmem:[%s6017_s11 + $0xc44] ss:$8 sps:$4 sm:$0xff]  }
 0x110   : > { %3664 = vmatpush1.bf16.msra.mxu1 %v5360_v56  ;;  %v5444_v56 = vld [vmem:[%s6017_s11 + $0x440] ss:$8 sps:$4 sm:$0xff]  }
 0x111   : > { %4008 = vmatpush1.bf16.msra.mxu0 %v5363_v57  ;;  %3665 = vmatprep.subr.bf16.mxu1 %v5368_v58  ;;  %v5447_v57 = vld [vmem:[%s6017_s11 + $0xc40] ss:$8 sps:$4 sm:$0xff]   ;;  %v5452_v58 = vld [vmem:[%s6017_s11 + $0x454] ss:$8 sps:$4 sm:$0xff]  }
 0x112   : > { %4009 = vmatprep.subr.bf16.mxu0 %v5371_v59  ;;  %v5455_v59 = vld [vmem:[%s6017_s11 + $0xc54] ss:$8 sps:$4 sm:$0xff]  }
 0x114   : > { %3666 = vmatpush1.bf16.msra.mxu1 %v5366_v60  ;;  %v5450_v60 = vld [vmem:[%s6017_s11 + $0x450] ss:$8 sps:$4 sm:$0xff]  }
 0x115   : > { %4010 = vmatpush1.bf16.msra.mxu0 %v5369_v61  ;;  %3667 = vmatprep.subr.bf16.mxu1 %v5374_v62  ;;  %v5453_v61 = vld [vmem:[%s6017_s11 + $0xc50] ss:$8 sps:$4 sm:$0xff]   ;;  %v5458_v62 = vld [vmem:[%s6017_s11 + $0x464] ss:$8 sps:$4 sm:$0xff]  }
 0x116   : > { %4011 = vmatprep.subr.bf16.mxu0 %v5377_v63  ;;  %v5461_v63 = vld [vmem:[%s6017_s11 + $0xc64] ss:$8 sps:$4 sm:$0xff]  }
 0x118   : > { %3668 = vmatpush1.bf16.msra.mxu1 %v5372_v0  ;;  %v5456_v0 = vld [vmem:[%s6017_s11 + $0x460] ss:$8 sps:$4 sm:$0xff]  }
 0x119   : > { %4012 = vmatpush1.bf16.msra.mxu0 %v5375_v1  ;;  %3669 = vmatprep.subr.bf16.mxu1 %v5380_v2  ;;  %v5459_v1 = vld [vmem:[%s6017_s11 + $0xc60] ss:$8 sps:$4 sm:$0xff]   ;;  %v5464_v2 = vld [vmem:[%s6017_s11 + $0x474] ss:$8 sps:$4 sm:$0xff]  }
 0x11a   : > { %4013 = vmatprep.subr.bf16.mxu0 %v5383_v3  ;;  %v5467_v3 = vld [vmem:[%s6017_s11 + $0xc74] ss:$8 sps:$4 sm:$0xff]  }
 0x11c   : > { %3670 = vmatpush1.bf16.msra.mxu1 %v5378_v4  ;;  %v5462_v4 = vld [vmem:[%s6017_s11 + $0x470] ss:$8 sps:$4 sm:$0xff]  }
 0x11d   : > { %4014 = vmatpush1.bf16.msra.mxu0 %v5381_v5  ;;  %3671 = vmatprep.subr.bf16.mxu1 %v5386_v6  ;;  %v5465_v5 = vld [vmem:[%s6017_s11 + $0xc70] ss:$8 sps:$4 sm:$0xff]   ;;  %v5470_v6 = vld [vmem:[%s6017_s11 + $0x484] ss:$8 sps:$4 sm:$0xff]  }
 0x11e   : > { %4015 = vmatprep.subr.bf16.mxu0 %v5389_v7  ;;  %v5473_v7 = vld [vmem:[%s6017_s11 + $0xc84] ss:$8 sps:$4 sm:$0xff]  }
 0x120   : > { %3672 = vmatpush1.bf16.msra.mxu1 %v5384_v8  ;;  %v5468_v8 = vld [vmem:[%s6017_s11 + $0x480] ss:$8 sps:$4 sm:$0xff]  }
 0x121   : > { %4016 = vmatpush1.bf16.msra.mxu0 %v5387_v9  ;;  %3673 = vmatprep.subr.bf16.mxu1 %v5392_v10  ;;  %v5471_v9 = vld [vmem:[%s6017_s11 + $0xc80] ss:$8 sps:$4 sm:$0xff]   ;;  %v5476_v10 = vld [vmem:[%s6017_s11 + $0x494] ss:$8 sps:$4 sm:$0xff]  }
 0x122   : > { %4017 = vmatprep.subr.bf16.mxu0 %v5395_v11  ;;  %v5479_v11 = vld [vmem:[%s6017_s11 + $0xc94] ss:$8 sps:$4 sm:$0xff]  }
 0x124   : > { %3674 = vmatpush1.bf16.msra.mxu1 %v5390_v12  ;;  %v5474_v12 = vld [vmem:[%s6017_s11 + $0x490] ss:$8 sps:$4 sm:$0xff]  }
 0x125   : > { %4018 = vmatpush1.bf16.msra.mxu0 %v5393_v13  ;;  %3675 = vmatprep.subr.bf16.mxu1 %v5398_v14  ;;  %v5477_v13 = vld [vmem:[%s6017_s11 + $0xc90] ss:$8 sps:$4 sm:$0xff]   ;;  %v5482_v14 = vld [vmem:[%s6017_s11 + $0x4a4] ss:$8 sps:$4 sm:$0xff]  }
 0x126   : > { %4019 = vmatprep.subr.bf16.mxu0 %v5401_v15  ;;  %v5485_v15 = vld [vmem:[%s6017_s11 + $0xca4] ss:$8 sps:$4 sm:$0xff]  }
 0x128   : > { %3676 = vmatpush1.bf16.msra.mxu1 %v5396_v16  ;;  %v5480_v16 = vld [vmem:[%s6017_s11 + $0x4a0] ss:$8 sps:$4 sm:$0xff]  }
 0x129   : > { %4020 = vmatpush1.bf16.msra.mxu0 %v5399_v17  ;;  %3677 = vmatprep.subr.bf16.mxu1 %v5404_v18  ;;  %v5483_v17 = vld [vmem:[%s6017_s11 + $0xca0] ss:$8 sps:$4 sm:$0xff]   ;;  %v5488_v18 = vld [vmem:[%s6017_s11 + $0x4b4] ss:$8 sps:$4 sm:$0xff]  }
 0x12a   : > { %4021 = vmatprep.subr.bf16.mxu0 %v5407_v19  ;;  %v5491_v19 = vld [vmem:[%s6017_s11 + $0xcb4] ss:$8 sps:$4 sm:$0xff]  }
 0x12c   : > { %3678 = vmatpush1.bf16.msra.mxu1 %v5402_v20  ;;  %v5486_v20 = vld [vmem:[%s6017_s11 + $0x4b0] ss:$8 sps:$4 sm:$0xff]  }
 0x12d   : > { %4022 = vmatpush1.bf16.msra.mxu0 %v5405_v21  ;;  %3679 = vmatprep.subr.bf16.mxu1 %v5410_v22  ;;  %v5489_v21 = vld [vmem:[%s6017_s11 + $0xcb0] ss:$8 sps:$4 sm:$0xff]   ;;  %v5494_v22 = vld [vmem:[%s6017_s11 + $0x4c4] ss:$8 sps:$4 sm:$0xff]  }
 0x12e   : > { %4023 = vmatprep.subr.bf16.mxu0 %v5413_v23  ;;  %v5497_v23 = vld [vmem:[%s6017_s11 + $0xcc4] ss:$8 sps:$4 sm:$0xff]  }
 0x130   : > { %3680 = vmatpush1.bf16.msra.mxu1 %v5408_v26  ;;  %v5492_v26 = vld [vmem:[%s6017_s11 + $0x4c0] ss:$8 sps:$4 sm:$0xff]  }
 0x131   : > { %4024 = vmatpush1.bf16.msra.mxu0 %v5411_v27  ;;  %3681 = vmatprep.subr.bf16.mxu1 %v5416_v32  ;;  %v5495_v27 = vld [vmem:[%s6017_s11 + $0xcc0] ss:$8 sps:$4 sm:$0xff]   ;;  %v5500_v32 = vld [vmem:[%s6017_s11 + $0x4d4] ss:$8 sps:$4 sm:$0xff]  }
 0x132   : > { %4025 = vmatprep.subr.bf16.mxu0 %v5419_v33  ;;  %v5503_v33 = vld [vmem:[%s6017_s11 + $0xcd4] ss:$8 sps:$4 sm:$0xff]  }
 0x134   : > { %3682 = vmatpush1.bf16.msra.mxu1 %v5414_v36  ;;  %v5498_v36 = vld [vmem:[%s6017_s11 + $0x4d0] ss:$8 sps:$4 sm:$0xff]  }
 0x135   : > { %4026 = vmatpush1.bf16.msra.mxu0 %v5417_v24  ;;  %3694 = vmatprep.subr.bf16.mxu1 %v5422_v25  ;;  %v5501_v24 = vld [vmem:[%s6017_s11 + $0xcd0] ss:$8 sps:$4 sm:$0xff]   ;;  %v5506_v25 = vld [vmem:[%s6017_s11 + $0x4e4] ss:$8 sps:$4 sm:$0xff]  }
 0x136   : > { %4038 = vmatprep.subr.bf16.mxu0 %v5425_v29  ;;  %v5509_v29 = vld [vmem:[%s6017_s11 + $0xce4] ss:$8 sps:$4 sm:$0xff]  }
 0x137   : > { %3684 = vmatmul.mubr.bf16.vlgmr.msra.gmra.mrb[0].mxu1 %v4369_v40  ;;  %v5512_v40 = vld [vmem:[%s6017_s11 + $0x4f4] ss:$8 sps:$4 sm:$0xff]  }
 0x138   : > { %4028 = vmatmul.mubr.bf16.vlgmr.msra.gmra.mrb[0].mxu0 %v4385_v41  ;;  %3695 = vmatpush1.bf16.msra.mxu1 %v5420_v30  ;;  %v5504_v30 = vld [vmem:[%s6017_s11 + $0x4e0] ss:$8 sps:$4 sm:$0xff]   ;;  %v5515_v41 = vld [vmem:[%s6017_s11 + $0xcf4] ss:$8 sps:$4 sm:$0xff]  }
 0x139   : > { %4039 = vmatpush1.bf16.msra.mxu0 %v5423_v37  ;;  %3696 = vmatprep.subr.bf16.mxu1 %v5428_v44  ;;  %v5507_v37 = vld [vmem:[%s6017_s11 + $0xce0] ss:$8 sps:$4 sm:$0xff]   ;;  %v5510_v44 = vld [vmem:[%s6017_s11 + $0x4f0] ss:$8 sps:$4 sm:$0xff]  }
 0x13a   : > { %4040 = vmatprep.subr.bf16.mxu0 %v5431_v28  ;;  %3726 = vmatprep.mubr.bf16.mxu1 %v4372_v31  ;;  %v5513_v28 = vld [vmem:[%s6017_s11 + $0xcf0] ss:$8 sps:$4 sm:$0xff]   ;;  %v5518_v31 = vld [vmem:[%s6017_s11 + $0x504] ss:$8 sps:$4 sm:$0xff]  }
 0x13b   : > { %4070 = vmatprep.mubr.bf16.mxu0 %v4388_v34  ;;  %v5521_v34 = vld [vmem:[%s6017_s11 + $0xd04] ss:$8 sps:$4 sm:$0xff]  }
 0x13c   : > { %3697 = vmatpush1.bf16.msra.mxu1 %v5426_v35  ;;  %v6468_v35 = vld [vmem:[%s6772_s0 + $0x28] sm:$0xff] }
 0x13d   : > { %4041 = vmatpush1.bf16.msra.mxu0 %v5429_v45  ;;  %3698 = vmatprep.subr.bf16.mxu1 %v5434_v46  ;;  %v6473_v45 = vld [vmem:[%s6772_s0 + $0xa8] sm:$0xff] }
 0x13e   : > { %4042 = vmatprep.subr.bf16.mxu0 %v5437_v47  ;;  %v6478_v46 = vld [vmem:[%s6772_s0 + $0x68] sm:$0xff] }
 0x13f   : > { %v6483_v47 = vld [vmem:[%s6772_s0 + $0xe8] sm:$0xff] }
 0x140   : > { %3699 = vmatpush1.bf16.msra.mxu1 %v5432_v48  ;;  %v4371_v48 = vcombine.low %v6378_v38, %v6383_v39  ;;  %v4390_v38 = vcombine.high %v6478_v46, %v6483_v47  ;;  %v5522_v39 = vld [vmem:[%s6017_s11 + $0x510] ss:$8 sps:$4 sm:$0xff]  }
 0x141   : > { %4043 = vmatpush1.bf16.msra.mxu0 %v5435_v49  ;;  %3700 = vmatprep.subr.bf16.mxu1 %v5440_v50  ;;  %v4387_v49 = vcombine.low %v6392_v42, %v6397_v43  ;;  %v5516_v50 = vld [vmem:[%s6017_s11 + $0x500] ss:$8 sps:$4 sm:$0xff]   ;;  %v5525_v42 = vld [vmem:[%s6017_s11 + $0xd10] ss:$8 sps:$4 sm:$0xff]   ;;  %v5530_v43 = vld [vmem:[%s6017_s11 + $0x524] ss:$8 sps:$4 sm:$0xff]  }
 0x142   : > { %4044 = vmatprep.subr.bf16.mxu0 %v5443_v51  ;;  %v5519_v51 = vld [vmem:[%s6017_s11 + $0xd00] ss:$8 sps:$4 sm:$0xff]  }
 0x144   : > { %3701 = vmatpush1.bf16.msra.mxu1 %v5438_v52  ;;  %v5524_v52 = vld [vmem:[%s6017_s11 + $0x514] ss:$8 sps:$4 sm:$0xff]  }
 0x145   : > { %4045 = vmatpush1.bf16.msra.mxu0 %v5441_v53  ;;  %3702 = vmatprep.subr.bf16.mxu1 %v5446_v54  ;;  %v5527_v53 = vld [vmem:[%s6017_s11 + $0xd14] ss:$8 sps:$4 sm:$0xff]   ;;  %v4374_v54 = vcombine.high %v6468_v35, %v6473_v45 }
 0x146   : > { %4046 = vmatprep.subr.bf16.mxu0 %v5449_v55  ;;  %v5533_v55 = vld [vmem:[%s6017_s11 + $0xd24] ss:$8 sps:$4 sm:$0xff]  }
 0x148   : > { %3703 = vmatpush1.bf16.msra.mxu1 %v5444_v56  ;;  %v5528_v56 = vld [vmem:[%s6017_s11 + $0x520] ss:$8 sps:$4 sm:$0xff]  }
 0x149   : > { %4047 = vmatpush1.bf16.msra.mxu0 %v5447_v57  ;;  %3704 = vmatprep.subr.bf16.mxu1 %v5452_v58  ;;  %v5531_v57 = vld [vmem:[%s6017_s11 + $0xd20] ss:$8 sps:$4 sm:$0xff]   ;;  %v5536_v58 = vld [vmem:[%s6017_s11 + $0x534] ss:$8 sps:$4 sm:$0xff]  }
 0x14a   : > { %4048 = vmatprep.subr.bf16.mxu0 %v5455_v59  ;;  %v5539_v59 = vld [vmem:[%s6017_s11 + $0xd34] ss:$8 sps:$4 sm:$0xff]  }
 0x14c   : > { %3705 = vmatpush1.bf16.msra.mxu1 %v5450_v60  ;;  %v5534_v60 = vld [vmem:[%s6017_s11 + $0x530] ss:$8 sps:$4 sm:$0xff]  }
 0x14d   : > { %4049 = vmatpush1.bf16.msra.mxu0 %v5453_v61  ;;  %3706 = vmatprep.subr.bf16.mxu1 %v5458_v62  ;;  %v5537_v61 = vld [vmem:[%s6017_s11 + $0xd30] ss:$8 sps:$4 sm:$0xff]   ;;  %v5542_v62 = vld [vmem:[%s6017_s11 + $0x544] ss:$8 sps:$4 sm:$0xff]  }
 0x14e   : > { %4050 = vmatprep.subr.bf16.mxu0 %v5461_v63  ;;  %v5545_v63 = vld [vmem:[%s6017_s11 + $0xd44] ss:$8 sps:$4 sm:$0xff]  }
 0x150   : > { %3707 = vmatpush1.bf16.msra.mxu1 %v5456_v0  ;;  %v5540_v0 = vld [vmem:[%s6017_s11 + $0x540] ss:$8 sps:$4 sm:$0xff]  }
 0x151   : > { %4051 = vmatpush1.bf16.msra.mxu0 %v5459_v1  ;;  %3708 = vmatprep.subr.bf16.mxu1 %v5464_v2  ;;  %v5543_v1 = vld [vmem:[%s6017_s11 + $0xd40] ss:$8 sps:$4 sm:$0xff]   ;;  %v5548_v2 = vld [vmem:[%s6017_s11 + $0x554] ss:$8 sps:$4 sm:$0xff]  }
 0x152   : > { %4052 = vmatprep.subr.bf16.mxu0 %v5467_v3  ;;  %v5551_v3 = vld [vmem:[%s6017_s11 + $0xd54] ss:$8 sps:$4 sm:$0xff]  }
 0x154   : > { %3709 = vmatpush1.bf16.msra.mxu1 %v5462_v4  ;;  %v5546_v4 = vld [vmem:[%s6017_s11 + $0x550] ss:$8 sps:$4 sm:$0xff]  }
 0x155   : > { %4053 = vmatpush1.bf16.msra.mxu0 %v5465_v5  ;;  %3710 = vmatprep.subr.bf16.mxu1 %v5470_v6  ;;  %v5549_v5 = vld [vmem:[%s6017_s11 + $0xd50] ss:$8 sps:$4 sm:$0xff]   ;;  %v5554_v6 = vld [vmem:[%s6017_s11 + $0x564] ss:$8 sps:$4 sm:$0xff]  }
 0x156   : > { %4054 = vmatprep.subr.bf16.mxu0 %v5473_v7  ;;  %v5557_v7 = vld [vmem:[%s6017_s11 + $0xd64] ss:$8 sps:$4 sm:$0xff]  }
 0x158   : > { %3711 = vmatpush1.bf16.msra.mxu1 %v5468_v8  ;;  %v5552_v8 = vld [vmem:[%s6017_s11 + $0x560] ss:$8 sps:$4 sm:$0xff]  }
 0x159   : > { %4055 = vmatpush1.bf16.msra.mxu0 %v5471_v9  ;;  %3712 = vmatprep.subr.bf16.mxu1 %v5476_v10  ;;  %v5555_v9 = vld [vmem:[%s6017_s11 + $0xd60] ss:$8 sps:$4 sm:$0xff]   ;;  %v5560_v10 = vld [vmem:[%s6017_s11 + $0x574] ss:$8 sps:$4 sm:$0xff]  }
 0x15a   : > { %4056 = vmatprep.subr.bf16.mxu0 %v5479_v11  ;;  %v5563_v11 = vld [vmem:[%s6017_s11 + $0xd74] ss:$8 sps:$4 sm:$0xff]  }
 0x15c   : > { %3713 = vmatpush1.bf16.msra.mxu1 %v5474_v12  ;;  %v5558_v12 = vld [vmem:[%s6017_s11 + $0x570] ss:$8 sps:$4 sm:$0xff]  }
 0x15d   : > { %4057 = vmatpush1.bf16.msra.mxu0 %v5477_v13  ;;  %3714 = vmatprep.subr.bf16.mxu1 %v5482_v14  ;;  %v5561_v13 = vld [vmem:[%s6017_s11 + $0xd70] ss:$8 sps:$4 sm:$0xff]   ;;  %v5566_v14 = vld [vmem:[%s6017_s11 + $0x584] ss:$8 sps:$4 sm:$0xff]  }
 0x15e   : > { %4058 = vmatprep.subr.bf16.mxu0 %v5485_v15  ;;  %v5569_v15 = vld [vmem:[%s6017_s11 + $0xd84] ss:$8 sps:$4 sm:$0xff]  }
 0x160   : > { %3715 = vmatpush1.bf16.msra.mxu1 %v5480_v16  ;;  %v5564_v16 = vld [vmem:[%s6017_s11 + $0x580] ss:$8 sps:$4 sm:$0xff]  }
 0x161   : > { %4059 = vmatpush1.bf16.msra.mxu0 %v5483_v17  ;;  %3716 = vmatprep.subr.bf16.mxu1 %v5488_v18  ;;  %v5567_v17 = vld [vmem:[%s6017_s11 + $0xd80] ss:$8 sps:$4 sm:$0xff]   ;;  %v5572_v18 = vld [vmem:[%s6017_s11 + $0x594] ss:$8 sps:$4 sm:$0xff]  }
 0x162   : > { %4060 = vmatprep.subr.bf16.mxu0 %v5491_v19  ;;  %v5575_v19 = vld [vmem:[%s6017_s11 + $0xd94] ss:$8 sps:$4 sm:$0xff]  }
 0x164   : > { %3717 = vmatpush1.bf16.msra.mxu1 %v5486_v20  ;;  %v5570_v20 = vld [vmem:[%s6017_s11 + $0x590] ss:$8 sps:$4 sm:$0xff]  }
 0x165   : > { %4061 = vmatpush1.bf16.msra.mxu0 %v5489_v21  ;;  %3718 = vmatprep.subr.bf16.mxu1 %v5494_v22  ;;  %v5573_v21 = vld [vmem:[%s6017_s11 + $0xd90] ss:$8 sps:$4 sm:$0xff]   ;;  %v5578_v22 = vld [vmem:[%s6017_s11 + $0x5a4] ss:$8 sps:$4 sm:$0xff]  }
 0x166   : > { %4062 = vmatprep.subr.bf16.mxu0 %v5497_v23  ;;  %v5581_v23 = vld [vmem:[%s6017_s11 + $0xda4] ss:$8 sps:$4 sm:$0xff]  }
 0x168   : > { %3719 = vmatpush1.bf16.msra.mxu1 %v5492_v26  ;;  %v5576_v26 = vld [vmem:[%s6017_s11 + $0x5a0] ss:$8 sps:$4 sm:$0xff]  }
 0x169   : > { %4063 = vmatpush1.bf16.msra.mxu0 %v5495_v27  ;;  %3720 = vmatprep.subr.bf16.mxu1 %v5500_v32  ;;  %v5579_v27 = vld [vmem:[%s6017_s11 + $0xda0] ss:$8 sps:$4 sm:$0xff]   ;;  %v5584_v32 = vld [vmem:[%s6017_s11 + $0x5b4] ss:$8 sps:$4 sm:$0xff]  }
 0x16a   : > { %4064 = vmatprep.subr.bf16.mxu0 %v5503_v33  ;;  %v5587_v33 = vld [vmem:[%s6017_s11 + $0xdb4] ss:$8 sps:$4 sm:$0xff]  }
 0x16c   : > { %3721 = vmatpush1.bf16.msra.mxu1 %v5498_v36  ;;  %v5582_v36 = vld [vmem:[%s6017_s11 + $0x5b0] ss:$8 sps:$4 sm:$0xff]  }
 0x16d   : > { %4065 = vmatpush1.bf16.msra.mxu0 %v5501_v24  ;;  %3722 = vmatprep.subr.bf16.mxu1 %v5506_v25  ;;  %v5585_v24 = vld [vmem:[%s6017_s11 + $0xdb0] ss:$8 sps:$4 sm:$0xff]   ;;  %v5590_v25 = vld [vmem:[%s6017_s11 + $0x5c4] ss:$8 sps:$4 sm:$0xff]  }
 0x16e   : > { %4066 = vmatprep.subr.bf16.mxu0 %v5509_v29  ;;  %v5593_v29 = vld [vmem:[%s6017_s11 + $0xdc4] ss:$8 sps:$4 sm:$0xff]  }
 0x170   : > { %3723 = vmatpush1.bf16.msra.mxu1 %v5504_v30  ;;  %v5588_v30 = vld [vmem:[%s6017_s11 + $0x5c0] ss:$8 sps:$4 sm:$0xff]  }
 0x171   : > { %4067 = vmatpush1.bf16.msra.mxu0 %v5507_v37  ;;  %3724 = vmatprep.subr.bf16.mxu1 %v5512_v40  ;;  %v5591_v37 = vld [vmem:[%s6017_s11 + $0xdc0] ss:$8 sps:$4 sm:$0xff]   ;;  %v5596_v40 = vld [vmem:[%s6017_s11 + $0x5d4] ss:$8 sps:$4 sm:$0xff]  }
 0x172   : > { %4068 = vmatprep.subr.bf16.mxu0 %v5515_v41  ;;  %v5599_v41 = vld [vmem:[%s6017_s11 + $0xdd4] ss:$8 sps:$4 sm:$0xff]  }
 0x174   : > { %3725 = vmatpush1.bf16.msra.mxu1 %v5510_v44  ;;  %v5594_v44 = vld [vmem:[%s6017_s11 + $0x5d0] ss:$8 sps:$4 sm:$0xff]  }
 0x175   : > { %4069 = vmatpush1.bf16.msra.mxu0 %v5513_v28  ;;  %3737 = vmatprep.subr.bf16.mxu1 %v5518_v31  ;;  %v5597_v28 = vld [vmem:[%s6017_s11 + $0xdd0] ss:$8 sps:$4 sm:$0xff]   ;;  %v5602_v31 = vld [vmem:[%s6017_s11 + $0x5e4] ss:$8 sps:$4 sm:$0xff]  }
 0x176   : > { %4081 = vmatprep.subr.bf16.mxu0 %v5521_v34  ;;  %v5605_v34 = vld [vmem:[%s6017_s11 + $0xde4] ss:$8 sps:$4 sm:$0xff]  }
 0x177   : > { %3727 = vmatmul.mubr.bf16.vlgmr.msra.gmra.mrb[0].mxu1 %v4371_v48  ;;  %v5600_v48 = vld [vmem:[%s6017_s11 + $0x5e0] ss:$8 sps:$4 sm:$0xff]  }
 0x178   : > { %4071 = vmatmul.mubr.bf16.vlgmr.msra.gmra.mrb[0].mxu0 %v4387_v49  ;;  %3738 = vmatpush1.bf16.msra.mxu1 %v5516_v50  ;;  %v5603_v49 = vld [vmem:[%s6017_s11 + $0xde0] ss:$8 sps:$4 sm:$0xff]   ;;  %v5608_v50 = vld [vmem:[%s6017_s11 + $0x5f4] ss:$8 sps:$4 sm:$0xff]  }
 0x179   : > { %4082 = vmatpush1.bf16.msra.mxu0 %v5519_v51  ;;  %3739 = vmatprep.subr.bf16.mxu1 %v5524_v52  ;;  %v5611_v51 = vld [vmem:[%s6017_s11 + $0xdf4] ss:$8 sps:$4 sm:$0xff]   ;;  %v5606_v52 = vld [vmem:[%s6017_s11 + $0x5f0] ss:$8 sps:$4 sm:$0xff]  }
 0x17a   : > { %4083 = vmatprep.subr.bf16.mxu0 %v5527_v53  ;;  %3769 = vmatprep.mubr.bf16.mxu1 %v4374_v54  ;;  %v5609_v53 = vld [vmem:[%s6017_s11 + $0xdf0] ss:$8 sps:$4 sm:$0xff]   ;;  %v5614_v54 = vld [vmem:[%s6017_s11 + $0x604] ss:$8 sps:$4 sm:$0xff]  }
 0x17b   : > { %4113 = vmatprep.mubr.bf16.mxu0 %v4390_v38  ;;  %v5617_v38 = vld [vmem:[%s6017_s11 + $0xe04] ss:$8 sps:$4 sm:$0xff]  }
 0x17c   : > { %3740 = vmatpush1.bf16.msra.mxu1 %v5522_v39  ;;  %v6560_v39 = vld [vmem:[%s6772_s0 + $0x30] sm:$0xff] }
 0x17d   : > { %4084 = vmatpush1.bf16.msra.mxu0 %v5525_v42  ;;  %3741 = vmatprep.subr.bf16.mxu1 %v5530_v43  ;;  %v4373_v42 = vcombine.low %v6468_v35, %v6473_v45  ;;  %v4389_v43 = vcombine.low %v6478_v46, %v6483_v47  ;;  %v5612_v35 = vld [vmem:[%s6017_s11 + $0x600] ss:$8 sps:$4 sm:$0xff]   ;;  %v5620_v46 = vld [vmem:[%s6017_s11 + $0x614] ss:$8 sps:$4 sm:$0xff]  }
 0x17e   : > { %4085 = vmatprep.subr.bf16.mxu0 %v5533_v55  ;;  %v6569_v55 = vld [vmem:[%s6772_s0 + $0xb0] sm:$0xff]  ;;  %v5615_v45 = vld [vmem:[%s6017_s11 + $0xe00] ss:$8 sps:$4 sm:$0xff]  }
 0x17f   : > { %v5623_v47 = vld [vmem:[%s6017_s11 + $0xe14] ss:$8 sps:$4 sm:$0xff]  }
 0x180   : > { %3742 = vmatpush1.bf16.msra.mxu1 %v5528_v56  ;;  %v6574_v56 = vld [vmem:[%s6772_s0 + $0x70] sm:$0xff] }
 0x181   : > { %4086 = vmatpush1.bf16.msra.mxu0 %v5531_v57  ;;  %3743 = vmatprep.subr.bf16.mxu1 %v5536_v58  ;;  %v6579_v57 = vld [vmem:[%s6772_s0 + $0xf0] sm:$0xff]  ;;  %v4376_v58 = vcombine.high %v6560_v39, %v6569_v55 }
 0x182   : > { %4087 = vmatprep.subr.bf16.mxu0 %v5539_v59  ;;  %v4392_v59 = vcombine.high %v6574_v56, %v6579_v57 }
 0x184   : > { %3744 = vmatpush1.bf16.msra.mxu1 %v5534_v60  ;;  %v5618_v60 = vld [vmem:[%s6017_s11 + $0x610] ss:$8 sps:$4 sm:$0xff]  }
 0x185   : > { %4088 = vmatpush1.bf16.msra.mxu0 %v5537_v61  ;;  %3745 = vmatprep.subr.bf16.mxu1 %v5542_v62  ;;  %v5621_v61 = vld [vmem:[%s6017_s11 + $0xe10] ss:$8 sps:$4 sm:$0xff]   ;;  %v5626_v62 = vld [vmem:[%s6017_s11 + $0x624] ss:$8 sps:$4 sm:$0xff]  }
 0x186   : > { %4089 = vmatprep.subr.bf16.mxu0 %v5545_v63  ;;  %v5629_v63 = vld [vmem:[%s6017_s11 + $0xe24] ss:$8 sps:$4 sm:$0xff]  }
 0x188   : > { %3746 = vmatpush1.bf16.msra.mxu1 %v5540_v0  ;;  %v5624_v0 = vld [vmem:[%s6017_s11 + $0x620] ss:$8 sps:$4 sm:$0xff]  }
 0x189   : > { %4090 = vmatpush1.bf16.msra.mxu0 %v5543_v1  ;;  %3747 = vmatprep.subr.bf16.mxu1 %v5548_v2  ;;  %v5627_v1 = vld [vmem:[%s6017_s11 + $0xe20] ss:$8 sps:$4 sm:$0xff]   ;;  %v5632_v2 = vld [vmem:[%s6017_s11 + $0x634] ss:$8 sps:$4 sm:$0xff]  }
 0x18a   : > { %4091 = vmatprep.subr.bf16.mxu0 %v5551_v3  ;;  %v5635_v3 = vld [vmem:[%s6017_s11 + $0xe34] ss:$8 sps:$4 sm:$0xff]  }
 0x18c   : > { %3748 = vmatpush1.bf16.msra.mxu1 %v5546_v4  ;;  %v5630_v4 = vld [vmem:[%s6017_s11 + $0x630] ss:$8 sps:$4 sm:$0xff]  }
 0x18d   : > { %4092 = vmatpush1.bf16.msra.mxu0 %v5549_v5  ;;  %3749 = vmatprep.subr.bf16.mxu1 %v5554_v6  ;;  %v5633_v5 = vld [vmem:[%s6017_s11 + $0xe30] ss:$8 sps:$4 sm:$0xff]   ;;  %v5638_v6 = vld [vmem:[%s6017_s11 + $0x644] ss:$8 sps:$4 sm:$0xff]  }
 0x18e   : > { %4093 = vmatprep.subr.bf16.mxu0 %v5557_v7  ;;  %v5641_v7 = vld [vmem:[%s6017_s11 + $0xe44] ss:$8 sps:$4 sm:$0xff]  }
 0x190   : > { %3750 = vmatpush1.bf16.msra.mxu1 %v5552_v8  ;;  %v5636_v8 = vld [vmem:[%s6017_s11 + $0x640] ss:$8 sps:$4 sm:$0xff]  }
 0x191   : > { %4094 = vmatpush1.bf16.msra.mxu0 %v5555_v9  ;;  %3751 = vmatprep.subr.bf16.mxu1 %v5560_v10  ;;  %v5639_v9 = vld [vmem:[%s6017_s11 + $0xe40] ss:$8 sps:$4 sm:$0xff]   ;;  %v5644_v10 = vld [vmem:[%s6017_s11 + $0x654] ss:$8 sps:$4 sm:$0xff]  }
 0x192   : > { %4095 = vmatprep.subr.bf16.mxu0 %v5563_v11  ;;  %v5647_v11 = vld [vmem:[%s6017_s11 + $0xe54] ss:$8 sps:$4 sm:$0xff]  }
 0x194   : > { %3752 = vmatpush1.bf16.msra.mxu1 %v5558_v12  ;;  %v5642_v12 = vld [vmem:[%s6017_s11 + $0x650] ss:$8 sps:$4 sm:$0xff]  }
 0x195   : > { %4096 = vmatpush1.bf16.msra.mxu0 %v5561_v13  ;;  %3753 = vmatprep.subr.bf16.mxu1 %v5566_v14  ;;  %v5645_v13 = vld [vmem:[%s6017_s11 + $0xe50] ss:$8 sps:$4 sm:$0xff]   ;;  %v5650_v14 = vld [vmem:[%s6017_s11 + $0x664] ss:$8 sps:$4 sm:$0xff]  }
 0x196   : > { %4097 = vmatprep.subr.bf16.mxu0 %v5569_v15  ;;  %v5653_v15 = vld [vmem:[%s6017_s11 + $0xe64] ss:$8 sps:$4 sm:$0xff]  }
 0x198   : > { %3754 = vmatpush1.bf16.msra.mxu1 %v5564_v16  ;;  %v5648_v16 = vld [vmem:[%s6017_s11 + $0x660] ss:$8 sps:$4 sm:$0xff]  }
 0x199   : > { %4098 = vmatpush1.bf16.msra.mxu0 %v5567_v17  ;;  %3755 = vmatprep.subr.bf16.mxu1 %v5572_v18  ;;  %v5651_v17 = vld [vmem:[%s6017_s11 + $0xe60] ss:$8 sps:$4 sm:$0xff]   ;;  %v5656_v18 = vld [vmem:[%s6017_s11 + $0x674] ss:$8 sps:$4 sm:$0xff]  }
 0x19a   : > { %4099 = vmatprep.subr.bf16.mxu0 %v5575_v19  ;;  %v5659_v19 = vld [vmem:[%s6017_s11 + $0xe74] ss:$8 sps:$4 sm:$0xff]  }
 0x19c   : > { %3756 = vmatpush1.bf16.msra.mxu1 %v5570_v20  ;;  %v5654_v20 = vld [vmem:[%s6017_s11 + $0x670] ss:$8 sps:$4 sm:$0xff]  }
 0x19d   : > { %4100 = vmatpush1.bf16.msra.mxu0 %v5573_v21  ;;  %3757 = vmatprep.subr.bf16.mxu1 %v5578_v22  ;;  %v5657_v21 = vld [vmem:[%s6017_s11 + $0xe70] ss:$8 sps:$4 sm:$0xff]   ;;  %v5662_v22 = vld [vmem:[%s6017_s11 + $0x684] ss:$8 sps:$4 sm:$0xff]  }
 0x19e   : > { %4101 = vmatprep.subr.bf16.mxu0 %v5581_v23  ;;  %v5665_v23 = vld [vmem:[%s6017_s11 + $0xe84] ss:$8 sps:$4 sm:$0xff]  }
 0x1a0   : > { %3758 = vmatpush1.bf16.msra.mxu1 %v5576_v26  ;;  %v5660_v26 = vld [vmem:[%s6017_s11 + $0x680] ss:$8 sps:$4 sm:$0xff]  }
 0x1a1   : > { %4102 = vmatpush1.bf16.msra.mxu0 %v5579_v27  ;;  %3759 = vmatprep.subr.bf16.mxu1 %v5584_v32  ;;  %v5663_v27 = vld [vmem:[%s6017_s11 + $0xe80] ss:$8 sps:$4 sm:$0xff]   ;;  %v5668_v32 = vld [vmem:[%s6017_s11 + $0x694] ss:$8 sps:$4 sm:$0xff]  }
 0x1a2   : > { %4103 = vmatprep.subr.bf16.mxu0 %v5587_v33  ;;  %v5671_v33 = vld [vmem:[%s6017_s11 + $0xe94] ss:$8 sps:$4 sm:$0xff]  }
 0x1a4   : > { %3760 = vmatpush1.bf16.msra.mxu1 %v5582_v36  ;;  %v5666_v36 = vld [vmem:[%s6017_s11 + $0x690] ss:$8 sps:$4 sm:$0xff]  }
 0x1a5   : > { %4104 = vmatpush1.bf16.msra.mxu0 %v5585_v24  ;;  %3761 = vmatprep.subr.bf16.mxu1 %v5590_v25  ;;  %v5669_v24 = vld [vmem:[%s6017_s11 + $0xe90] ss:$8 sps:$4 sm:$0xff]   ;;  %v5674_v25 = vld [vmem:[%s6017_s11 + $0x6a4] ss:$8 sps:$4 sm:$0xff]  }
 0x1a6   : > { %4105 = vmatprep.subr.bf16.mxu0 %v5593_v29  ;;  %v5677_v29 = vld [vmem:[%s6017_s11 + $0xea4] ss:$8 sps:$4 sm:$0xff]  }
 0x1a8   : > { %3762 = vmatpush1.bf16.msra.mxu1 %v5588_v30  ;;  %v5672_v30 = vld [vmem:[%s6017_s11 + $0x6a0] ss:$8 sps:$4 sm:$0xff]  }
 0x1a9   : > { %4106 = vmatpush1.bf16.msra.mxu0 %v5591_v37  ;;  %3763 = vmatprep.subr.bf16.mxu1 %v5596_v40  ;;  %v5675_v37 = vld [vmem:[%s6017_s11 + $0xea0] ss:$8 sps:$4 sm:$0xff]   ;;  %v5680_v40 = vld [vmem:[%s6017_s11 + $0x6b4] ss:$8 sps:$4 sm:$0xff]  }
 0x1aa   : > { %4107 = vmatprep.subr.bf16.mxu0 %v5599_v41  ;;  %v5683_v41 = vld [vmem:[%s6017_s11 + $0xeb4] ss:$8 sps:$4 sm:$0xff]  }
 0x1ac   : > { %3764 = vmatpush1.bf16.msra.mxu1 %v5594_v44  ;;  %v5678_v44 = vld [vmem:[%s6017_s11 + $0x6b0] ss:$8 sps:$4 sm:$0xff]  }
 0x1ad   : > { %4108 = vmatpush1.bf16.msra.mxu0 %v5597_v28  ;;  %3765 = vmatprep.subr.bf16.mxu1 %v5602_v31  ;;  %v5681_v28 = vld [vmem:[%s6017_s11 + $0xeb0] ss:$8 sps:$4 sm:$0xff]   ;;  %v5686_v31 = vld [vmem:[%s6017_s11 + $0x6c4] ss:$8 sps:$4 sm:$0xff]  }
 0x1ae   : > { %4109 = vmatprep.subr.bf16.mxu0 %v5605_v34  ;;  %v5689_v34 = vld [vmem:[%s6017_s11 + $0xec4] ss:$8 sps:$4 sm:$0xff]  }
 0x1b0   : > { %3766 = vmatpush1.bf16.msra.mxu1 %v5600_v48  ;;  %v5684_v48 = vld [vmem:[%s6017_s11 + $0x6c0] ss:$8 sps:$4 sm:$0xff]  }
 0x1b1   : > { %4110 = vmatpush1.bf16.msra.mxu0 %v5603_v49  ;;  %3767 = vmatprep.subr.bf16.mxu1 %v5608_v50  ;;  %v5687_v49 = vld [vmem:[%s6017_s11 + $0xec0] ss:$8 sps:$4 sm:$0xff]   ;;  %v5692_v50 = vld [vmem:[%s6017_s11 + $0x6d4] ss:$8 sps:$4 sm:$0xff]  }
 0x1b2   : > { %4111 = vmatprep.subr.bf16.mxu0 %v5611_v51  ;;  %v5695_v51 = vld [vmem:[%s6017_s11 + $0xed4] ss:$8 sps:$4 sm:$0xff]  }
 0x1b4   : > { %3768 = vmatpush1.bf16.msra.mxu1 %v5606_v52  ;;  %v5690_v52 = vld [vmem:[%s6017_s11 + $0x6d0] ss:$8 sps:$4 sm:$0xff]  }
 0x1b5   : > { %4112 = vmatpush1.bf16.msra.mxu0 %v5609_v53  ;;  %3780 = vmatprep.subr.bf16.mxu1 %v5614_v54  ;;  %v5693_v53 = vld [vmem:[%s6017_s11 + $0xed0] ss:$8 sps:$4 sm:$0xff]   ;;  %v5698_v54 = vld [vmem:[%s6017_s11 + $0x6e4] ss:$8 sps:$4 sm:$0xff]  }
 0x1b6   : > { %4124 = vmatprep.subr.bf16.mxu0 %v5617_v38  ;;  %v5701_v38 = vld [vmem:[%s6017_s11 + $0xee4] ss:$8 sps:$4 sm:$0xff]  }
 0x1b7   : > { %3770 = vmatmul.mubr.bf16.vlgmr.msra.gmra.mrb[0].mxu1 %v4373_v42  ;;  %v5696_v42 = vld [vmem:[%s6017_s11 + $0x6e0] ss:$8 sps:$4 sm:$0xff]  }
 0x1b8   : > { %4114 = vmatmul.mubr.bf16.vlgmr.msra.gmra.mrb[0].mxu0 %v4389_v43  ;;  %3781 = vmatpush1.bf16.msra.mxu1 %v5612_v35  ;;  %v5699_v43 = vld [vmem:[%s6017_s11 + $0xee0] ss:$8 sps:$4 sm:$0xff]   ;;  %v5704_v35 = vld [vmem:[%s6017_s11 + $0x6f4] ss:$8 sps:$4 sm:$0xff]  }
 0x1b9   : > { %4125 = vmatpush1.bf16.msra.mxu0 %v5615_v45  ;;  %3782 = vmatprep.subr.bf16.mxu1 %v5620_v46  ;;  %v5707_v45 = vld [vmem:[%s6017_s11 + $0xef4] ss:$8 sps:$4 sm:$0xff]   ;;  %v5702_v46 = vld [vmem:[%s6017_s11 + $0x6f0] ss:$8 sps:$4 sm:$0xff]  }
 0x1ba   : > { %4126 = vmatprep.subr.bf16.mxu0 %v5623_v47  ;;  %3812 = vmatprep.mubr.bf16.mxu1 %v4376_v58  ;;  %v5705_v47 = vld [vmem:[%s6017_s11 + $0xef0] ss:$8 sps:$4 sm:$0xff]   ;;  %v5710_v58 = vld [vmem:[%s6017_s11 + $0x704] ss:$8 sps:$4 sm:$0xff]  }
 0x1bb   : > { %4156 = vmatprep.mubr.bf16.mxu0 %v4392_v59  ;;  %v5713_v59 = vld [vmem:[%s6017_s11 + $0xf04] ss:$8 sps:$4 sm:$0xff]  }
 0x1bc   : > { %3783 = vmatpush1.bf16.msra.mxu1 %v5618_v60  ;;  %v6652_v60 = vld [vmem:[%s6772_s0 + $0x38] sm:$0xff] }
 0x1bd   : > { %4127 = vmatpush1.bf16.msra.mxu0 %v5621_v61  ;;  %3784 = vmatprep.subr.bf16.mxu1 %v5626_v62  ;;  %v4375_v61 = vcombine.low %v6560_v39, %v6569_v55  ;;  %v4391_v62 = vcombine.low %v6574_v56, %v6579_v57  ;;  %v5708_v39 = vld [vmem:[%s6017_s11 + $0x700] ss:$8 sps:$4 sm:$0xff]   ;;  %v5716_v56 = vld [vmem:[%s6017_s11 + $0x714] ss:$8 sps:$4 sm:$0xff]  }
 0x1be   : > { %4128 = vmatprep.subr.bf16.mxu0 %v5629_v63  ;;  %v6661_v63 = vld [vmem:[%s6772_s0 + $0xb8] sm:$0xff]  ;;  %v5711_v55 = vld [vmem:[%s6017_s11 + $0xf00] ss:$8 sps:$4 sm:$0xff]  }
 0x1bf   : > { %v5719_v57 = vld [vmem:[%s6017_s11 + $0xf14] ss:$8 sps:$4 sm:$0xff]  }
 0x1c0   : > { %3785 = vmatpush1.bf16.msra.mxu1 %v5624_v0  ;;  %v6666_v0 = vld [vmem:[%s6772_s0 + $0x78] sm:$0xff] }
 0x1c1   : > { %4129 = vmatpush1.bf16.msra.mxu0 %v5627_v1  ;;  %3786 = vmatprep.subr.bf16.mxu1 %v5632_v2  ;;  %v6671_v1 = vld [vmem:[%s6772_s0 + $0xf8] sm:$0xff]  ;;  %v4378_v2 = vcombine.high %v6652_v60, %v6661_v63 }
 0x1c2   : > { %4130 = vmatprep.subr.bf16.mxu0 %v5635_v3  ;;  %v4394_v3 = vcombine.high %v6666_v0, %v6671_v1 }
 0x1c4   : > { %3787 = vmatpush1.bf16.msra.mxu1 %v5630_v4  ;;  %v5714_v4 = vld [vmem:[%s6017_s11 + $0x710] ss:$8 sps:$4 sm:$0xff]  }
 0x1c5   : > { %4131 = vmatpush1.bf16.msra.mxu0 %v5633_v5  ;;  %3788 = vmatprep.subr.bf16.mxu1 %v5638_v6  ;;  %v5717_v5 = vld [vmem:[%s6017_s11 + $0xf10] ss:$8 sps:$4 sm:$0xff]   ;;  %v5722_v6 = vld [vmem:[%s6017_s11 + $0x724] ss:$8 sps:$4 sm:$0xff]  }
 0x1c6   : > { %4132 = vmatprep.subr.bf16.mxu0 %v5641_v7  ;;  %v5725_v7 = vld [vmem:[%s6017_s11 + $0xf24] ss:$8 sps:$4 sm:$0xff]  }
 0x1c8   : > { %3789 = vmatpush1.bf16.msra.mxu1 %v5636_v8  ;;  %v5720_v8 = vld [vmem:[%s6017_s11 + $0x720] ss:$8 sps:$4 sm:$0xff]  }
 0x1c9   : > { %4133 = vmatpush1.bf16.msra.mxu0 %v5639_v9  ;;  %3790 = vmatprep.subr.bf16.mxu1 %v5644_v10  ;;  %v5723_v9 = vld [vmem:[%s6017_s11 + $0xf20] ss:$8 sps:$4 sm:$0xff]   ;;  %v5728_v10 = vld [vmem:[%s6017_s11 + $0x734] ss:$8 sps:$4 sm:$0xff]  }
 0x1ca   : > { %4134 = vmatprep.subr.bf16.mxu0 %v5647_v11  ;;  %v5731_v11 = vld [vmem:[%s6017_s11 + $0xf34] ss:$8 sps:$4 sm:$0xff]  }
 0x1cc   : > { %3791 = vmatpush1.bf16.msra.mxu1 %v5642_v12  ;;  %v5726_v12 = vld [vmem:[%s6017_s11 + $0x730] ss:$8 sps:$4 sm:$0xff]  }
 0x1cd   : > { %4135 = vmatpush1.bf16.msra.mxu0 %v5645_v13  ;;  %3792 = vmatprep.subr.bf16.mxu1 %v5650_v14  ;;  %v5729_v13 = vld [vmem:[%s6017_s11 + $0xf30] ss:$8 sps:$4 sm:$0xff]   ;;  %v5734_v14 = vld [vmem:[%s6017_s11 + $0x744] ss:$8 sps:$4 sm:$0xff]  }
 0x1ce   : > { %4136 = vmatprep.subr.bf16.mxu0 %v5653_v15  ;;  %v5737_v15 = vld [vmem:[%s6017_s11 + $0xf44] ss:$8 sps:$4 sm:$0xff]  }
 0x1d0   : > { %3793 = vmatpush1.bf16.msra.mxu1 %v5648_v16  ;;  %v5732_v16 = vld [vmem:[%s6017_s11 + $0x740] ss:$8 sps:$4 sm:$0xff]  }
 0x1d1   : > { %4137 = vmatpush1.bf16.msra.mxu0 %v5651_v17  ;;  %3794 = vmatprep.subr.bf16.mxu1 %v5656_v18  ;;  %v5735_v17 = vld [vmem:[%s6017_s11 + $0xf40] ss:$8 sps:$4 sm:$0xff]   ;;  %v5740_v18 = vld [vmem:[%s6017_s11 + $0x754] ss:$8 sps:$4 sm:$0xff]  }
 0x1d2   : > { %4138 = vmatprep.subr.bf16.mxu0 %v5659_v19  ;;  %v5743_v19 = vld [vmem:[%s6017_s11 + $0xf54] ss:$8 sps:$4 sm:$0xff]  }
 0x1d4   : > { %3795 = vmatpush1.bf16.msra.mxu1 %v5654_v20  ;;  %v5738_v20 = vld [vmem:[%s6017_s11 + $0x750] ss:$8 sps:$4 sm:$0xff]  }
 0x1d5   : > { %4139 = vmatpush1.bf16.msra.mxu0 %v5657_v21  ;;  %3796 = vmatprep.subr.bf16.mxu1 %v5662_v22  ;;  %v5741_v21 = vld [vmem:[%s6017_s11 + $0xf50] ss:$8 sps:$4 sm:$0xff]   ;;  %v5746_v22 = vld [vmem:[%s6017_s11 + $0x764] ss:$8 sps:$4 sm:$0xff]  }
 0x1d6   : > { %4140 = vmatprep.subr.bf16.mxu0 %v5665_v23  ;;  %v5749_v23 = vld [vmem:[%s6017_s11 + $0xf64] ss:$8 sps:$4 sm:$0xff]  }
 0x1d8   : > { %3797 = vmatpush1.bf16.msra.mxu1 %v5660_v26  ;;  %v5744_v26 = vld [vmem:[%s6017_s11 + $0x760] ss:$8 sps:$4 sm:$0xff]  }
 0x1d9   : > { %4141 = vmatpush1.bf16.msra.mxu0 %v5663_v27  ;;  %3798 = vmatprep.subr.bf16.mxu1 %v5668_v32  ;;  %v5747_v27 = vld [vmem:[%s6017_s11 + $0xf60] ss:$8 sps:$4 sm:$0xff]   ;;  %v5752_v32 = vld [vmem:[%s6017_s11 + $0x774] ss:$8 sps:$4 sm:$0xff]  }
 0x1da   : > { %4142 = vmatprep.subr.bf16.mxu0 %v5671_v33  ;;  %v5755_v33 = vld [vmem:[%s6017_s11 + $0xf74] ss:$8 sps:$4 sm:$0xff]  }
 0x1dc   : > { %3799 = vmatpush1.bf16.msra.mxu1 %v5666_v36  ;;  %v5750_v36 = vld [vmem:[%s6017_s11 + $0x770] ss:$8 sps:$4 sm:$0xff]  }
 0x1dd   : > { %4143 = vmatpush1.bf16.msra.mxu0 %v5669_v24  ;;  %3800 = vmatprep.subr.bf16.mxu1 %v5674_v25  ;;  %v5753_v24 = vld [vmem:[%s6017_s11 + $0xf70] ss:$8 sps:$4 sm:$0xff]   ;;  %v5758_v25 = vld [vmem:[%s6017_s11 + $0x784] ss:$8 sps:$4 sm:$0xff]  }
 0x1de   : > { %4144 = vmatprep.subr.bf16.mxu0 %v5677_v29  ;;  %v5761_v29 = vld [vmem:[%s6017_s11 + $0xf84] ss:$8 sps:$4 sm:$0xff]  }
 0x1e0   : > { %3801 = vmatpush1.bf16.msra.mxu1 %v5672_v30  ;;  %v5756_v30 = vld [vmem:[%s6017_s11 + $0x780] ss:$8 sps:$4 sm:$0xff]  }
 0x1e1   : > { %4145 = vmatpush1.bf16.msra.mxu0 %v5675_v37  ;;  %3802 = vmatprep.subr.bf16.mxu1 %v5680_v40  ;;  %v5759_v37 = vld [vmem:[%s6017_s11 + $0xf80] ss:$8 sps:$4 sm:$0xff]   ;;  %v5764_v40 = vld [vmem:[%s6017_s11 + $0x794] ss:$8 sps:$4 sm:$0xff]  }
 0x1e2   : > { %4146 = vmatprep.subr.bf16.mxu0 %v5683_v41  ;;  %v5767_v41 = vld [vmem:[%s6017_s11 + $0xf94] ss:$8 sps:$4 sm:$0xff]  }
 0x1e4   : > { %3803 = vmatpush1.bf16.msra.mxu1 %v5678_v44  ;;  %v5762_v44 = vld [vmem:[%s6017_s11 + $0x790] ss:$8 sps:$4 sm:$0xff]  }
 0x1e5   : > { %4147 = vmatpush1.bf16.msra.mxu0 %v5681_v28  ;;  %3804 = vmatprep.subr.bf16.mxu1 %v5686_v31  ;;  %v5765_v28 = vld [vmem:[%s6017_s11 + $0xf90] ss:$8 sps:$4 sm:$0xff]   ;;  %v5770_v31 = vld [vmem:[%s6017_s11 + $0x7a4] ss:$8 sps:$4 sm:$0xff]  }
 0x1e6   : > { %4148 = vmatprep.subr.bf16.mxu0 %v5689_v34  ;;  %v5773_v34 = vld [vmem:[%s6017_s11 + $0xfa4] ss:$8 sps:$4 sm:$0xff]  }
 0x1e8   : > { %3805 = vmatpush1.bf16.msra.mxu1 %v5684_v48  ;;  %v5768_v48 = vld [vmem:[%s6017_s11 + $0x7a0] ss:$8 sps:$4 sm:$0xff]  }
 0x1e9   : > { %4149 = vmatpush1.bf16.msra.mxu0 %v5687_v49  ;;  %3806 = vmatprep.subr.bf16.mxu1 %v5692_v50  ;;  %v5771_v49 = vld [vmem:[%s6017_s11 + $0xfa0] ss:$8 sps:$4 sm:$0xff]   ;;  %v5776_v50 = vld [vmem:[%s6017_s11 + $0x7b4] ss:$8 sps:$4 sm:$0xff]  }
 0x1ea   : > { %4150 = vmatprep.subr.bf16.mxu0 %v5695_v51  ;;  %v5779_v51 = vld [vmem:[%s6017_s11 + $0xfb4] ss:$8 sps:$4 sm:$0xff]  }
 0x1ec   : > { %3807 = vmatpush1.bf16.msra.mxu1 %v5690_v52  ;;  %v5774_v52 = vld [vmem:[%s6017_s11 + $0x7b0] ss:$8 sps:$4 sm:$0xff]  }
 0x1ed   : > { %4151 = vmatpush1.bf16.msra.mxu0 %v5693_v53  ;;  %3808 = vmatprep.subr.bf16.mxu1 %v5698_v54  ;;  %v5777_v53 = vld [vmem:[%s6017_s11 + $0xfb0] ss:$8 sps:$4 sm:$0xff]   ;;  %v5782_v54 = vld [vmem:[%s6017_s11 + $0x7c4] ss:$8 sps:$4 sm:$0xff]  }
 0x1ee   : > { %4152 = vmatprep.subr.bf16.mxu0 %v5701_v38  ;;  %v5785_v38 = vld [vmem:[%s6017_s11 + $0xfc4] ss:$8 sps:$4 sm:$0xff]  }
 0x1f0   : > { %3809 = vmatpush1.bf16.msra.mxu1 %v5696_v42  ;;  %v5780_v42 = vld [vmem:[%s6017_s11 + $0x7c0] ss:$8 sps:$4 sm:$0xff]  }
 0x1f1   : > { %4153 = vmatpush1.bf16.msra.mxu0 %v5699_v43  ;;  %3810 = vmatprep.subr.bf16.mxu1 %v5704_v35  ;;  %v5783_v43 = vld [vmem:[%s6017_s11 + $0xfc0] ss:$8 sps:$4 sm:$0xff]   ;;  %v5788_v35 = vld [vmem:[%s6017_s11 + $0x7d4] ss:$8 sps:$4 sm:$0xff]  }
 0x1f2   : > { %4154 = vmatprep.subr.bf16.mxu0 %v5707_v45  ;;  %v5791_v45 = vld [vmem:[%s6017_s11 + $0xfd4] ss:$8 sps:$4 sm:$0xff]  }
 0x1f4   : > { %3811 = vmatpush1.bf16.msra.mxu1 %v5702_v46  ;;  %v5786_v46 = vld [vmem:[%s6017_s11 + $0x7d0] ss:$8 sps:$4 sm:$0xff]  }
 0x1f5   : > { %4155 = vmatpush1.bf16.msra.mxu0 %v5705_v47  ;;  %3823 = vmatprep.subr.bf16.mxu1 %v5710_v58  ;;  %v5789_v47 = vld [vmem:[%s6017_s11 + $0xfd0] ss:$8 sps:$4 sm:$0xff]   ;;  %v5794_v58 = vld [vmem:[%s6017_s11 + $0x7e4] ss:$8 sps:$4 sm:$0xff]  }
 0x1f6   : > { %4167 = vmatprep.subr.bf16.mxu0 %v5713_v59  ;;  %v5797_v59 = vld [vmem:[%s6017_s11 + $0xfe4] ss:$8 sps:$4 sm:$0xff]  }
 0x1f7   : > { %3813 = vmatmul.mubr.bf16.vlgmr.msra.gmra.mrb[0].mxu1 %v4375_v61  ;;  %v5792_v61 = vld [vmem:[%s6017_s11 + $0x7e0] ss:$8 sps:$4 sm:$0xff]  }
 0x1f8   : > { %4157 = vmatmul.mubr.bf16.vlgmr.msra.gmra.mrb[0].mxu0 %v4391_v62  ;;  %3824 = vmatpush1.bf16.msra.mxu1 %v5708_v39  ;;  %v5795_v62 = vld [vmem:[%s6017_s11 + $0xfe0] ss:$8 sps:$4 sm:$0xff]   ;;  %v5800_v39 = vld [vmem:[%s6017_s11 + $0x7f4] ss:$8 sps:$4 sm:$0xff]  }
 0x1f9   : > { %4168 = vmatpush1.bf16.msra.mxu0 %v5711_v55  ;;  %3825 = vmatprep.subr.bf16.mxu1 %v5716_v56  ;;  %v5803_v55 = vld [vmem:[%s6017_s11 + $0xff4] ss:$8 sps:$4 sm:$0xff]   ;;  %v5798_v56 = vld [vmem:[%s6017_s11 + $0x7f0] ss:$8 sps:$4 sm:$0xff]  }
 0x1fa   : > { %4169 = vmatprep.subr.bf16.mxu0 %v5719_v57  ;;  %3855 = vmatprep.mubr.bf16.mxu1 %v4378_v2  ;;  %v5801_v57 = vld [vmem:[%s6017_s11 + $0xff0] ss:$8 sps:$4 sm:$0xff]   ;;  %v4377_v2 = vcombine.low %v6652_v60, %v6661_v63 }
 0x1fb   : > { %4199 = vmatprep.mubr.bf16.mxu0 %v4394_v3  ;;  %v4393_v3 = vcombine.low %v6666_v0, %v6671_v1 }
 0x1fc   : > { %3826 = vmatpush1.bf16.msra.mxu1 %v5714_v4  ;;  %v792_v4 = vlaneseq }
 0x1fd   : > { %4170 = vmatpush1.bf16.msra.mxu0 %v5717_v5  ;;  %3827 = vmatprep.subr.bf16.mxu1 %v5722_v6 }
 0x1fe   : > { %4171 = vmatprep.subr.bf16.mxu0 %v5725_v7  ;;  %v793_v5 = vshrl.u32 %v792_v4, 7  ;;  %v790_v7 = vld [vmem:[%s242_s9] sm:$0x3] }
 0x200   : > { %3828 = vmatpush1.bf16.msra.mxu1 %v5720_v8  ;;  %v794_v6 = vsub.s32 0, %v793_v5  ;;  %v798_v60 = vsub.s32 1, %v793_v5 }
 0x201   : > { %4172 = vmatpush1.bf16.msra.mxu0 %v5723_v9  ;;  %3829 = vmatprep.subr.bf16.mxu1 %v5728_v10 }
 0x202   : > { %4173 = vmatprep.subr.bf16.mxu0 %v5731_v11  ;;  %v795_v63 = vrot.slane %v790_v7, %v794_v6  ;;  %v799_v8 = vrot.slane %v790_v7, %v798_v60 }
 0x204   : > { %3830 = vmatpush1.bf16.msra.mxu1 %v5726_v12 }
 0x205   : > { %4174 = vmatpush1.bf16.msra.mxu0 %v5729_v13  ;;  %3831 = vmatprep.subr.bf16.mxu1 %v5734_v14 }
 0x206   : > { %4175 = vmatprep.subr.bf16.mxu0 %v5737_v15 }
 0x208   : > { %3832 = vmatpush1.bf16.msra.mxu1 %v5732_v16 }
 0x209   : > { %4176 = vmatpush1.bf16.msra.mxu0 %v5735_v17  ;;  %3833 = vmatprep.subr.bf16.mxu1 %v5740_v18 }
 0x20a   : > { %4177 = vmatprep.subr.bf16.mxu0 %v5743_v19 }
 0x20c   : > { %3834 = vmatpush1.bf16.msra.mxu1 %v5738_v20 }
 0x20d   : > { %4178 = vmatpush1.bf16.msra.mxu0 %v5741_v21  ;;  %3835 = vmatprep.subr.bf16.mxu1 %v5746_v22 }
 0x20e   : > { %4179 = vmatprep.subr.bf16.mxu0 %v5749_v23 }
 0x210   : > { %3836 = vmatpush1.bf16.msra.mxu1 %v5744_v26 }
 0x211   : > { %4180 = vmatpush1.bf16.msra.mxu0 %v5747_v27  ;;  %3837 = vmatprep.subr.bf16.mxu1 %v5752_v32 }
 0x212   : > { %4181 = vmatprep.subr.bf16.mxu0 %v5755_v33 }
 0x214   : > { %3838 = vmatpush1.bf16.msra.mxu1 %v5750_v36 }
 0x215   : > { %4182 = vmatpush1.bf16.msra.mxu0 %v5753_v24  ;;  %3839 = vmatprep.subr.bf16.mxu1 %v5758_v25 }
 0x216   : > { %4183 = vmatprep.subr.bf16.mxu0 %v5761_v29 }
 0x218   : > { %3840 = vmatpush1.bf16.msra.mxu1 %v5756_v30 }
 0x219   : > { %4184 = vmatpush1.bf16.msra.mxu0 %v5759_v37  ;;  %3841 = vmatprep.subr.bf16.mxu1 %v5764_v40 }
 0x21a   : > { %4185 = vmatprep.subr.bf16.mxu0 %v5767_v41 }
 0x21c   : > { %3842 = vmatpush1.bf16.msra.mxu1 %v5762_v44 }
 0x21d   : > { %4186 = vmatpush1.bf16.msra.mxu0 %v5765_v28  ;;  %3843 = vmatprep.subr.bf16.mxu1 %v5770_v31 }
 0x21e   : > { %4187 = vmatprep.subr.bf16.mxu0 %v5773_v34 }
 0x220   : > { %3844 = vmatpush1.bf16.msra.mxu1 %v5768_v48 }
 0x221   : > { %4188 = vmatpush1.bf16.msra.mxu0 %v5771_v49  ;;  %3845 = vmatprep.subr.bf16.mxu1 %v5776_v50 }
 0x222   : > { %4189 = vmatprep.subr.bf16.mxu0 %v5779_v51 }
 0x224   : > { %3846 = vmatpush1.bf16.msra.mxu1 %v5774_v52 }
 0x225   : > { %4190 = vmatpush1.bf16.msra.mxu0 %v5777_v53  ;;  %3847 = vmatprep.subr.bf16.mxu1 %v5782_v54 }
 0x226   : > { %4191 = vmatprep.subr.bf16.mxu0 %v5785_v38 }
 0x228   : > { %3848 = vmatpush1.bf16.msra.mxu1 %v5780_v42 }
 0x229   : > { %4192 = vmatpush1.bf16.msra.mxu0 %v5783_v43  ;;  %3849 = vmatprep.subr.bf16.mxu1 %v5788_v35 }
 0x22a   : > { %4193 = vmatprep.subr.bf16.mxu0 %v5791_v45 }
 0x22c   : > { %3850 = vmatpush1.bf16.msra.mxu1 %v5786_v46 }
 0x22d   : > { %4194 = vmatpush1.bf16.msra.mxu0 %v5789_v47  ;;  %3851 = vmatprep.subr.bf16.mxu1 %v5794_v58 }
 0x22e   : > { %4195 = vmatprep.subr.bf16.mxu0 %v5797_v59 }
 0x230   : > { %3852 = vmatpush1.bf16.msra.mxu1 %v5792_v61 }
 0x231   : > { %4196 = vmatpush1.bf16.msra.mxu0 %v5795_v62  ;;  %3853 = vmatprep.subr.bf16.mxu1 %v5800_v39 }
 0x232   : > { %4197 = vmatprep.subr.bf16.mxu0 %v5803_v55 }
 0x234   : > { %3854 = vmatpush1.bf16.msra.mxu1 %v5798_v56 }
 0x235   : > { %4198 = vmatpush1.bf16.msra.mxu0 %v5801_v57 }
 0x237   : > { %3856 = vmatmul.mubr.bf16.vlgmr.msra.gmra.mrb[0].mxu1 %v4377_v2 }
 0x238   : > { %4200 = vmatmul.mubr.bf16.vlgmr.msra.gmra.mrb[0].mxu0 %v4393_v3 }
 0x30a   : > { %v3857_v0 = vpop.f32.mrb[0].mxu1 }
 0x30b   : > { %v4201_v1 = vpop.f32.mrb[0].mxu0  ;;  %v4914_v9 = vadd.f32 %v3857_v0, %v795_v63  ;;  %v3859_v10 = vpop.f32.mrb[1].mxu1 }
 0x30c   : > { %v4203_v11 = vpop.f32.mrb[1].mxu0  ;;  %v4916_v12 = vadd.f32 %v3859_v10, %v799_v8  ;;  %v3861_v13 = vpop.f32.mrb[2].mxu1 }
 0x30d   : > { %v4205_v14 = vpop.f32.mrb[2].mxu0  ;;  %v4915_v15 = vadd.f32 %v4914_v9, %v4201_v1  ;;  %v4918_v16 = vadd.f32 %v3861_v13, %v795_v63  ;;  %v3863_v17 = vpop.f32.mrb[3].mxu1 }
 0x30e   : > { %v4207_v18 = vpop.f32.mrb[3].mxu0  ;;  %v4917_v19 = vadd.f32 %v4916_v12, %v4203_v11  ;;  %v4920_v20 = vadd.f32 %v3863_v17, %v799_v8  ;;  %4224 = sbr.rel (!%p6781_p9) target bundleno = 797 (0x31d), region = 40 }
 0x30f   : > { %v4210_v21 = vmax.f32 %v4915_v15, 0.0  ;;  %v4919_v22 = vadd.f32 %v4918_v16, %v4205_v14 }
 0x310   : > { %v4211_v23 = vmax.f32 %v4917_v19, 0.0  ;;  %v4921_v26 = vadd.f32 %v4920_v20, %v4207_v18 }
 0x311   : > { %4214 = vst [vmem:[%s230_s23] sm:$0xff] %v4210_v21  ;;  %v4212_v27 = vmax.f32 %v4919_v22, 0.0 }
 0x312   : > { %4215 = vst [vmem:[%s230_s23 + $0x8] sm:$0xff] %v4211_v23  ;;  %v4213_v32 = vmax.f32 %v4921_v26, 0.0 }
 0x313   : > { %4216 = vst [vmem:[%s230_s23 + $0x10] sm:$0xff] %v4212_v27 }
 0x314   : > { %4217 = vst [vmem:[%s230_s23 + $0x18] sm:$0xff] %v4213_v32 }
 0x318   : > { %v4243_v33 = vld [vmem:[%s230_s23] sm:$0xff] }
 0x319   : > { %v4245_v36 = vld [vmem:[%s230_s23 + $0x8] sm:$0xff]  ;;  %4244 = vst [vmem:[%s4230_s7] sm:$0xff] %v4243_v33 }
 0x31a   : > { %v4247_v24 = vld [vmem:[%s230_s23 + $0x10] sm:$0xff]  ;;  %4246 = vst [vmem:[%s4230_s7 + $0x8] sm:$0xff] %v4245_v36 }
 0x31b   : > { %v4249_v25 = vld [vmem:[%s230_s23 + $0x18] sm:$0xff]  ;;  %4248 = vst [vmem:[%s4230_s7 + $0x80] sm:$0xff] %v4247_v24 }
 0x31c   : > { %4250 = vst [vmem:[%s4230_s7 + $0x88] sm:$0xff] %v4249_v25 }
 0x31d PF: > { %s16_s17 = sadd.s32 1, %s5884_s17   ;;  %s6782_s12 = smov %s5868_s13 }
 0x31e   : > { %p13_p11 = scmp.ge.s32.totalorder %s16_s17, 10   ;;  %s6783_s13 = smov %s5872_s14 }
 0x31f   : > { %s6784_s14 = smov %s5958_s24  ;;  %s6785_s15 = smov %s5880_s16 }
 0x320   : > { %s6786_s16 = smov %s6788_s19  ;;  %15 = sbr.rel (!%p13_p11) target bundleno = 4 (0x4), region = 101 }
 0x327   :  { %4266 = vsyncpa [#allocation3], 1 }
 0x328   :  { %4268 = vsyncpa [#allocation3 + $0x1], 1 }

// kernel: _device_forward.7
= control target key start
LH: loop header
LB: loop body
LE: loop exit
PB: predicated region body
PF: predicated region fallthrough
CT: control target
= control target key end

     0   :  { %s3550_s1 = inlined_call_operand.vmem [shape: bf16[3072,128], index: 1, kind: input, shape index: {}]   ;;  %s3551_s0 = inlined_call_operand.vmem [shape: bf16[16,3072], index: 0, kind: input, shape index: {}]   ;;  %s3552_s2 = inlined_call_operand.vmem [shape: f32[1,128], index: 2, kind: input, shape index: {}]   ;;  %s3553_s3 = inlined_call_operand.vmem [shape: f32[16,128], index: 3, kind: output, shape index: {}]  }
   0x1   :  { %v2681_v0 = vld [vmem:[%s3550_s1 + $0x40] sm:$0xff]   ;;  %v2685_v4 = vld [vmem:[%s3550_s1 + $0x48] sm:$0xff]   ;;  %v2689_v8 = vld [vmem:[%s3550_s1 + $0x50] sm:$0xff]  }
   0x2   :  { %v2682_v1 = vld [vmem:[%s3550_s1 + $0xc0] sm:$0xff]   ;;  %2417 = vmatprep.subr.bf16.mxu0 %v2681_v0  ;;  %v2686_v5 = vld [vmem:[%s3550_s1 + $0xc8] sm:$0xff]   ;;  %v2690_v9 = vld [vmem:[%s3550_s1 + $0xd0] sm:$0xff]  }
   0x3   :  { %v2683_v2 = vld [vmem:[%s3550_s1] sm:$0xff]   ;;  %2439 = vmatprep.subr.bf16.mxu1 %v2682_v1  ;;  %v2687_v6 = vld [vmem:[%s3550_s1 + $0x8] sm:$0xff]   ;;  %v2691_v10 = vld [vmem:[%s3550_s1 + $0x10] sm:$0xff]  }
   0x4   :  { %v2684_v3 = vld [vmem:[%s3550_s1 + $0x80] sm:$0xff]   ;;  %2418 = vmatpush3.bf16.msra.mxu0 %v2683_v2  ;;  %v2688_v7 = vld [vmem:[%s3550_s1 + $0x88] sm:$0xff]   ;;  %v2692_v11 = vld [vmem:[%s3550_s1 + $0x90] sm:$0xff]  }
   0x5   :  { %2440 = vmatpush3.bf16.msra.mxu1 %v2684_v3  ;;  %2419 = vmatprep.subr.bf16.mxu0 %v2685_v4  ;;  %v2693_v12 = vld [vmem:[%s3550_s1 + $0x58] sm:$0xff]   ;;  %v2697_v16 = vld [vmem:[%s3550_s1 + $0x60] sm:$0xff]   ;;  %v2701_v20 = vld [vmem:[%s3550_s1 + $0x68] sm:$0xff]  }
   0x6   :  { %2441 = vmatprep.subr.bf16.mxu1 %v2686_v5  ;;  %v2694_v13 = vld [vmem:[%s3550_s1 + $0xd8] sm:$0xff]   ;;  %v2698_v17 = vld [vmem:[%s3550_s1 + $0xe0] sm:$0xff]   ;;  %v2702_v21 = vld [vmem:[%s3550_s1 + $0xe8] sm:$0xff]  }
   0x7   :  { %v2695_v14 = vld [vmem:[%s3550_s1 + $0x18] sm:$0xff]   ;;  %v2699_v18 = vld [vmem:[%s3550_s1 + $0x20] sm:$0xff]   ;;  %v2703_v22 = vld [vmem:[%s3550_s1 + $0x28] sm:$0xff]  }
   0x8   :  { %2420 = vmatpush3.bf16.msra.mxu0 %v2687_v6  ;;  %v2696_v15 = vld [vmem:[%s3550_s1 + $0x98] sm:$0xff]   ;;  %v2700_v19 = vld [vmem:[%s3550_s1 + $0xa0] sm:$0xff]   ;;  %v2704_v23 = vld [vmem:[%s3550_s1 + $0xa8] sm:$0xff]  }
   0x9   :  { %2442 = vmatpush3.bf16.msra.mxu1 %v2688_v7  ;;  %2421 = vmatprep.subr.bf16.mxu0 %v2689_v8  ;;  %v2705_v24 = vld [vmem:[%s3550_s1 + $0x70] sm:$0xff]   ;;  %v2709_v28 = vld [vmem:[%s3550_s1 + $0x78] sm:$0xff]   ;;  %v15_v32 = vld [vmem:[%s3551_s0] sm:$0xff] }
   0xa   :  { %2443 = vmatprep.subr.bf16.mxu1 %v2690_v9  ;;  %v2706_v25 = vld [vmem:[%s3550_s1 + $0xf0] sm:$0xff]   ;;  %v2710_v29 = vld [vmem:[%s3550_s1 + $0xf8] sm:$0xff]   ;;  %v27_v33 = vld [vmem:[%s3551_s0 + $0x60] sm:$0xff] }
   0xb   :  { %v2707_v26 = vld [vmem:[%s3550_s1 + $0x30] sm:$0xff]   ;;  %v2711_v30 = vld [vmem:[%s3550_s1 + $0x38] sm:$0xff]   ;;  %v16_v34 = vld [vmem:[%s3551_s0 + $0x8] sm:$0xff]  ;;  %v2201_v35 = vcombine.low %v15_v32, %v27_v33  ;;  %v2202_v36 = vcombine.high %v15_v32, %v27_v33 }
   0xc   :  { %2422 = vmatpush3.bf16.msra.mxu0 %v2691_v10  ;;  %v2708_v27 = vld [vmem:[%s3550_s1 + $0xb0] sm:$0xff]   ;;  %v2712_v31 = vld [vmem:[%s3550_s1 + $0xb8] sm:$0xff]   ;;  %v28_v37 = vld [vmem:[%s3551_s0 + $0x68] sm:$0xff] }
   0xd   :  { %2444 = vmatpush3.bf16.msra.mxu1 %v2692_v11  ;;  %2423 = vmatprep.subr.bf16.mxu0 %v2693_v12  ;;  %v2203_v38 = vcombine.low %v16_v34, %v28_v37  ;;  %v2204_v39 = vcombine.high %v16_v34, %v28_v37  ;;  %v2713_v40 = vld [vmem:[%s3550_s1 + $0x140] sm:$0xff]   ;;  %v2717_v44 = vld [vmem:[%s3550_s1 + $0x148] sm:$0xff]   ;;  %v2721_v48 = vld [vmem:[%s3550_s1 + $0x150] sm:$0xff]  }
   0xe   :  { %2445 = vmatprep.subr.bf16.mxu1 %v2694_v13  ;;  %1734 = vmatprep.mubr.bf16.mxu0 %v2202_v36  ;;  %v2714_v41 = vld [vmem:[%s3550_s1 + $0x1c0] sm:$0xff]   ;;  %v2718_v45 = vld [vmem:[%s3550_s1 + $0x1c8] sm:$0xff]   ;;  %v2722_v49 = vld [vmem:[%s3550_s1 + $0x1d0] sm:$0xff]  }
   0xf   :  { %1775 = vmatprep.mubr.bf16.mxu1 %v2204_v39  ;;  %v2715_v42 = vld [vmem:[%s3550_s1 + $0x100] sm:$0xff]   ;;  %v2719_v46 = vld [vmem:[%s3550_s1 + $0x108] sm:$0xff]   ;;  %v2723_v50 = vld [vmem:[%s3550_s1 + $0x110] sm:$0xff]  }
  0x10   :  { %2424 = vmatpush3.bf16.msra.mxu0 %v2695_v14  ;;  %v2716_v43 = vld [vmem:[%s3550_s1 + $0x180] sm:$0xff]   ;;  %v2720_v47 = vld [vmem:[%s3550_s1 + $0x188] sm:$0xff]   ;;  %v2724_v51 = vld [vmem:[%s3550_s1 + $0x190] sm:$0xff]  }
  0x11   :  { %2446 = vmatpush3.bf16.msra.mxu1 %v2696_v15  ;;  %2425 = vmatprep.subr.bf16.mxu0 %v2697_v16  ;;  %v2725_v52 = vld [vmem:[%s3550_s1 + $0x158] sm:$0xff]   ;;  %v2729_v56 = vld [vmem:[%s3550_s1 + $0x160] sm:$0xff]   ;;  %v2733_v60 = vld [vmem:[%s3550_s1 + $0x168] sm:$0xff]  }
  0x12   :  { %2447 = vmatprep.subr.bf16.mxu1 %v2698_v17  ;;  %v2726_v53 = vld [vmem:[%s3550_s1 + $0x1d8] sm:$0xff]   ;;  %v2730_v57 = vld [vmem:[%s3550_s1 + $0x1e0] sm:$0xff]   ;;  %v2734_v61 = vld [vmem:[%s3550_s1 + $0x1e8] sm:$0xff]  }
  0x13   :  { %v2727_v54 = vld [vmem:[%s3550_s1 + $0x118] sm:$0xff]   ;;  %v2731_v58 = vld [vmem:[%s3550_s1 + $0x120] sm:$0xff]   ;;  %v2735_v62 = vld [vmem:[%s3550_s1 + $0x128] sm:$0xff]  }
  0x14   :  { %2426 = vmatpush3.bf16.msra.mxu0 %v2699_v18  ;;  %v2728_v55 = vld [vmem:[%s3550_s1 + $0x198] sm:$0xff]   ;;  %v2732_v59 = vld [vmem:[%s3550_s1 + $0x1a0] sm:$0xff]   ;;  %v2736_v63 = vld [vmem:[%s3550_s1 + $0x1a8] sm:$0xff]  }
  0x15   :  { %2448 = vmatpush3.bf16.msra.mxu1 %v2700_v19  ;;  %2427 = vmatprep.subr.bf16.mxu0 %v2701_v20  ;;  %v2737_v0 = vld [vmem:[%s3550_s1 + $0x170] sm:$0xff]   ;;  %v2741_v4 = vld [vmem:[%s3550_s1 + $0x178] sm:$0xff]   ;;  %v2745_v16 = vld [vmem:[%s3550_s1 + $0x240] sm:$0xff]  }
  0x16   :  { %2449 = vmatprep.subr.bf16.mxu1 %v2702_v21  ;;  %v2738_v1 = vld [vmem:[%s3550_s1 + $0x1f0] sm:$0xff]   ;;  %v2742_v5 = vld [vmem:[%s3550_s1 + $0x1f8] sm:$0xff]   ;;  %v2746_v17 = vld [vmem:[%s3550_s1 + $0x2c0] sm:$0xff]  }
  0x17   :  { %v2739_v2 = vld [vmem:[%s3550_s1 + $0x130] sm:$0xff]   ;;  %v2743_v6 = vld [vmem:[%s3550_s1 + $0x138] sm:$0xff]   ;;  %v2747_v18 = vld [vmem:[%s3550_s1 + $0x200] sm:$0xff]  }
  0x18   :  { %2428 = vmatpush3.bf16.msra.mxu0 %v2703_v22  ;;  %v2740_v3 = vld [vmem:[%s3550_s1 + $0x1b0] sm:$0xff]   ;;  %v2744_v7 = vld [vmem:[%s3550_s1 + $0x1b8] sm:$0xff]   ;;  %v2748_v19 = vld [vmem:[%s3550_s1 + $0x280] sm:$0xff]  }
  0x19   :  { %2450 = vmatpush3.bf16.msra.mxu1 %v2704_v23  ;;  %2429 = vmatprep.subr.bf16.mxu0 %v2705_v24  ;;  %v17_v8 = vld [vmem:[%s3551_s0 + $0x10] sm:$0xff]  ;;  %v18_v12 = vld [vmem:[%s3551_s0 + $0x18] sm:$0xff]  ;;  %v2749_v20 = vld [vmem:[%s3550_s1 + $0x248] sm:$0xff]  }
  0x1a   :  { %2451 = vmatprep.subr.bf16.mxu1 %v2706_v25  ;;  %v29_v9 = vld [vmem:[%s3551_s0 + $0x70] sm:$0xff]  ;;  %v30_v13 = vld [vmem:[%s3551_s0 + $0x78] sm:$0xff]  ;;  %v2750_v21 = vld [vmem:[%s3550_s1 + $0x2c8] sm:$0xff]  }
  0x1b   :  { %v2205_v10 = vcombine.low %v17_v8, %v29_v9  ;;  %v2206_v11 = vcombine.high %v17_v8, %v29_v9  ;;  %v2207_v14 = vcombine.low %v18_v12, %v30_v13  ;;  %v2208_v15 = vcombine.high %v18_v12, %v30_v13  ;;  %v2751_v22 = vld [vmem:[%s3550_s1 + $0x208] sm:$0xff]   ;;  %v2753_v24 = vld [vmem:[%s3550_s1 + $0x250] sm:$0xff]   ;;  %v2761_v32 = vld [vmem:[%s3550_s1 + $0x260] sm:$0xff]  }
  0x1c   :  { %2430 = vmatpush3.bf16.msra.mxu0 %v2707_v26  ;;  %v2752_v23 = vld [vmem:[%s3550_s1 + $0x288] sm:$0xff]   ;;  %v2754_v25 = vld [vmem:[%s3550_s1 + $0x2d0] sm:$0xff]   ;;  %v2762_v33 = vld [vmem:[%s3550_s1 + $0x2e0] sm:$0xff]  }
  0x1d   :  { %2452 = vmatpush3.bf16.msra.mxu1 %v2708_v27  ;;  %2431 = vmatprep.subr.bf16.mxu0 %v2709_v28  ;;  %v2755_v26 = vld [vmem:[%s3550_s1 + $0x210] sm:$0xff]   ;;  %v2757_v28 = vld [vmem:[%s3550_s1 + $0x258] sm:$0xff]   ;;  %v2763_v34 = vld [vmem:[%s3550_s1 + $0x220] sm:$0xff]  }
  0x1e   :  { %2453 = vmatprep.subr.bf16.mxu1 %v2710_v29  ;;  %v2756_v27 = vld [vmem:[%s3550_s1 + $0x290] sm:$0xff]   ;;  %v2758_v29 = vld [vmem:[%s3550_s1 + $0x2d8] sm:$0xff]   ;;  %v2765_v36 = vld [vmem:[%s3550_s1 + $0x268] sm:$0xff]  }
  0x1f   :  { %v2766_v37 = vld [vmem:[%s3550_s1 + $0x2e8] sm:$0xff]   ;;  %v2793_v8 = vld [vmem:[%s3550_s1 + $0x360] sm:$0xff]  }
  0x20   :  { %2432 = vmatpush3.bf16.msra.mxu0 %v2711_v30  ;;  %v2759_v30 = vld [vmem:[%s3550_s1 + $0x218] sm:$0xff]   ;;  %v2768_v39 = vld [vmem:[%s3550_s1 + $0x2a8] sm:$0xff]   ;;  %v2794_v9 = vld [vmem:[%s3550_s1 + $0x3e0] sm:$0xff]  }
  0x21   :  { %2454 = vmatpush3.bf16.msra.mxu1 %v2712_v31  ;;  %2461 = vmatprep.subr.bf16.mxu0 %v2713_v40  ;;  %v2760_v31 = vld [vmem:[%s3550_s1 + $0x298] sm:$0xff]   ;;  %v2769_v40 = vld [vmem:[%s3550_s1 + $0x270] sm:$0xff]   ;;  %v2797_v12 = vld [vmem:[%s3550_s1 + $0x368] sm:$0xff]  }
  0x22   :  { %2483 = vmatprep.subr.bf16.mxu1 %v2714_v41  ;;  %v2770_v41 = vld [vmem:[%s3550_s1 + $0x2f0] sm:$0xff]   ;;  %v2798_v13 = vld [vmem:[%s3550_s1 + $0x3e8] sm:$0xff]  }
  0x23   :  { %1735 = vmatmul.mubr.bf16.vlgmr.msra.gmra.mrb[0].mxu0 %v2201_v35  ;;  %v2764_v35 = vld [vmem:[%s3550_s1 + $0x2a0] sm:$0xff]  }
  0x24   :  { %1776 = vmatmul.mubr.bf16.vlgmr.msra.gmra.mrb[0].mxu1 %v2203_v38  ;;  %2462 = vmatpush3.bf16.msra.mxu0 %v2715_v42  ;;  %v2767_v38 = vld [vmem:[%s3550_s1 + $0x228] sm:$0xff]   ;;  %v2771_v42 = vld [vmem:[%s3550_s1 + $0x230] sm:$0xff]  }
  0x25   :  { %2484 = vmatpush3.bf16.msra.mxu1 %v2716_v43  ;;  %2463 = vmatprep.subr.bf16.mxu0 %v2717_v44  ;;  %v2772_v43 = vld [vmem:[%s3550_s1 + $0x2b0] sm:$0xff]   ;;  %v2773_v44 = vld [vmem:[%s3550_s1 + $0x278] sm:$0xff]  }
  0x26   :  { %2485 = vmatprep.subr.bf16.mxu1 %v2718_v45  ;;  %1816 = vmatprep.mubr.bf16.mxu0 %v2206_v11  ;;  %v2774_v45 = vld [vmem:[%s3550_s1 + $0x2f8] sm:$0xff]   ;;  %v2796_v11 = vld [vmem:[%s3550_s1 + $0x3a0] sm:$0xff]  }
  0x27   :  { %1857 = vmatprep.mubr.bf16.mxu1 %v2208_v15  ;;  %v2800_v15 = vld [vmem:[%s3550_s1 + $0x3a8] sm:$0xff]  }
  0x28   :  { %2464 = vmatpush3.bf16.msra.mxu0 %v2719_v46  ;;  %v2775_v46 = vld [vmem:[%s3550_s1 + $0x238] sm:$0xff]  }
  0x29   :  { %2486 = vmatpush3.bf16.msra.mxu1 %v2720_v47  ;;  %2465 = vmatprep.subr.bf16.mxu0 %v2721_v48  ;;  %v2776_v47 = vld [vmem:[%s3550_s1 + $0x2b8] sm:$0xff]   ;;  %v19_v48 = vld [vmem:[%s3551_s0 + $0x20] sm:$0xff] }
  0x2a   :  { %2487 = vmatprep.subr.bf16.mxu1 %v2722_v49  ;;  %v31_v49 = vld [vmem:[%s3551_s0 + $0x80] sm:$0xff] }
  0x2c   :  { %2466 = vmatpush3.bf16.msra.mxu0 %v2723_v50  ;;  %v20_v50 = vld [vmem:[%s3551_s0 + $0x28] sm:$0xff] }
  0x2d   :  { %2488 = vmatpush3.bf16.msra.mxu1 %v2724_v51  ;;  %2467 = vmatprep.subr.bf16.mxu0 %v2725_v52  ;;  %v32_v51 = vld [vmem:[%s3551_s0 + $0x88] sm:$0xff]  ;;  %v2209_v52 = vcombine.low %v19_v48, %v31_v49 }
  0x2e   :  { %2489 = vmatprep.subr.bf16.mxu1 %v2726_v53  ;;  %v2210_v53 = vcombine.high %v19_v48, %v31_v49  ;;  %v2825_v48 = vld [vmem:[%s3550_s1 + $0x460] sm:$0xff]  }
  0x2f   :  { %v2826_v49 = vld [vmem:[%s3550_s1 + $0x4e0] sm:$0xff]  }
  0x30   :  { %2468 = vmatpush3.bf16.msra.mxu0 %v2727_v54  ;;  %v2211_v54 = vcombine.low %v20_v50, %v32_v51 }
  0x31   :  { %2490 = vmatpush3.bf16.msra.mxu1 %v2728_v55  ;;  %2469 = vmatprep.subr.bf16.mxu0 %v2729_v56  ;;  %v2212_v55 = vcombine.high %v20_v50, %v32_v51  ;;  %v2777_v56 = vld [vmem:[%s3550_s1 + $0x340] sm:$0xff]  }
  0x32   :  { %2491 = vmatprep.subr.bf16.mxu1 %v2730_v57  ;;  %v2778_v57 = vld [vmem:[%s3550_s1 + $0x3c0] sm:$0xff]  }
  0x33   :  { %v2827_v50 = vld [vmem:[%s3550_s1 + $0x420] sm:$0xff]  }
  0x34   :  { %2470 = vmatpush3.bf16.msra.mxu0 %v2731_v58  ;;  %v2779_v58 = vld [vmem:[%s3550_s1 + $0x300] sm:$0xff]  }
  0x35   :  { %2492 = vmatpush3.bf16.msra.mxu1 %v2732_v59  ;;  %2471 = vmatprep.subr.bf16.mxu0 %v2733_v60  ;;  %v2780_v59 = vld [vmem:[%s3550_s1 + $0x380] sm:$0xff]   ;;  %v2781_v60 = vld [vmem:[%s3550_s1 + $0x348] sm:$0xff]  }
  0x36   :  { %2493 = vmatprep.subr.bf16.mxu1 %v2734_v61  ;;  %v2782_v61 = vld [vmem:[%s3550_s1 + $0x3c8] sm:$0xff]   ;;  %v2828_v51 = vld [vmem:[%s3550_s1 + $0x4a0] sm:$0xff]  }
  0x38   :  { %2472 = vmatpush3.bf16.msra.mxu0 %v2735_v62  ;;  %v2783_v62 = vld [vmem:[%s3550_s1 + $0x308] sm:$0xff]  }
  0x39   :  { %2494 = vmatpush3.bf16.msra.mxu1 %v2736_v63  ;;  %2473 = vmatprep.subr.bf16.mxu0 %v2737_v0  ;;  %v2784_v63 = vld [vmem:[%s3550_s1 + $0x388] sm:$0xff]   ;;  %v2785_v0 = vld [vmem:[%s3550_s1 + $0x350] sm:$0xff]  }
  0x3a   :  { %2495 = vmatprep.subr.bf16.mxu1 %v2738_v1  ;;  %v2786_v1 = vld [vmem:[%s3550_s1 + $0x3d0] sm:$0xff]  }
  0x3c   :  { %2474 = vmatpush3.bf16.msra.mxu0 %v2739_v2  ;;  %v2787_v2 = vld [vmem:[%s3550_s1 + $0x310] sm:$0xff]  }
  0x3d   :  { %2496 = vmatpush3.bf16.msra.mxu1 %v2740_v3  ;;  %2475 = vmatprep.subr.bf16.mxu0 %v2741_v4  ;;  %v2788_v3 = vld [vmem:[%s3550_s1 + $0x390] sm:$0xff]   ;;  %v2789_v4 = vld [vmem:[%s3550_s1 + $0x358] sm:$0xff]  }
  0x3e   :  { %2497 = vmatprep.subr.bf16.mxu1 %v2742_v5  ;;  %v2790_v5 = vld [vmem:[%s3550_s1 + $0x3d8] sm:$0xff]  }
  0x40   :  { %2476 = vmatpush3.bf16.msra.mxu0 %v2743_v6  ;;  %v2791_v6 = vld [vmem:[%s3550_s1 + $0x318] sm:$0xff]  }
  0x41   :  { %2498 = vmatpush3.bf16.msra.mxu1 %v2744_v7  ;;  %2505 = vmatprep.subr.bf16.mxu0 %v2745_v16  ;;  %v2792_v7 = vld [vmem:[%s3550_s1 + $0x398] sm:$0xff]   ;;  %v2801_v16 = vld [vmem:[%s3550_s1 + $0x370] sm:$0xff]  }
  0x42   :  { %2527 = vmatprep.subr.bf16.mxu1 %v2746_v17  ;;  %v2802_v17 = vld [vmem:[%s3550_s1 + $0x3f0] sm:$0xff]  }
  0x43   :  { %1817 = vmatmul.mubr.bf16.vlgmr.msra.gmra.mrb[4].mxu0 %v2205_v10  ;;  %v2795_v10 = vld [vmem:[%s3550_s1 + $0x320] sm:$0xff]  }
  0x44   :  { %1858 = vmatmul.mubr.bf16.vlgmr.msra.gmra.mrb[4].mxu1 %v2207_v14  ;;  %2506 = vmatpush3.bf16.msra.mxu0 %v2747_v18  ;;  %v2799_v14 = vld [vmem:[%s3550_s1 + $0x328] sm:$0xff]   ;;  %v2803_v18 = vld [vmem:[%s3550_s1 + $0x330] sm:$0xff]  }
  0x45   :  { %2528 = vmatpush3.bf16.msra.mxu1 %v2748_v19  ;;  %2507 = vmatprep.subr.bf16.mxu0 %v2749_v20  ;;  %v2804_v19 = vld [vmem:[%s3550_s1 + $0x3b0] sm:$0xff]   ;;  %v2805_v20 = vld [vmem:[%s3550_s1 + $0x378] sm:$0xff]  }
  0x46   :  { %2529 = vmatprep.subr.bf16.mxu1 %v2750_v21  ;;  %1898 = vmatprep.mubr.bf16.mxu0 %v2210_v53  ;;  %v2806_v21 = vld [vmem:[%s3550_s1 + $0x3f8] sm:$0xff]   ;;  %v2830_v53 = vld [vmem:[%s3550_s1 + $0x4e8] sm:$0xff]  }
  0x47   :  { %1939 = vmatprep.mubr.bf16.mxu1 %v2212_v55  ;;  %v2832_v55 = vld [vmem:[%s3550_s1 + $0x4a8] sm:$0xff]  }
  0x48   :  { %2508 = vmatpush3.bf16.msra.mxu0 %v2751_v22  ;;  %v2807_v22 = vld [vmem:[%s3550_s1 + $0x338] sm:$0xff]  }
  0x49   :  { %2530 = vmatpush3.bf16.msra.mxu1 %v2752_v23  ;;  %2509 = vmatprep.subr.bf16.mxu0 %v2753_v24  ;;  %v2808_v23 = vld [vmem:[%s3550_s1 + $0x3b8] sm:$0xff]   ;;  %v21_v24 = vld [vmem:[%s3551_s0 + $0x30] sm:$0xff] }
  0x4a   :  { %2531 = vmatprep.subr.bf16.mxu1 %v2754_v25  ;;  %v33_v25 = vld [vmem:[%s3551_s0 + $0x90] sm:$0xff] }
  0x4c   :  { %2510 = vmatpush3.bf16.msra.mxu0 %v2755_v26  ;;  %v22_v26 = vld [vmem:[%s3551_s0 + $0x38] sm:$0xff] }
  0x4d   :  { %2532 = vmatpush3.bf16.msra.mxu1 %v2756_v27  ;;  %2511 = vmatprep.subr.bf16.mxu0 %v2757_v28  ;;  %v2213_v27 = vcombine.low %v21_v24, %v33_v25  ;;  %v2214_v28 = vcombine.high %v21_v24, %v33_v25  ;;  %v2857_v24 = vld [vmem:[%s3550_s1 + $0x560] sm:$0xff]  }
  0x4e   :  { %2533 = vmatprep.subr.bf16.mxu1 %v2758_v29  ;;  %v34_v29 = vld [vmem:[%s3551_s0 + $0x98] sm:$0xff]  ;;  %v2858_v25 = vld [vmem:[%s3550_s1 + $0x5e0] sm:$0xff]  }
  0x50   :  { %2512 = vmatpush3.bf16.msra.mxu0 %v2759_v30  ;;  %v2215_v30 = vcombine.low %v22_v26, %v34_v29 }
  0x51   :  { %2534 = vmatpush3.bf16.msra.mxu1 %v2760_v31  ;;  %2513 = vmatprep.subr.bf16.mxu0 %v2761_v32  ;;  %v2216_v31 = vcombine.high %v22_v26, %v34_v29  ;;  %v2809_v32 = vld [vmem:[%s3550_s1 + $0x440] sm:$0xff]   ;;  %v2862_v29 = vld [vmem:[%s3550_s1 + $0x5e8] sm:$0xff]  }
  0x52   :  { %2535 = vmatprep.subr.bf16.mxu1 %v2762_v33  ;;  %v2810_v33 = vld [vmem:[%s3550_s1 + $0x4c0] sm:$0xff]  }
  0x53   :  { %v2859_v26 = vld [vmem:[%s3550_s1 + $0x520] sm:$0xff]  }
  0x54   :  { %2514 = vmatpush3.bf16.msra.mxu0 %v2763_v34  ;;  %v2811_v34 = vld [vmem:[%s3550_s1 + $0x400] sm:$0xff]  }
  0x55   :  { %2536 = vmatpush3.bf16.msra.mxu1 %v2764_v35  ;;  %2515 = vmatprep.subr.bf16.mxu0 %v2765_v36  ;;  %v2812_v35 = vld [vmem:[%s3550_s1 + $0x480] sm:$0xff]   ;;  %v2813_v36 = vld [vmem:[%s3550_s1 + $0x448] sm:$0xff]  }
  0x56   :  { %2537 = vmatprep.subr.bf16.mxu1 %v2766_v37  ;;  %v2814_v37 = vld [vmem:[%s3550_s1 + $0x4c8] sm:$0xff]  }
  0x58   :  { %2516 = vmatpush3.bf16.msra.mxu0 %v2767_v38  ;;  %v2815_v38 = vld [vmem:[%s3550_s1 + $0x408] sm:$0xff]  }
  0x59   :  { %2538 = vmatpush3.bf16.msra.mxu1 %v2768_v39  ;;  %2517 = vmatprep.subr.bf16.mxu0 %v2769_v40  ;;  %v2816_v39 = vld [vmem:[%s3550_s1 + $0x488] sm:$0xff]   ;;  %v2817_v40 = vld [vmem:[%s3550_s1 + $0x450] sm:$0xff]  }
  0x5a   :  { %2539 = vmatprep.subr.bf16.mxu1 %v2770_v41  ;;  %v2818_v41 = vld [vmem:[%s3550_s1 + $0x4d0] sm:$0xff]  }
  0x5c   :  { %2518 = vmatpush3.bf16.msra.mxu0 %v2771_v42  ;;  %v2819_v42 = vld [vmem:[%s3550_s1 + $0x410] sm:$0xff]  }
  0x5d   :  { %2540 = vmatpush3.bf16.msra.mxu1 %v2772_v43  ;;  %2519 = vmatprep.subr.bf16.mxu0 %v2773_v44  ;;  %v2820_v43 = vld [vmem:[%s3550_s1 + $0x490] sm:$0xff]   ;;  %v2821_v44 = vld [vmem:[%s3550_s1 + $0x458] sm:$0xff]  }
  0x5e   :  { %2541 = vmatprep.subr.bf16.mxu1 %v2774_v45  ;;  %v2822_v45 = vld [vmem:[%s3550_s1 + $0x4d8] sm:$0xff]  }
  0x60   :  { %2520 = vmatpush3.bf16.msra.mxu0 %v2775_v46  ;;  %v2823_v46 = vld [vmem:[%s3550_s1 + $0x418] sm:$0xff]  }
  0x61   :  { %2542 = vmatpush3.bf16.msra.mxu1 %v2776_v47  ;;  %2549 = vmatprep.subr.bf16.mxu0 %v2777_v56  ;;  %v2824_v47 = vld [vmem:[%s3550_s1 + $0x498] sm:$0xff]   ;;  %v2833_v56 = vld [vmem:[%s3550_s1 + $0x470] sm:$0xff]  }
  0x62   :  { %2571 = vmatprep.subr.bf16.mxu1 %v2778_v57  ;;  %v2834_v57 = vld [vmem:[%s3550_s1 + $0x4f0] sm:$0xff]  }
  0x63   :  { %1899 = vmatmul.mubr.bf16.vlgmr.msra.gmra.mrb[8].mxu0 %v2209_v52  ;;  %v2829_v52 = vld [vmem:[%s3550_s1 + $0x468] sm:$0xff]  }
  0x64   :  { %1940 = vmatmul.mubr.bf16.vlgmr.msra.gmra.mrb[8].mxu1 %v2211_v54  ;;  %2550 = vmatpush3.bf16.msra.mxu0 %v2779_v58  ;;  %v2831_v54 = vld [vmem:[%s3550_s1 + $0x428] sm:$0xff]   ;;  %v2835_v58 = vld [vmem:[%s3550_s1 + $0x430] sm:$0xff]  }
  0x65   :  { %2572 = vmatpush3.bf16.msra.mxu1 %v2780_v59  ;;  %2551 = vmatprep.subr.bf16.mxu0 %v2781_v60  ;;  %v2836_v59 = vld [vmem:[%s3550_s1 + $0x4b0] sm:$0xff]   ;;  %v2837_v60 = vld [vmem:[%s3550_s1 + $0x478] sm:$0xff]  }
  0x66   :  { %2573 = vmatprep.subr.bf16.mxu1 %v2782_v61  ;;  %1980 = vmatprep.mubr.bf16.mxu0 %v2214_v28  ;;  %v2838_v61 = vld [vmem:[%s3550_s1 + $0x4f8] sm:$0xff]   ;;  %v2861_v28 = vld [vmem:[%s3550_s1 + $0x568] sm:$0xff]  }
  0x67   :  { %2021 = vmatprep.mubr.bf16.mxu1 %v2216_v31  ;;  %v2864_v31 = vld [vmem:[%s3550_s1 + $0x5a8] sm:$0xff]  }
  0x68   :  { %2552 = vmatpush3.bf16.msra.mxu0 %v2783_v62  ;;  %v2839_v62 = vld [vmem:[%s3550_s1 + $0x438] sm:$0xff]  }
  0x69   :  { %2574 = vmatpush3.bf16.msra.mxu1 %v2784_v63  ;;  %2553 = vmatprep.subr.bf16.mxu0 %v2785_v0  ;;  %v2840_v63 = vld [vmem:[%s3550_s1 + $0x4b8] sm:$0xff]   ;;  %v23_v0 = vld [vmem:[%s3551_s0 + $0x40] sm:$0xff] }
  0x6a   :  { %2575 = vmatprep.subr.bf16.mxu1 %v2786_v1  ;;  %v35_v1 = vld [vmem:[%s3551_s0 + $0xa0] sm:$0xff] }
  0x6c   :  { %2554 = vmatpush3.bf16.msra.mxu0 %v2787_v2  ;;  %v2217_v2 = vcombine.low %v23_v0, %v35_v1 }
  0x6d   :  { %2576 = vmatpush3.bf16.msra.mxu1 %v2788_v3  ;;  %2555 = vmatprep.subr.bf16.mxu0 %v2789_v4  ;;  %v2218_v3 = vcombine.high %v23_v0, %v35_v1  ;;  %v24_v4 = vld [vmem:[%s3551_s0 + $0x48] sm:$0xff] }
  0x6e   :  { %2577 = vmatprep.subr.bf16.mxu1 %v2790_v5  ;;  %v36_v5 = vld [vmem:[%s3551_s0 + $0xa8] sm:$0xff] }
  0x70   :  { %2556 = vmatpush3.bf16.msra.mxu0 %v2791_v6  ;;  %v2219_v6 = vcombine.low %v24_v4, %v36_v5 }
  0x71   :  { %2578 = vmatpush3.bf16.msra.mxu1 %v2792_v7  ;;  %2557 = vmatprep.subr.bf16.mxu0 %v2793_v8  ;;  %v2220_v7 = vcombine.high %v24_v4, %v36_v5  ;;  %v2841_v8 = vld [vmem:[%s3550_s1 + $0x540] sm:$0xff]  }
  0x72   :  { %2579 = vmatprep.subr.bf16.mxu1 %v2794_v9  ;;  %v2842_v9 = vld [vmem:[%s3550_s1 + $0x5c0] sm:$0xff]  }
  0x74   :  { %2558 = vmatpush3.bf16.msra.mxu0 %v2795_v10  ;;  %v2843_v10 = vld [vmem:[%s3550_s1 + $0x500] sm:$0xff]  }
  0x75   :  { %2580 = vmatpush3.bf16.msra.mxu1 %v2796_v11  ;;  %2559 = vmatprep.subr.bf16.mxu0 %v2797_v12  ;;  %v2844_v11 = vld [vmem:[%s3550_s1 + $0x580] sm:$0xff]   ;;  %v2845_v12 = vld [vmem:[%s3550_s1 + $0x548] sm:$0xff]  }
  0x76   :  { %2581 = vmatprep.subr.bf16.mxu1 %v2798_v13  ;;  %v2846_v13 = vld [vmem:[%s3550_s1 + $0x5c8] sm:$0xff]  }
  0x78   :  { %2560 = vmatpush3.bf16.msra.mxu0 %v2799_v14  ;;  %v2847_v14 = vld [vmem:[%s3550_s1 + $0x508] sm:$0xff]  }
  0x79   :  { %2582 = vmatpush3.bf16.msra.mxu1 %v2800_v15  ;;  %2561 = vmatprep.subr.bf16.mxu0 %v2801_v16  ;;  %v2848_v15 = vld [vmem:[%s3550_s1 + $0x588] sm:$0xff]   ;;  %v2849_v16 = vld [vmem:[%s3550_s1 + $0x550] sm:$0xff]  }
  0x7a   :  { %2583 = vmatprep.subr.bf16.mxu1 %v2802_v17  ;;  %v2850_v17 = vld [vmem:[%s3550_s1 + $0x5d0] sm:$0xff]  }
  0x7c   :  { %2562 = vmatpush3.bf16.msra.mxu0 %v2803_v18  ;;  %v2851_v18 = vld [vmem:[%s3550_s1 + $0x510] sm:$0xff]  }
  0x7d   :  { %2584 = vmatpush3.bf16.msra.mxu1 %v2804_v19  ;;  %2563 = vmatprep.subr.bf16.mxu0 %v2805_v20  ;;  %v2852_v19 = vld [vmem:[%s3550_s1 + $0x590] sm:$0xff]   ;;  %v2853_v20 = vld [vmem:[%s3550_s1 + $0x558] sm:$0xff]  }
  0x7e   :  { %2585 = vmatprep.subr.bf16.mxu1 %v2806_v21  ;;  %v2854_v21 = vld [vmem:[%s3550_s1 + $0x5d8] sm:$0xff]  }
  0x80   :  { %2564 = vmatpush3.bf16.msra.mxu0 %v2807_v22  ;;  %v2855_v22 = vld [vmem:[%s3550_s1 + $0x518] sm:$0xff]  }
  0x81   :  { %2586 = vmatpush3.bf16.msra.mxu1 %v2808_v23  ;;  %2593 = vmatprep.subr.bf16.mxu0 %v2809_v32  ;;  %v2856_v23 = vld [vmem:[%s3550_s1 + $0x598] sm:$0xff]   ;;  %v2865_v32 = vld [vmem:[%s3550_s1 + $0x570] sm:$0xff]  }
  0x82   :  { %2615 = vmatprep.subr.bf16.mxu1 %v2810_v33  ;;  %v2866_v33 = vld [vmem:[%s3550_s1 + $0x5f0] sm:$0xff]  }
  0x83   :  { %1981 = vmatmul.mubr.bf16.vlgmr.msra.gmra.mrb[12].mxu0 %v2213_v27  ;;  %v2860_v27 = vld [vmem:[%s3550_s1 + $0x5a0] sm:$0xff]  }
  0x84   :  { %2022 = vmatmul.mubr.bf16.vlgmr.msra.gmra.mrb[12].mxu1 %v2215_v30  ;;  %2594 = vmatpush3.bf16.msra.mxu0 %v2811_v34  ;;  %v2863_v30 = vld [vmem:[%s3550_s1 + $0x528] sm:$0xff]   ;;  %v2867_v34 = vld [vmem:[%s3550_s1 + $0x530] sm:$0xff]  }
  0x85   :  { %2616 = vmatpush3.bf16.msra.mxu1 %v2812_v35  ;;  %2595 = vmatprep.subr.bf16.mxu0 %v2813_v36  ;;  %v2868_v35 = vld [vmem:[%s3550_s1 + $0x5b0] sm:$0xff]   ;;  %v2869_v36 = vld [vmem:[%s3550_s1 + $0x578] sm:$0xff]  }
  0x86   :  { %2617 = vmatprep.subr.bf16.mxu1 %v2814_v37  ;;  %2062 = vmatprep.mubr.bf16.mxu0 %v2218_v3  ;;  %v2870_v37 = vld [vmem:[%s3550_s1 + $0x5f8] sm:$0xff]  }
  0x87   :  { %2103 = vmatprep.mubr.bf16.mxu1 %v2220_v7 }
  0x88   :  { %2596 = vmatpush3.bf16.msra.mxu0 %v2815_v38  ;;  %v2871_v38 = vld [vmem:[%s3550_s1 + $0x538] sm:$0xff]  }
  0x89   :  { %2618 = vmatpush3.bf16.msra.mxu1 %v2816_v39  ;;  %2597 = vmatprep.subr.bf16.mxu0 %v2817_v40  ;;  %v2872_v39 = vld [vmem:[%s3550_s1 + $0x5b8] sm:$0xff]   ;;  %v25_v40 = vld [vmem:[%s3551_s0 + $0x50] sm:$0xff] }
  0x8a   :  { %2619 = vmatprep.subr.bf16.mxu1 %v2818_v41  ;;  %v37_v41 = vld [vmem:[%s3551_s0 + $0xb0] sm:$0xff] }
  0x8c   :  { %2598 = vmatpush3.bf16.msra.mxu0 %v2819_v42  ;;  %v26_v42 = vld [vmem:[%s3551_s0 + $0x58] sm:$0xff] }
  0x8d   :  { %2620 = vmatpush3.bf16.msra.mxu1 %v2820_v43  ;;  %2599 = vmatprep.subr.bf16.mxu0 %v2821_v44  ;;  %v38_v43 = vld [vmem:[%s3551_s0 + $0xb8] sm:$0xff]  ;;  %v2221_v44 = vcombine.low %v25_v40, %v37_v41 }
  0x8e   :  { %2621 = vmatprep.subr.bf16.mxu1 %v2822_v45  ;;  %v2222_v45 = vcombine.high %v25_v40, %v37_v41 }
  0x90   :  { %2600 = vmatpush3.bf16.msra.mxu0 %v2823_v46  ;;  %v2223_v46 = vcombine.low %v26_v42, %v38_v43 }
  0x91   :  { %2622 = vmatpush3.bf16.msra.mxu1 %v2824_v47  ;;  %2601 = vmatprep.subr.bf16.mxu0 %v2825_v48  ;;  %v2224_v47 = vcombine.high %v26_v42, %v38_v43 }
  0x92   :  { %2623 = vmatprep.subr.bf16.mxu1 %v2826_v49 }
  0x94   :  { %2602 = vmatpush3.bf16.msra.mxu0 %v2827_v50  ;;  %v2200_v50 = vld [vmem:[%s3552_s2] ss:$0 sm:$0xff] }
  0x95   :  { %2624 = vmatpush3.bf16.msra.mxu1 %v2828_v51  ;;  %2603 = vmatprep.subr.bf16.mxu0 %v2829_v52 }
  0x96   :  { %2625 = vmatprep.subr.bf16.mxu1 %v2830_v53 }
  0x98   :  { %2604 = vmatpush3.bf16.msra.mxu0 %v2831_v54 }
  0x99   :  { %2626 = vmatpush3.bf16.msra.mxu1 %v2832_v55  ;;  %2605 = vmatprep.subr.bf16.mxu0 %v2833_v56 }
  0x9a   :  { %2627 = vmatprep.subr.bf16.mxu1 %v2834_v57 }
  0x9c   :  { %2606 = vmatpush3.bf16.msra.mxu0 %v2835_v58 }
  0x9d   :  { %2628 = vmatpush3.bf16.msra.mxu1 %v2836_v59  ;;  %2607 = vmatprep.subr.bf16.mxu0 %v2837_v60 }
  0x9e   :  { %2629 = vmatprep.subr.bf16.mxu1 %v2838_v61 }
  0xa0   :  { %2608 = vmatpush3.bf16.msra.mxu0 %v2839_v62 }
  0xa1   :  { %2630 = vmatpush3.bf16.msra.mxu1 %v2840_v63  ;;  %2637 = vmatprep.subr.bf16.mxu0 %v2841_v8 }
  0xa2   :  { %2659 = vmatprep.subr.bf16.mxu1 %v2842_v9 }
  0xa3   :  { %2063 = vmatmul.mubr.bf16.vlgmr.msra.gmra.mrb[16].mxu0 %v2217_v2 }
  0xa4   :  { %2104 = vmatmul.mubr.bf16.vlgmr.msra.gmra.mrb[16].mxu1 %v2219_v6  ;;  %2638 = vmatpush3.bf16.msra.mxu0 %v2843_v10 }
  0xa5   :  { %2660 = vmatpush3.bf16.msra.mxu1 %v2844_v11  ;;  %2639 = vmatprep.subr.bf16.mxu0 %v2845_v12 }
  0xa6   :  { %2661 = vmatprep.subr.bf16.mxu1 %v2846_v13  ;;  %2144 = vmatprep.mubr.bf16.mxu0 %v2222_v45 }
  0xa7   :  { %2185 = vmatprep.mubr.bf16.mxu1 %v2224_v47 }
  0xa8   :  { %2640 = vmatpush3.bf16.msra.mxu0 %v2847_v14 }
  0xa9   :  { %2662 = vmatpush3.bf16.msra.mxu1 %v2848_v15  ;;  %2641 = vmatprep.subr.bf16.mxu0 %v2849_v16 }
  0xaa   :  { %2663 = vmatprep.subr.bf16.mxu1 %v2850_v17 }
  0xac   :  { %2642 = vmatpush3.bf16.msra.mxu0 %v2851_v18 }
  0xad   :  { %2664 = vmatpush3.bf16.msra.mxu1 %v2852_v19  ;;  %2643 = vmatprep.subr.bf16.mxu0 %v2853_v20 }
  0xae   :  { %2665 = vmatprep.subr.bf16.mxu1 %v2854_v21 }
  0xb0   :  { %2644 = vmatpush3.bf16.msra.mxu0 %v2855_v22 }
  0xb1   :  { %2666 = vmatpush3.bf16.msra.mxu1 %v2856_v23  ;;  %2645 = vmatprep.subr.bf16.mxu0 %v2857_v24 }
  0xb2   :  { %2667 = vmatprep.subr.bf16.mxu1 %v2858_v25 }
  0xb4   :  { %2646 = vmatpush3.bf16.msra.mxu0 %v2859_v26 }
  0xb5   :  { %2668 = vmatpush3.bf16.msra.mxu1 %v2860_v27  ;;  %2647 = vmatprep.subr.bf16.mxu0 %v2861_v28 }
  0xb6   :  { %2669 = vmatprep.subr.bf16.mxu1 %v2862_v29 }
  0xb8   :  { %2648 = vmatpush3.bf16.msra.mxu0 %v2863_v30 }
  0xb9   :  { %2670 = vmatpush3.bf16.msra.mxu1 %v2864_v31  ;;  %2649 = vmatprep.subr.bf16.mxu0 %v2865_v32 }
  0xba   :  { %2671 = vmatprep.subr.bf16.mxu1 %v2866_v33 }
  0xbc   :  { %2650 = vmatpush3.bf16.msra.mxu0 %v2867_v34 }
  0xbd   :  { %2672 = vmatpush3.bf16.msra.mxu1 %v2868_v35  ;;  %2651 = vmatprep.subr.bf16.mxu0 %v2869_v36 }
  0xbe   :  { %2673 = vmatprep.subr.bf16.mxu1 %v2870_v37 }
  0xc0   :  { %2652 = vmatpush3.bf16.msra.mxu0 %v2871_v38 }
  0xc1   :  { %2674 = vmatpush3.bf16.msra.mxu1 %v2872_v39 }
  0xc3   :  { %2145 = vmatmul.mubr.bf16.vlgmr.msra.gmra.mrb[20].mxu0 %v2221_v44 }
  0xc4   :  { %2186 = vmatmul.mubr.bf16.vlgmr.msra.gmra.mrb[20].mxu1 %v2223_v46 }
  0xf6   :  { %v2433_v48 = vpop.f32.mrb[0].mxu0 }
  0xf7   :  { %v2455_v49 = vpop.f32.mrb[0].mxu1  ;;  %v2434_v51 = vpop.f32.mrb[1].mxu0 }
  0xf8   :  { %v2435_v52 = vadd.f32 %v2434_v51, %v2433_v48  ;;  %v2456_v53 = vpop.f32.mrb[1].mxu1  ;;  %v2436_v54 = vpop.f32.mrb[2].mxu0 }
  0xf9   :  { %v2457_v55 = vadd.f32 %v2456_v53, %v2455_v49  ;;  %v2458_v56 = vpop.f32.mrb[2].mxu1  ;;  %v2437_v57 = vpop.f32.mrb[3].mxu0 }
  0xfa   :  { %v1737_v58 = vadd.f32 %v2435_v52, %v2200_v50  ;;  %v2438_v59 = vadd.f32 %v2437_v57, %v2436_v54  ;;  %v2459_v60 = vpop.f32.mrb[3].mxu1 }
  0xfb   :  { %v2460_v61 = vadd.f32 %v2459_v60, %v2458_v56 }
  0xfc   :  { %v1778_v62 = vadd.f32 %v2457_v55, %v1737_v58  ;;  %v1740_v63 = vadd.f32 %v2438_v59, %v2200_v50 }
  0xfe   :  { %v1781_v0 = vadd.f32 %v2460_v61, %v1740_v63 }
 0x116   :  { %v2477_v1 = vpop.f32.mrb[4].mxu0 }
 0x117   :  { %v2499_v2 = vpop.f32.mrb[4].mxu1  ;;  %v2478_v3 = vpop.f32.mrb[5].mxu0 }
 0x118   :  { %v2479_v4 = vadd.f32 %v2478_v3, %v2477_v1  ;;  %v2500_v5 = vpop.f32.mrb[5].mxu1  ;;  %v2480_v6 = vpop.f32.mrb[6].mxu0 }
 0x119   :  { %v2501_v7 = vadd.f32 %v2500_v5, %v2499_v2  ;;  %v2502_v8 = vpop.f32.mrb[6].mxu1  ;;  %v2481_v9 = vpop.f32.mrb[7].mxu0 }
 0x11a   :  { %v1819_v10 = vadd.f32 %v2479_v4, %v1778_v62  ;;  %v2482_v11 = vadd.f32 %v2481_v9, %v2480_v6  ;;  %v2503_v12 = vpop.f32.mrb[7].mxu1 }
 0x11b   :  { %v2504_v13 = vadd.f32 %v2503_v12, %v2502_v8 }
 0x11c   :  { %v1860_v14 = vadd.f32 %v2501_v7, %v1819_v10  ;;  %v1822_v15 = vadd.f32 %v2482_v11, %v1781_v0 }
 0x11e   :  { %v1863_v16 = vadd.f32 %v2504_v13, %v1822_v15 }
 0x136   :  { %v2521_v17 = vpop.f32.mrb[8].mxu0 }
 0x137   :  { %v2543_v18 = vpop.f32.mrb[8].mxu1  ;;  %v2522_v19 = vpop.f32.mrb[9].mxu0 }
 0x138   :  { %v2544_v20 = vpop.f32.mrb[9].mxu1  ;;  %v2523_v21 = vadd.f32 %v2522_v19, %v2521_v17  ;;  %v2524_v23 = vpop.f32.mrb[10].mxu0 }
 0x139   :  { %v2545_v22 = vadd.f32 %v2544_v20, %v2543_v18  ;;  %v2546_v24 = vpop.f32.mrb[10].mxu1  ;;  %v2525_v25 = vpop.f32.mrb[11].mxu0 }
 0x13a   :  { %v2547_v26 = vpop.f32.mrb[11].mxu1  ;;  %v1901_v27 = vadd.f32 %v2523_v21, %v1860_v14  ;;  %v2526_v28 = vadd.f32 %v2525_v25, %v2524_v23 }
 0x13b   :  { %v2548_v29 = vadd.f32 %v2547_v26, %v2546_v24 }
 0x13c   :  { %v1942_v30 = vadd.f32 %v2545_v22, %v1901_v27  ;;  %v1904_v31 = vadd.f32 %v2526_v28, %v1863_v16 }
 0x13e   :  { %v1945_v32 = vadd.f32 %v2548_v29, %v1904_v31 }
 0x156   :  { %v2565_v33 = vpop.f32.mrb[12].mxu0 }
 0x157   :  { %v2587_v34 = vpop.f32.mrb[12].mxu1  ;;  %v2566_v35 = vpop.f32.mrb[13].mxu0 }
 0x158   :  { %v2567_v36 = vadd.f32 %v2566_v35, %v2565_v33  ;;  %v2588_v37 = vpop.f32.mrb[13].mxu1  ;;  %v2568_v38 = vpop.f32.mrb[14].mxu0 }
 0x159   :  { %v2589_v39 = vadd.f32 %v2588_v37, %v2587_v34  ;;  %v2590_v40 = vpop.f32.mrb[14].mxu1  ;;  %v2569_v41 = vpop.f32.mrb[15].mxu0 }
 0x15a   :  { %v1983_v42 = vadd.f32 %v2567_v36, %v1942_v30  ;;  %v2570_v43 = vadd.f32 %v2569_v41, %v2568_v38  ;;  %v2591_v44 = vpop.f32.mrb[15].mxu1 }
 0x15b   :  { %v2592_v45 = vadd.f32 %v2591_v44, %v2590_v40 }
 0x15c   :  { %v2024_v46 = vadd.f32 %v2589_v39, %v1983_v42  ;;  %v1986_v47 = vadd.f32 %v2570_v43, %v1945_v32 }
 0x15e   :  { %v2027_v48 = vadd.f32 %v2592_v45, %v1986_v47 }
 0x176   :  { %v2609_v49 = vpop.f32.mrb[16].mxu0 }
 0x177   :  { %v2631_v50 = vpop.f32.mrb[16].mxu1  ;;  %v2610_v51 = vpop.f32.mrb[17].mxu0 }
 0x178   :  { %v2611_v52 = vadd.f32 %v2610_v51, %v2609_v49  ;;  %v2632_v53 = vpop.f32.mrb[17].mxu1  ;;  %v2612_v54 = vpop.f32.mrb[18].mxu0 }
 0x179   :  { %v2633_v55 = vadd.f32 %v2632_v53, %v2631_v50  ;;  %v2634_v56 = vpop.f32.mrb[18].mxu1  ;;  %v2613_v57 = vpop.f32.mrb[19].mxu0 }
 0x17a   :  { %v2065_v58 = vadd.f32 %v2611_v52, %v2024_v46  ;;  %v2614_v59 = vadd.f32 %v2613_v57, %v2612_v54  ;;  %v2635_v60 = vpop.f32.mrb[19].mxu1 }
 0x17b   :  { %v2636_v61 = vadd.f32 %v2635_v60, %v2634_v56 }
 0x17c   :  { %v2106_v62 = vadd.f32 %v2633_v55, %v2065_v58  ;;  %v2068_v63 = vadd.f32 %v2614_v59, %v2027_v48 }
 0x17e   :  { %v2109_v0 = vadd.f32 %v2636_v61, %v2068_v63 }
 0x196   :  { %v2653_v1 = vpop.f32.mrb[20].mxu0 }
 0x197   :  { %v2675_v2 = vpop.f32.mrb[20].mxu1  ;;  %v2654_v3 = vpop.f32.mrb[21].mxu0 }
 0x198   :  { %v2676_v4 = vpop.f32.mrb[21].mxu1  ;;  %v2655_v5 = vadd.f32 %v2654_v3, %v2653_v1  ;;  %v2656_v7 = vpop.f32.mrb[22].mxu0 }
 0x199   :  { %v2677_v6 = vadd.f32 %v2676_v4, %v2675_v2  ;;  %v2678_v8 = vpop.f32.mrb[22].mxu1  ;;  %v2657_v9 = vpop.f32.mrb[23].mxu0 }
 0x19a   :  { %v2679_v10 = vpop.f32.mrb[23].mxu1  ;;  %v2147_v11 = vadd.f32 %v2655_v5, %v2106_v62  ;;  %v2658_v12 = vadd.f32 %v2657_v9, %v2656_v7 }
 0x19b   :  { %v2680_v13 = vadd.f32 %v2679_v10, %v2678_v8 }
 0x19c   :  { %v2188_v14 = vadd.f32 %v2677_v6, %v2147_v11  ;;  %v2150_v15 = vadd.f32 %v2658_v12, %v2109_v0 }
 0x19e   :  { %2194 = vst [vmem:[%s3553_s3] sm:$0xff] %v2188_v14  ;;  %v2191_v16 = vadd.f32 %v2680_v13, %v2150_v15 }
 0x1a0   :  { %2195 = vst [vmem:[%s3553_s3 + $0x8] sm:$0xff] %v2191_v16 }

// kernel: _device_forward.6
= control target key start
LH: loop header
LB: loop body
LE: loop exit
PB: predicated region body
PF: predicated region fallthrough
CT: control target
= control target key end

     0   :  { %s3267_s12 = smov 0   ;;  %s3269_s13 = smov 0   ;;  %s3912_s0 = inlined_call_operand.vmem [shape: bf16[32,3072], index: 0, kind: input, shape index: {}]   ;;  %s3913_s1 = inlined_call_operand.vmem [shape: bf16[3072,128], index: 1, kind: input, shape index: {}]   ;;  %s3914_s2 = inlined_call_operand.vmem [shape: f32[1,128], index: 2, kind: input, shape index: {}]   ;;  %s3915_s3 = inlined_call_operand.vmem [shape: f32[32,128], index: 3, kind: output, shape index: {}]  }
   0x1   :  { %s3271_s14 = smov 0  }
   0x2 LB: > { %s25_s15 = sadd.s32 1, %s3241_s13  ;;  %p2518_p0 = scmp.ge.s32.totalorder %s3245_s14, 1  ;;  %s3245_s14 = sphi %s3271_s14, %s13_s14   ;;  %s3241_s13 = sphi %s3269_s13, %s3917_s13   ;;  %s3237_s12 = sphi %s3267_s12, %s3916_s12  }
   0x3   : > { %p27_p1 = scmp.ge.s32.totalorder %s25_s15, 2  ;;  %p170_p2 = scmp.lt.s32.totalorder %s3245_s14, 3 }
   0x5   : > { %s3919_s15 = smov (%p27_p1, %s25_s15), 0  ;;  %p171_p3 = pnand %p2518_p0, %p170_p2 }
   0x6   : > { %v3031_v0 = vld [vmem:[%s3913_s1 + $0x40] sm:$0xff] (!%p171_p3)   ;;  %v3035_v4 = vld [vmem:[%s3913_s1 + $0x48] sm:$0xff] (!%p171_p3)   ;;  %v3039_v8 = vld [vmem:[%s3913_s1 + $0x50] sm:$0xff] (!%p171_p3)   ;;  %s2519_s23 = sshll.u32 (!%p171_p3), %s3237_s12, 1 }
   0x7   : > { %174 = sbr.rel (%p171_p3) target bundleno = 422 (0x1a6), region = 32  ;;  %v3032_v1 = vld [vmem:[%s3913_s1 + $0xc0] sm:$0xff] (!%p171_p3)   ;;  %2742 = vmatprep.subr.bf16.mxu0 (!%p171_p3), %v3031_v0  ;;  %v3036_v5 = vld [vmem:[%s3913_s1 + $0xc8] sm:$0xff] (!%p171_p3)   ;;  %v3040_v9 = vld [vmem:[%s3913_s1 + $0xd0] sm:$0xff] (!%p171_p3)   ;;  %p206_p4 = scmp.lt.s32.totalorder (!%p171_p3), %s2519_s23, 3 }
   0x8   : > { %v3033_v2 = vld [vmem:[%s3913_s1] sm:$0xff] (!%p171_p3)   ;;  %2764 = vmatprep.subr.bf16.mxu1 (!%p171_p3), %v3032_v1  ;;  %v3037_v6 = vld [vmem:[%s3913_s1 + $0x8] sm:$0xff] (!%p171_p3)   ;;  %v3041_v10 = vld [vmem:[%s3913_s1 + $0x10] sm:$0xff] (!%p171_p3)  }
   0x9   : > { %v3034_v3 = vld [vmem:[%s3913_s1 + $0x80] sm:$0xff] (!%p171_p3)   ;;  %2743 = vmatpush3.bf16.msra.mxu0 (!%p171_p3), %v3033_v2  ;;  %v3038_v7 = vld [vmem:[%s3913_s1 + $0x88] sm:$0xff] (!%p171_p3)   ;;  %v3042_v11 = vld [vmem:[%s3913_s1 + $0x90] sm:$0xff] (!%p171_p3)  }
   0xa   : > { %2765 = vmatpush3.bf16.msra.mxu1 (!%p171_p3), %v3034_v3  ;;  %2744 = vmatprep.subr.bf16.mxu0 (!%p171_p3), %v3035_v4  ;;  %v3043_v12 = vld [vmem:[%s3913_s1 + $0x58] sm:$0xff] (!%p171_p3)   ;;  %v3047_v16 = vld [vmem:[%s3913_s1 + $0x60] sm:$0xff] (!%p171_p3)   ;;  %v3051_v20 = vld [vmem:[%s3913_s1 + $0x68] sm:$0xff] (!%p171_p3)  }
   0xb   : > { %2766 = vmatprep.subr.bf16.mxu1 (!%p171_p3), %v3036_v5  ;;  %v3044_v13 = vld [vmem:[%s3913_s1 + $0xd8] sm:$0xff] (!%p171_p3)   ;;  %v3048_v17 = vld [vmem:[%s3913_s1 + $0xe0] sm:$0xff] (!%p171_p3)   ;;  %v3052_v21 = vld [vmem:[%s3913_s1 + $0xe8] sm:$0xff] (!%p171_p3)  }
   0xc   : > { %v3045_v14 = vld [vmem:[%s3913_s1 + $0x18] sm:$0xff] (!%p171_p3)   ;;  %v3049_v18 = vld [vmem:[%s3913_s1 + $0x20] sm:$0xff] (!%p171_p3)   ;;  %v3053_v22 = vld [vmem:[%s3913_s1 + $0x28] sm:$0xff] (!%p171_p3)  }
   0xd   : > { %2745 = vmatpush3.bf16.msra.mxu0 (!%p171_p3), %v3037_v6  ;;  %v3046_v15 = vld [vmem:[%s3913_s1 + $0x98] sm:$0xff] (!%p171_p3)   ;;  %v3050_v19 = vld [vmem:[%s3913_s1 + $0xa0] sm:$0xff] (!%p171_p3)   ;;  %v3054_v23 = vld [vmem:[%s3913_s1 + $0xa8] sm:$0xff] (!%p171_p3)  }
   0xe   : > { %2767 = vmatpush3.bf16.msra.mxu1 %v3038_v7  ;;  %2746 = vmatprep.subr.bf16.mxu0 %v3039_v8  ;;  %s3921_s23 = smov (!%p206_p4, %s2519_s23), 3  ;;  %v3055_v24 = vld [vmem:[%s3913_s1 + $0x70] sm:$0xff]   ;;  %v3059_v28 = vld [vmem:[%s3913_s1 + $0x78] sm:$0xff]   ;;  %v3063_v40 = vld [vmem:[%s3913_s1 + $0x140] sm:$0xff]  }
   0xf   : > { %2768 = vmatprep.subr.bf16.mxu1 %v3040_v9  ;;  %v3056_v25 = vld [vmem:[%s3913_s1 + $0xf0] sm:$0xff]   ;;  %s3006_s22 = smul.u32 96, %s3921_s23  ;;  %v3060_v29 = vld [vmem:[%s3913_s1 + $0xf8] sm:$0xff]   ;;  %v3064_v41 = vld [vmem:[%s3913_s1 + $0x1c0] sm:$0xff]  }
  0x10   : > { %v3057_v26 = vld [vmem:[%s3913_s1 + $0x30] sm:$0xff]   ;;  %v3061_v30 = vld [vmem:[%s3913_s1 + $0x38] sm:$0xff]   ;;  %v3065_v42 = vld [vmem:[%s3913_s1 + $0x100] sm:$0xff]  }
  0x11   : > { %2747 = vmatpush3.bf16.msra.mxu0 %v3041_v10  ;;  %v3058_v27 = vld [vmem:[%s3913_s1 + $0xb0] sm:$0xff]   ;;  %s3384_s6 = scalar_lea.vmem %s3912_s0, %s3006_s22  ;;  %v3062_v31 = vld [vmem:[%s3913_s1 + $0xb8] sm:$0xff]   ;;  %v3066_v43 = vld [vmem:[%s3913_s1 + $0x180] sm:$0xff]  }
  0x12   : > { %2769 = vmatpush3.bf16.msra.mxu1 %v3042_v11  ;;  %2748 = vmatprep.subr.bf16.mxu0 %v3043_v12  ;;  %v229_v32 = vld [vmem:[%s3384_s6] sm:$0xff]  ;;  %v230_v34 = vld [vmem:[%s3384_s6 + $0x8] sm:$0xff]  ;;  %v3071_v48 = vld [vmem:[%s3913_s1 + $0x150] sm:$0xff]  }
  0x13   : > { %2770 = vmatprep.subr.bf16.mxu1 %v3044_v13  ;;  %v241_v33 = vld [vmem:[%s3384_s6 + $0x60] sm:$0xff]  ;;  %v242_v37 = vld [vmem:[%s3384_s6 + $0x68] sm:$0xff]  ;;  %v3072_v49 = vld [vmem:[%s3913_s1 + $0x1d0] sm:$0xff]  }
  0x14   : > { %v2524_v35 = vcombine.low %v229_v32, %v241_v33  ;;  %v2525_v36 = vcombine.high %v229_v32, %v241_v33  ;;  %v2526_v38 = vcombine.low %v230_v34, %v242_v37  ;;  %v2527_v39 = vcombine.high %v230_v34, %v242_v37  ;;  %v3067_v44 = vld [vmem:[%s3913_s1 + $0x148] sm:$0xff]   ;;  %v3073_v50 = vld [vmem:[%s3913_s1 + $0x110] sm:$0xff]   ;;  %v3075_v52 = vld [vmem:[%s3913_s1 + $0x158] sm:$0xff]  }
  0x15   : > { %2749 = vmatpush3.bf16.msra.mxu0 %v3045_v14  ;;  %v3068_v45 = vld [vmem:[%s3913_s1 + $0x1c8] sm:$0xff]   ;;  %v3074_v51 = vld [vmem:[%s3913_s1 + $0x190] sm:$0xff]   ;;  %v3076_v53 = vld [vmem:[%s3913_s1 + $0x1d8] sm:$0xff]  }
  0x16   : > { %2771 = vmatpush3.bf16.msra.mxu1 %v3046_v15  ;;  %2750 = vmatprep.subr.bf16.mxu0 %v3047_v16  ;;  %v3069_v46 = vld [vmem:[%s3913_s1 + $0x108] sm:$0xff]   ;;  %v3077_v54 = vld [vmem:[%s3913_s1 + $0x118] sm:$0xff]   ;;  %v3079_v56 = vld [vmem:[%s3913_s1 + $0x160] sm:$0xff]  }
  0x17   : > { %2772 = vmatprep.subr.bf16.mxu1 %v3048_v17  ;;  %1948 = vmatprep.mubr.bf16.mxu0 %v2525_v36  ;;  %v3070_v47 = vld [vmem:[%s3913_s1 + $0x188] sm:$0xff]   ;;  %v3078_v55 = vld [vmem:[%s3913_s1 + $0x198] sm:$0xff]   ;;  %v3080_v57 = vld [vmem:[%s3913_s1 + $0x1e0] sm:$0xff]  }
  0x18   : > { %1989 = vmatprep.mubr.bf16.mxu1 %v2527_v39  ;;  %v3081_v58 = vld [vmem:[%s3913_s1 + $0x120] sm:$0xff]   ;;  %v3083_v60 = vld [vmem:[%s3913_s1 + $0x168] sm:$0xff]   ;;  %v3087_v0 = vld [vmem:[%s3913_s1 + $0x170] sm:$0xff]  }
  0x19   : > { %2751 = vmatpush3.bf16.msra.mxu0 %v3049_v18  ;;  %v3082_v59 = vld [vmem:[%s3913_s1 + $0x1a0] sm:$0xff]   ;;  %v3084_v61 = vld [vmem:[%s3913_s1 + $0x1e8] sm:$0xff]   ;;  %v3088_v1 = vld [vmem:[%s3913_s1 + $0x1f0] sm:$0xff]  }
  0x1a   : > { %2773 = vmatpush3.bf16.msra.mxu1 %v3050_v19  ;;  %2752 = vmatprep.subr.bf16.mxu0 %v3051_v20  ;;  %v3085_v62 = vld [vmem:[%s3913_s1 + $0x128] sm:$0xff]   ;;  %v3089_v2 = vld [vmem:[%s3913_s1 + $0x130] sm:$0xff]   ;;  %v3091_v4 = vld [vmem:[%s3913_s1 + $0x178] sm:$0xff]  }
  0x1b   : > { %2774 = vmatprep.subr.bf16.mxu1 %v3052_v21  ;;  %v3086_v63 = vld [vmem:[%s3913_s1 + $0x1a8] sm:$0xff]   ;;  %v3090_v3 = vld [vmem:[%s3913_s1 + $0x1b0] sm:$0xff]   ;;  %v3092_v5 = vld [vmem:[%s3913_s1 + $0x1f8] sm:$0xff]  }
  0x1c   : > { %v3093_v6 = vld [vmem:[%s3913_s1 + $0x138] sm:$0xff]   ;;  %v231_v8 = vld [vmem:[%s3384_s6 + $0x10] sm:$0xff]  ;;  %v3095_v16 = vld [vmem:[%s3913_s1 + $0x240] sm:$0xff]  }
  0x1d   : > { %2753 = vmatpush3.bf16.msra.mxu0 %v3053_v22  ;;  %v3094_v7 = vld [vmem:[%s3913_s1 + $0x1b8] sm:$0xff]   ;;  %v243_v9 = vld [vmem:[%s3384_s6 + $0x70] sm:$0xff]  ;;  %v3096_v17 = vld [vmem:[%s3913_s1 + $0x2c0] sm:$0xff]  }
  0x1e   : > { %2775 = vmatpush3.bf16.msra.mxu1 %v3054_v23  ;;  %2754 = vmatprep.subr.bf16.mxu0 %v3055_v24  ;;  %v2528_v10 = vcombine.low %v231_v8, %v243_v9  ;;  %v2529_v11 = vcombine.high %v231_v8, %v243_v9  ;;  %v232_v12 = vld [vmem:[%s3384_s6 + $0x18] sm:$0xff]  ;;  %v3097_v18 = vld [vmem:[%s3913_s1 + $0x200] sm:$0xff]   ;;  %v3099_v20 = vld [vmem:[%s3913_s1 + $0x248] sm:$0xff]  }
  0x1f   : > { %2776 = vmatprep.subr.bf16.mxu1 %v3056_v25  ;;  %v244_v13 = vld [vmem:[%s3384_s6 + $0x78] sm:$0xff]  ;;  %v3098_v19 = vld [vmem:[%s3913_s1 + $0x280] sm:$0xff]   ;;  %v3100_v21 = vld [vmem:[%s3913_s1 + $0x2c8] sm:$0xff]  }
  0x20   : > { %v2530_v14 = vcombine.low %v232_v12, %v244_v13  ;;  %v2531_v15 = vcombine.high %v232_v12, %v244_v13  ;;  %v3101_v22 = vld [vmem:[%s3913_s1 + $0x208] sm:$0xff]   ;;  %v3103_v24 = vld [vmem:[%s3913_s1 + $0x250] sm:$0xff]   ;;  %v3111_v32 = vld [vmem:[%s3913_s1 + $0x260] sm:$0xff]  }
  0x21   : > { %2755 = vmatpush3.bf16.msra.mxu0 %v3057_v26  ;;  %v3102_v23 = vld [vmem:[%s3913_s1 + $0x288] sm:$0xff]   ;;  %v3104_v25 = vld [vmem:[%s3913_s1 + $0x2d0] sm:$0xff]   ;;  %v3112_v33 = vld [vmem:[%s3913_s1 + $0x2e0] sm:$0xff]  }
  0x22   : > { %2777 = vmatpush3.bf16.msra.mxu1 %v3058_v27  ;;  %2756 = vmatprep.subr.bf16.mxu0 %v3059_v28  ;;  %v3105_v26 = vld [vmem:[%s3913_s1 + $0x210] sm:$0xff]   ;;  %v3107_v28 = vld [vmem:[%s3913_s1 + $0x258] sm:$0xff]   ;;  %v3113_v34 = vld [vmem:[%s3913_s1 + $0x220] sm:$0xff]  }
  0x23   : > { %2778 = vmatprep.subr.bf16.mxu1 %v3060_v29  ;;  %v3106_v27 = vld [vmem:[%s3913_s1 + $0x290] sm:$0xff]   ;;  %v3108_v29 = vld [vmem:[%s3913_s1 + $0x2d8] sm:$0xff]   ;;  %v3115_v36 = vld [vmem:[%s3913_s1 + $0x268] sm:$0xff]  }
  0x24   : > { %v3116_v37 = vld [vmem:[%s3913_s1 + $0x2e8] sm:$0xff]   ;;  %v3143_v8 = vld [vmem:[%s3913_s1 + $0x360] sm:$0xff]  }
  0x25   : > { %2757 = vmatpush3.bf16.msra.mxu0 %v3061_v30  ;;  %v3109_v30 = vld [vmem:[%s3913_s1 + $0x218] sm:$0xff]   ;;  %v3118_v39 = vld [vmem:[%s3913_s1 + $0x2a8] sm:$0xff]   ;;  %v3144_v9 = vld [vmem:[%s3913_s1 + $0x3e0] sm:$0xff]  }
  0x26   : > { %2779 = vmatpush3.bf16.msra.mxu1 %v3062_v31  ;;  %2786 = vmatprep.subr.bf16.mxu0 %v3063_v40  ;;  %v3110_v31 = vld [vmem:[%s3913_s1 + $0x298] sm:$0xff]   ;;  %v3119_v40 = vld [vmem:[%s3913_s1 + $0x270] sm:$0xff]   ;;  %v3147_v12 = vld [vmem:[%s3913_s1 + $0x368] sm:$0xff]  }
  0x27   : > { %2808 = vmatprep.subr.bf16.mxu1 %v3064_v41  ;;  %v3120_v41 = vld [vmem:[%s3913_s1 + $0x2f0] sm:$0xff]   ;;  %v3148_v13 = vld [vmem:[%s3913_s1 + $0x3e8] sm:$0xff]  }
  0x28   : > { %1949 = vmatmul.mubr.bf16.vlgmr.msra.gmra.mrb[0].mxu0 %v2524_v35  ;;  %v3114_v35 = vld [vmem:[%s3913_s1 + $0x2a0] sm:$0xff]  }
  0x29   : > { %1990 = vmatmul.mubr.bf16.vlgmr.msra.gmra.mrb[0].mxu1 %v2526_v38  ;;  %2787 = vmatpush3.bf16.msra.mxu0 %v3065_v42  ;;  %v3117_v38 = vld [vmem:[%s3913_s1 + $0x228] sm:$0xff]   ;;  %v3121_v42 = vld [vmem:[%s3913_s1 + $0x230] sm:$0xff]  }
  0x2a   : > { %2809 = vmatpush3.bf16.msra.mxu1 %v3066_v43  ;;  %2788 = vmatprep.subr.bf16.mxu0 %v3067_v44  ;;  %v3122_v43 = vld [vmem:[%s3913_s1 + $0x2b0] sm:$0xff]   ;;  %v3123_v44 = vld [vmem:[%s3913_s1 + $0x278] sm:$0xff]  }
  0x2b   : > { %2810 = vmatprep.subr.bf16.mxu1 %v3068_v45  ;;  %2030 = vmatprep.mubr.bf16.mxu0 %v2529_v11  ;;  %v3124_v45 = vld [vmem:[%s3913_s1 + $0x2f8] sm:$0xff]   ;;  %v3146_v11 = vld [vmem:[%s3913_s1 + $0x3a0] sm:$0xff]  }
  0x2c   : > { %2071 = vmatprep.mubr.bf16.mxu1 %v2531_v15  ;;  %v3150_v15 = vld [vmem:[%s3913_s1 + $0x3a8] sm:$0xff]  }
  0x2d   : > { %2789 = vmatpush3.bf16.msra.mxu0 %v3069_v46  ;;  %v3125_v46 = vld [vmem:[%s3913_s1 + $0x238] sm:$0xff]  }
  0x2e   : > { %2811 = vmatpush3.bf16.msra.mxu1 %v3070_v47  ;;  %2790 = vmatprep.subr.bf16.mxu0 %v3071_v48  ;;  %v3126_v47 = vld [vmem:[%s3913_s1 + $0x2b8] sm:$0xff]   ;;  %v233_v48 = vld [vmem:[%s3384_s6 + $0x20] sm:$0xff] }
  0x2f   : > { %2812 = vmatprep.subr.bf16.mxu1 %v3072_v49  ;;  %v245_v49 = vld [vmem:[%s3384_s6 + $0x80] sm:$0xff] }
  0x31   : > { %2791 = vmatpush3.bf16.msra.mxu0 %v3073_v50  ;;  %v234_v50 = vld [vmem:[%s3384_s6 + $0x28] sm:$0xff] }
  0x32   : > { %2813 = vmatpush3.bf16.msra.mxu1 %v3074_v51  ;;  %2792 = vmatprep.subr.bf16.mxu0 %v3075_v52  ;;  %v246_v51 = vld [vmem:[%s3384_s6 + $0x88] sm:$0xff]  ;;  %v2532_v52 = vcombine.low %v233_v48, %v245_v49 }
  0x33   : > { %2814 = vmatprep.subr.bf16.mxu1 %v3076_v53  ;;  %v2533_v53 = vcombine.high %v233_v48, %v245_v49  ;;  %v3175_v48 = vld [vmem:[%s3913_s1 + $0x460] sm:$0xff]  }
  0x34   : > { %v3176_v49 = vld [vmem:[%s3913_s1 + $0x4e0] sm:$0xff]  }
  0x35   : > { %2793 = vmatpush3.bf16.msra.mxu0 %v3077_v54  ;;  %v2534_v54 = vcombine.low %v234_v50, %v246_v51 }
  0x36   : > { %2815 = vmatpush3.bf16.msra.mxu1 %v3078_v55  ;;  %2794 = vmatprep.subr.bf16.mxu0 %v3079_v56  ;;  %v2535_v55 = vcombine.high %v234_v50, %v246_v51  ;;  %v3127_v56 = vld [vmem:[%s3913_s1 + $0x340] sm:$0xff]  }
  0x37   : > { %2816 = vmatprep.subr.bf16.mxu1 %v3080_v57  ;;  %v3128_v57 = vld [vmem:[%s3913_s1 + $0x3c0] sm:$0xff]  }
  0x38   : > { %v3177_v50 = vld [vmem:[%s3913_s1 + $0x420] sm:$0xff]  }
  0x39   : > { %2795 = vmatpush3.bf16.msra.mxu0 %v3081_v58  ;;  %v3129_v58 = vld [vmem:[%s3913_s1 + $0x300] sm:$0xff]  }
  0x3a   : > { %2817 = vmatpush3.bf16.msra.mxu1 %v3082_v59  ;;  %2796 = vmatprep.subr.bf16.mxu0 %v3083_v60  ;;  %v3130_v59 = vld [vmem:[%s3913_s1 + $0x380] sm:$0xff]   ;;  %v3131_v60 = vld [vmem:[%s3913_s1 + $0x348] sm:$0xff]  }
  0x3b   : > { %2818 = vmatprep.subr.bf16.mxu1 %v3084_v61  ;;  %v3132_v61 = vld [vmem:[%s3913_s1 + $0x3c8] sm:$0xff]   ;;  %v3178_v51 = vld [vmem:[%s3913_s1 + $0x4a0] sm:$0xff]  }
  0x3d   : > { %2797 = vmatpush3.bf16.msra.mxu0 %v3085_v62  ;;  %v3133_v62 = vld [vmem:[%s3913_s1 + $0x308] sm:$0xff]  }
  0x3e   : > { %2819 = vmatpush3.bf16.msra.mxu1 %v3086_v63  ;;  %2798 = vmatprep.subr.bf16.mxu0 %v3087_v0  ;;  %v3134_v63 = vld [vmem:[%s3913_s1 + $0x388] sm:$0xff]   ;;  %v3135_v0 = vld [vmem:[%s3913_s1 + $0x350] sm:$0xff]  }
  0x3f   : > { %2820 = vmatprep.subr.bf16.mxu1 %v3088_v1  ;;  %v3136_v1 = vld [vmem:[%s3913_s1 + $0x3d0] sm:$0xff]  }
  0x41   : > { %2799 = vmatpush3.bf16.msra.mxu0 %v3089_v2  ;;  %v3137_v2 = vld [vmem:[%s3913_s1 + $0x310] sm:$0xff]  }
  0x42   : > { %2821 = vmatpush3.bf16.msra.mxu1 %v3090_v3  ;;  %2800 = vmatprep.subr.bf16.mxu0 %v3091_v4  ;;  %v3138_v3 = vld [vmem:[%s3913_s1 + $0x390] sm:$0xff]   ;;  %v3139_v4 = vld [vmem:[%s3913_s1 + $0x358] sm:$0xff]  }
  0x43   : > { %2822 = vmatprep.subr.bf16.mxu1 %v3092_v5  ;;  %v3140_v5 = vld [vmem:[%s3913_s1 + $0x3d8] sm:$0xff]  }
  0x45   : > { %2801 = vmatpush3.bf16.msra.mxu0 %v3093_v6  ;;  %v3141_v6 = vld [vmem:[%s3913_s1 + $0x318] sm:$0xff]  }
  0x46   : > { %2823 = vmatpush3.bf16.msra.mxu1 %v3094_v7  ;;  %2830 = vmatprep.subr.bf16.mxu0 %v3095_v16  ;;  %v3142_v7 = vld [vmem:[%s3913_s1 + $0x398] sm:$0xff]   ;;  %v3151_v16 = vld [vmem:[%s3913_s1 + $0x370] sm:$0xff]  }
  0x47   : > { %2852 = vmatprep.subr.bf16.mxu1 %v3096_v17  ;;  %v3152_v17 = vld [vmem:[%s3913_s1 + $0x3f0] sm:$0xff]  }
  0x48   : > { %2031 = vmatmul.mubr.bf16.vlgmr.msra.gmra.mrb[4].mxu0 %v2528_v10  ;;  %v3145_v10 = vld [vmem:[%s3913_s1 + $0x320] sm:$0xff]  }
  0x49   : > { %2072 = vmatmul.mubr.bf16.vlgmr.msra.gmra.mrb[4].mxu1 %v2530_v14  ;;  %2831 = vmatpush3.bf16.msra.mxu0 %v3097_v18  ;;  %v3149_v14 = vld [vmem:[%s3913_s1 + $0x328] sm:$0xff]   ;;  %v3153_v18 = vld [vmem:[%s3913_s1 + $0x330] sm:$0xff]  }
  0x4a   : > { %2853 = vmatpush3.bf16.msra.mxu1 %v3098_v19  ;;  %2832 = vmatprep.subr.bf16.mxu0 %v3099_v20  ;;  %v3154_v19 = vld [vmem:[%s3913_s1 + $0x3b0] sm:$0xff]   ;;  %v3155_v20 = vld [vmem:[%s3913_s1 + $0x378] sm:$0xff]  }
  0x4b   : > { %2854 = vmatprep.subr.bf16.mxu1 %v3100_v21  ;;  %2112 = vmatprep.mubr.bf16.mxu0 %v2533_v53  ;;  %v3156_v21 = vld [vmem:[%s3913_s1 + $0x3f8] sm:$0xff]   ;;  %v3180_v53 = vld [vmem:[%s3913_s1 + $0x4e8] sm:$0xff]  }
  0x4c   : > { %2153 = vmatprep.mubr.bf16.mxu1 %v2535_v55  ;;  %v3182_v55 = vld [vmem:[%s3913_s1 + $0x4a8] sm:$0xff]  }
  0x4d   : > { %2833 = vmatpush3.bf16.msra.mxu0 %v3101_v22  ;;  %v3157_v22 = vld [vmem:[%s3913_s1 + $0x338] sm:$0xff]  }
  0x4e   : > { %2855 = vmatpush3.bf16.msra.mxu1 %v3102_v23  ;;  %2834 = vmatprep.subr.bf16.mxu0 %v3103_v24  ;;  %v3158_v23 = vld [vmem:[%s3913_s1 + $0x3b8] sm:$0xff]   ;;  %v235_v24 = vld [vmem:[%s3384_s6 + $0x30] sm:$0xff] }
  0x4f   : > { %2856 = vmatprep.subr.bf16.mxu1 %v3104_v25  ;;  %v247_v25 = vld [vmem:[%s3384_s6 + $0x90] sm:$0xff] }
  0x51   : > { %2835 = vmatpush3.bf16.msra.mxu0 %v3105_v26  ;;  %v236_v26 = vld [vmem:[%s3384_s6 + $0x38] sm:$0xff] }
  0x52   : > { %2857 = vmatpush3.bf16.msra.mxu1 %v3106_v27  ;;  %2836 = vmatprep.subr.bf16.mxu0 %v3107_v28  ;;  %v2536_v27 = vcombine.low %v235_v24, %v247_v25  ;;  %v2537_v28 = vcombine.high %v235_v24, %v247_v25  ;;  %v3207_v24 = vld [vmem:[%s3913_s1 + $0x560] sm:$0xff]  }
  0x53   : > { %2858 = vmatprep.subr.bf16.mxu1 %v3108_v29  ;;  %v248_v29 = vld [vmem:[%s3384_s6 + $0x98] sm:$0xff]  ;;  %v3208_v25 = vld [vmem:[%s3913_s1 + $0x5e0] sm:$0xff]  }
  0x55   : > { %2837 = vmatpush3.bf16.msra.mxu0 %v3109_v30  ;;  %v2538_v30 = vcombine.low %v236_v26, %v248_v29 }
  0x56   : > { %2859 = vmatpush3.bf16.msra.mxu1 %v3110_v31  ;;  %2838 = vmatprep.subr.bf16.mxu0 %v3111_v32  ;;  %v2539_v31 = vcombine.high %v236_v26, %v248_v29  ;;  %v3159_v32 = vld [vmem:[%s3913_s1 + $0x440] sm:$0xff]   ;;  %v3212_v29 = vld [vmem:[%s3913_s1 + $0x5e8] sm:$0xff]  }
  0x57   : > { %2860 = vmatprep.subr.bf16.mxu1 %v3112_v33  ;;  %v3160_v33 = vld [vmem:[%s3913_s1 + $0x4c0] sm:$0xff]  }
  0x58   : > { %v3209_v26 = vld [vmem:[%s3913_s1 + $0x520] sm:$0xff]  }
  0x59   : > { %2839 = vmatpush3.bf16.msra.mxu0 %v3113_v34  ;;  %v3161_v34 = vld [vmem:[%s3913_s1 + $0x400] sm:$0xff]  }
  0x5a   : > { %2861 = vmatpush3.bf16.msra.mxu1 %v3114_v35  ;;  %2840 = vmatprep.subr.bf16.mxu0 %v3115_v36  ;;  %v3162_v35 = vld [vmem:[%s3913_s1 + $0x480] sm:$0xff]   ;;  %v3163_v36 = vld [vmem:[%s3913_s1 + $0x448] sm:$0xff]  }
  0x5b   : > { %2862 = vmatprep.subr.bf16.mxu1 %v3116_v37  ;;  %v3164_v37 = vld [vmem:[%s3913_s1 + $0x4c8] sm:$0xff]  }
  0x5d   : > { %2841 = vmatpush3.bf16.msra.mxu0 %v3117_v38  ;;  %v3165_v38 = vld [vmem:[%s3913_s1 + $0x408] sm:$0xff]  }
  0x5e   : > { %2863 = vmatpush3.bf16.msra.mxu1 %v3118_v39  ;;  %2842 = vmatprep.subr.bf16.mxu0 %v3119_v40  ;;  %v3166_v39 = vld [vmem:[%s3913_s1 + $0x488] sm:$0xff]   ;;  %v3167_v40 = vld [vmem:[%s3913_s1 + $0x450] sm:$0xff]  }
  0x5f   : > { %2864 = vmatprep.subr.bf16.mxu1 %v3120_v41  ;;  %v3168_v41 = vld [vmem:[%s3913_s1 + $0x4d0] sm:$0xff]  }
  0x61   : > { %2843 = vmatpush3.bf16.msra.mxu0 %v3121_v42  ;;  %v3169_v42 = vld [vmem:[%s3913_s1 + $0x410] sm:$0xff]  }
  0x62   : > { %2865 = vmatpush3.bf16.msra.mxu1 %v3122_v43  ;;  %2844 = vmatprep.subr.bf16.mxu0 %v3123_v44  ;;  %v3170_v43 = vld [vmem:[%s3913_s1 + $0x490] sm:$0xff]   ;;  %v3171_v44 = vld [vmem:[%s3913_s1 + $0x458] sm:$0xff]  }
  0x63   : > { %2866 = vmatprep.subr.bf16.mxu1 %v3124_v45  ;;  %v3172_v45 = vld [vmem:[%s3913_s1 + $0x4d8] sm:$0xff]  }
  0x65   : > { %2845 = vmatpush3.bf16.msra.mxu0 %v3125_v46  ;;  %v3173_v46 = vld [vmem:[%s3913_s1 + $0x418] sm:$0xff]  }
  0x66   : > { %2867 = vmatpush3.bf16.msra.mxu1 %v3126_v47  ;;  %2874 = vmatprep.subr.bf16.mxu0 %v3127_v56  ;;  %v3174_v47 = vld [vmem:[%s3913_s1 + $0x498] sm:$0xff]   ;;  %v3183_v56 = vld [vmem:[%s3913_s1 + $0x470] sm:$0xff]  }
  0x67   : > { %2896 = vmatprep.subr.bf16.mxu1 %v3128_v57  ;;  %v3184_v57 = vld [vmem:[%s3913_s1 + $0x4f0] sm:$0xff]  }
  0x68   : > { %2113 = vmatmul.mubr.bf16.vlgmr.msra.gmra.mrb[8].mxu0 %v2532_v52  ;;  %v3179_v52 = vld [vmem:[%s3913_s1 + $0x468] sm:$0xff]  }
  0x69   : > { %2154 = vmatmul.mubr.bf16.vlgmr.msra.gmra.mrb[8].mxu1 %v2534_v54  ;;  %2875 = vmatpush3.bf16.msra.mxu0 %v3129_v58  ;;  %v3181_v54 = vld [vmem:[%s3913_s1 + $0x428] sm:$0xff]   ;;  %v3185_v58 = vld [vmem:[%s3913_s1 + $0x430] sm:$0xff]  }
  0x6a   : > { %2897 = vmatpush3.bf16.msra.mxu1 %v3130_v59  ;;  %2876 = vmatprep.subr.bf16.mxu0 %v3131_v60  ;;  %v3186_v59 = vld [vmem:[%s3913_s1 + $0x4b0] sm:$0xff]   ;;  %v3187_v60 = vld [vmem:[%s3913_s1 + $0x478] sm:$0xff]  }
  0x6b   : > { %2898 = vmatprep.subr.bf16.mxu1 %v3132_v61  ;;  %2194 = vmatprep.mubr.bf16.mxu0 %v2537_v28  ;;  %v3188_v61 = vld [vmem:[%s3913_s1 + $0x4f8] sm:$0xff]   ;;  %v3211_v28 = vld [vmem:[%s3913_s1 + $0x568] sm:$0xff]  }
  0x6c   : > { %2235 = vmatprep.mubr.bf16.mxu1 %v2539_v31  ;;  %v3214_v31 = vld [vmem:[%s3913_s1 + $0x5a8] sm:$0xff]  }
  0x6d   : > { %2877 = vmatpush3.bf16.msra.mxu0 %v3133_v62  ;;  %v3189_v62 = vld [vmem:[%s3913_s1 + $0x438] sm:$0xff]  }
  0x6e   : > { %2899 = vmatpush3.bf16.msra.mxu1 %v3134_v63  ;;  %2878 = vmatprep.subr.bf16.mxu0 %v3135_v0  ;;  %v3190_v63 = vld [vmem:[%s3913_s1 + $0x4b8] sm:$0xff]   ;;  %v237_v0 = vld [vmem:[%s3384_s6 + $0x40] sm:$0xff] }
  0x6f   : > { %2900 = vmatprep.subr.bf16.mxu1 %v3136_v1  ;;  %v249_v1 = vld [vmem:[%s3384_s6 + $0xa0] sm:$0xff] }
  0x71   : > { %2879 = vmatpush3.bf16.msra.mxu0 %v3137_v2  ;;  %v2540_v2 = vcombine.low %v237_v0, %v249_v1 }
  0x72   : > { %2901 = vmatpush3.bf16.msra.mxu1 %v3138_v3  ;;  %2880 = vmatprep.subr.bf16.mxu0 %v3139_v4  ;;  %v2541_v3 = vcombine.high %v237_v0, %v249_v1  ;;  %v238_v4 = vld [vmem:[%s3384_s6 + $0x48] sm:$0xff] }
  0x73   : > { %2902 = vmatprep.subr.bf16.mxu1 %v3140_v5  ;;  %v250_v5 = vld [vmem:[%s3384_s6 + $0xa8] sm:$0xff] }
  0x75   : > { %2881 = vmatpush3.bf16.msra.mxu0 %v3141_v6  ;;  %v2542_v6 = vcombine.low %v238_v4, %v250_v5 }
  0x76   : > { %2903 = vmatpush3.bf16.msra.mxu1 %v3142_v7  ;;  %2882 = vmatprep.subr.bf16.mxu0 %v3143_v8  ;;  %v2543_v7 = vcombine.high %v238_v4, %v250_v5  ;;  %v3191_v8 = vld [vmem:[%s3913_s1 + $0x540] sm:$0xff]  }
  0x77   : > { %2904 = vmatprep.subr.bf16.mxu1 %v3144_v9  ;;  %v3192_v9 = vld [vmem:[%s3913_s1 + $0x5c0] sm:$0xff]  }
  0x79   : > { %2883 = vmatpush3.bf16.msra.mxu0 %v3145_v10  ;;  %v3193_v10 = vld [vmem:[%s3913_s1 + $0x500] sm:$0xff]  }
  0x7a   : > { %2905 = vmatpush3.bf16.msra.mxu1 %v3146_v11  ;;  %2884 = vmatprep.subr.bf16.mxu0 %v3147_v12  ;;  %v3194_v11 = vld [vmem:[%s3913_s1 + $0x580] sm:$0xff]   ;;  %v3195_v12 = vld [vmem:[%s3913_s1 + $0x548] sm:$0xff]  }
  0x7b   : > { %2906 = vmatprep.subr.bf16.mxu1 %v3148_v13  ;;  %v3196_v13 = vld [vmem:[%s3913_s1 + $0x5c8] sm:$0xff]  }
  0x7d   : > { %2885 = vmatpush3.bf16.msra.mxu0 %v3149_v14  ;;  %v3197_v14 = vld [vmem:[%s3913_s1 + $0x508] sm:$0xff]  }
  0x7e   : > { %2907 = vmatpush3.bf16.msra.mxu1 %v3150_v15  ;;  %2886 = vmatprep.subr.bf16.mxu0 %v3151_v16  ;;  %v3198_v15 = vld [vmem:[%s3913_s1 + $0x588] sm:$0xff]   ;;  %v3199_v16 = vld [vmem:[%s3913_s1 + $0x550] sm:$0xff]  }
  0x7f   : > { %2908 = vmatprep.subr.bf16.mxu1 %v3152_v17  ;;  %v3200_v17 = vld [vmem:[%s3913_s1 + $0x5d0] sm:$0xff]  }
  0x81   : > { %2887 = vmatpush3.bf16.msra.mxu0 %v3153_v18  ;;  %v3201_v18 = vld [vmem:[%s3913_s1 + $0x510] sm:$0xff]  }
  0x82   : > { %2909 = vmatpush3.bf16.msra.mxu1 %v3154_v19  ;;  %2888 = vmatprep.subr.bf16.mxu0 %v3155_v20  ;;  %v3202_v19 = vld [vmem:[%s3913_s1 + $0x590] sm:$0xff]   ;;  %v3203_v20 = vld [vmem:[%s3913_s1 + $0x558] sm:$0xff]  }
  0x83   : > { %2910 = vmatprep.subr.bf16.mxu1 %v3156_v21  ;;  %v3204_v21 = vld [vmem:[%s3913_s1 + $0x5d8] sm:$0xff]  }
  0x85   : > { %2889 = vmatpush3.bf16.msra.mxu0 %v3157_v22  ;;  %v3205_v22 = vld [vmem:[%s3913_s1 + $0x518] sm:$0xff]  }
  0x86   : > { %2911 = vmatpush3.bf16.msra.mxu1 %v3158_v23  ;;  %2918 = vmatprep.subr.bf16.mxu0 %v3159_v32  ;;  %v3206_v23 = vld [vmem:[%s3913_s1 + $0x598] sm:$0xff]   ;;  %v3215_v32 = vld [vmem:[%s3913_s1 + $0x570] sm:$0xff]  }
  0x87   : > { %2940 = vmatprep.subr.bf16.mxu1 %v3160_v33  ;;  %v3216_v33 = vld [vmem:[%s3913_s1 + $0x5f0] sm:$0xff]  }
  0x88   : > { %2195 = vmatmul.mubr.bf16.vlgmr.msra.gmra.mrb[12].mxu0 %v2536_v27  ;;  %v3210_v27 = vld [vmem:[%s3913_s1 + $0x5a0] sm:$0xff]  }
  0x89   : > { %2236 = vmatmul.mubr.bf16.vlgmr.msra.gmra.mrb[12].mxu1 %v2538_v30  ;;  %2919 = vmatpush3.bf16.msra.mxu0 %v3161_v34  ;;  %v3213_v30 = vld [vmem:[%s3913_s1 + $0x528] sm:$0xff]   ;;  %v3217_v34 = vld [vmem:[%s3913_s1 + $0x530] sm:$0xff]  }
  0x8a   : > { %2941 = vmatpush3.bf16.msra.mxu1 %v3162_v35  ;;  %2920 = vmatprep.subr.bf16.mxu0 %v3163_v36  ;;  %v3218_v35 = vld [vmem:[%s3913_s1 + $0x5b0] sm:$0xff]   ;;  %v3219_v36 = vld [vmem:[%s3913_s1 + $0x578] sm:$0xff]  }
  0x8b   : > { %2942 = vmatprep.subr.bf16.mxu1 %v3164_v37  ;;  %2276 = vmatprep.mubr.bf16.mxu0 %v2541_v3  ;;  %v3220_v37 = vld [vmem:[%s3913_s1 + $0x5f8] sm:$0xff]  }
  0x8c   : > { %2317 = vmatprep.mubr.bf16.mxu1 %v2543_v7 }
  0x8d   : > { %2921 = vmatpush3.bf16.msra.mxu0 %v3165_v38  ;;  %v3221_v38 = vld [vmem:[%s3913_s1 + $0x538] sm:$0xff]  }
  0x8e   : > { %2943 = vmatpush3.bf16.msra.mxu1 %v3166_v39  ;;  %2922 = vmatprep.subr.bf16.mxu0 %v3167_v40  ;;  %v3222_v39 = vld [vmem:[%s3913_s1 + $0x5b8] sm:$0xff]   ;;  %v239_v40 = vld [vmem:[%s3384_s6 + $0x50] sm:$0xff] }
  0x8f   : > { %2944 = vmatprep.subr.bf16.mxu1 %v3168_v41  ;;  %v251_v41 = vld [vmem:[%s3384_s6 + $0xb0] sm:$0xff] }
  0x91   : > { %2923 = vmatpush3.bf16.msra.mxu0 %v3169_v42  ;;  %v240_v42 = vld [vmem:[%s3384_s6 + $0x58] sm:$0xff] }
  0x92   : > { %2945 = vmatpush3.bf16.msra.mxu1 %v3170_v43  ;;  %2924 = vmatprep.subr.bf16.mxu0 %v3171_v44  ;;  %v252_v43 = vld [vmem:[%s3384_s6 + $0xb8] sm:$0xff]  ;;  %v2544_v44 = vcombine.low %v239_v40, %v251_v41  ;;  %s2522_s6 = sshll.u32 %s3921_s23, 3 }
  0x93   : > { %2946 = vmatprep.subr.bf16.mxu1 %v3172_v45  ;;  %v2545_v45 = vcombine.high %v239_v40, %v251_v41  ;;  %s226_s12 = scalar_lea.vmem %s3915_s3, %s2522_s6 }
  0x95   : > { %2925 = vmatpush3.bf16.msra.mxu0 %v3173_v46  ;;  %v2546_v46 = vcombine.low %v240_v42, %v252_v43 }
  0x96   : > { %2947 = vmatpush3.bf16.msra.mxu1 %v3174_v47  ;;  %2926 = vmatprep.subr.bf16.mxu0 %v3175_v48  ;;  %v2547_v47 = vcombine.high %v240_v42, %v252_v43 }
  0x97   : > { %2948 = vmatprep.subr.bf16.mxu1 %v3176_v49 }
  0x99   : > { %2927 = vmatpush3.bf16.msra.mxu0 %v3177_v50  ;;  %v2523_v50 = vld [vmem:[%s3914_s2] ss:$0 sm:$0xff] }
  0x9a   : > { %2949 = vmatpush3.bf16.msra.mxu1 %v3178_v51  ;;  %2928 = vmatprep.subr.bf16.mxu0 %v3179_v52 }
  0x9b   : > { %2950 = vmatprep.subr.bf16.mxu1 %v3180_v53 }
  0x9d   : > { %2929 = vmatpush3.bf16.msra.mxu0 %v3181_v54 }
  0x9e   : > { %2951 = vmatpush3.bf16.msra.mxu1 %v3182_v55  ;;  %2930 = vmatprep.subr.bf16.mxu0 %v3183_v56 }
  0x9f   : > { %2952 = vmatprep.subr.bf16.mxu1 %v3184_v57 }
  0xa1   : > { %2931 = vmatpush3.bf16.msra.mxu0 %v3185_v58 }
  0xa2   : > { %2953 = vmatpush3.bf16.msra.mxu1 %v3186_v59  ;;  %2932 = vmatprep.subr.bf16.mxu0 %v3187_v60 }
  0xa3   : > { %2954 = vmatprep.subr.bf16.mxu1 %v3188_v61 }
  0xa5   : > { %2933 = vmatpush3.bf16.msra.mxu0 %v3189_v62 }
  0xa6   : > { %2955 = vmatpush3.bf16.msra.mxu1 %v3190_v63  ;;  %2962 = vmatprep.subr.bf16.mxu0 %v3191_v8 }
  0xa7   : > { %2984 = vmatprep.subr.bf16.mxu1 %v3192_v9 }
  0xa8   : > { %2277 = vmatmul.mubr.bf16.vlgmr.msra.gmra.mrb[16].mxu0 %v2540_v2 }
  0xa9   : > { %2318 = vmatmul.mubr.bf16.vlgmr.msra.gmra.mrb[16].mxu1 %v2542_v6  ;;  %2963 = vmatpush3.bf16.msra.mxu0 %v3193_v10 }
  0xaa   : > { %2985 = vmatpush3.bf16.msra.mxu1 %v3194_v11  ;;  %2964 = vmatprep.subr.bf16.mxu0 %v3195_v12 }
  0xab   : > { %2986 = vmatprep.subr.bf16.mxu1 %v3196_v13  ;;  %2358 = vmatprep.mubr.bf16.mxu0 %v2545_v45 }
  0xac   : > { %2399 = vmatprep.mubr.bf16.mxu1 %v2547_v47 }
  0xad   : > { %2965 = vmatpush3.bf16.msra.mxu0 %v3197_v14 }
  0xae   : > { %2987 = vmatpush3.bf16.msra.mxu1 %v3198_v15  ;;  %2966 = vmatprep.subr.bf16.mxu0 %v3199_v16 }
  0xaf   : > { %2988 = vmatprep.subr.bf16.mxu1 %v3200_v17 }
  0xb1   : > { %2967 = vmatpush3.bf16.msra.mxu0 %v3201_v18 }
  0xb2   : > { %2989 = vmatpush3.bf16.msra.mxu1 %v3202_v19  ;;  %2968 = vmatprep.subr.bf16.mxu0 %v3203_v20 }
  0xb3   : > { %2990 = vmatprep.subr.bf16.mxu1 %v3204_v21 }
  0xb5   : > { %2969 = vmatpush3.bf16.msra.mxu0 %v3205_v22 }
  0xb6   : > { %2991 = vmatpush3.bf16.msra.mxu1 %v3206_v23  ;;  %2970 = vmatprep.subr.bf16.mxu0 %v3207_v24 }
  0xb7   : > { %2992 = vmatprep.subr.bf16.mxu1 %v3208_v25 }
  0xb9   : > { %2971 = vmatpush3.bf16.msra.mxu0 %v3209_v26 }
  0xba   : > { %2993 = vmatpush3.bf16.msra.mxu1 %v3210_v27  ;;  %2972 = vmatprep.subr.bf16.mxu0 %v3211_v28 }
  0xbb   : > { %2994 = vmatprep.subr.bf16.mxu1 %v3212_v29 }
  0xbd   : > { %2973 = vmatpush3.bf16.msra.mxu0 %v3213_v30 }
  0xbe   : > { %2995 = vmatpush3.bf16.msra.mxu1 %v3214_v31  ;;  %2974 = vmatprep.subr.bf16.mxu0 %v3215_v32 }
  0xbf   : > { %2996 = vmatprep.subr.bf16.mxu1 %v3216_v33 }
  0xc1   : > { %2975 = vmatpush3.bf16.msra.mxu0 %v3217_v34 }
  0xc2   : > { %2997 = vmatpush3.bf16.msra.mxu1 %v3218_v35  ;;  %2976 = vmatprep.subr.bf16.mxu0 %v3219_v36 }
  0xc3   : > { %2998 = vmatprep.subr.bf16.mxu1 %v3220_v37 }
  0xc5   : > { %2977 = vmatpush3.bf16.msra.mxu0 %v3221_v38 }
  0xc6   : > { %2999 = vmatpush3.bf16.msra.mxu1 %v3222_v39 }
  0xc8   : > { %2359 = vmatmul.mubr.bf16.vlgmr.msra.gmra.mrb[20].mxu0 %v2544_v44 }
  0xc9   : > { %2400 = vmatmul.mubr.bf16.vlgmr.msra.gmra.mrb[20].mxu1 %v2546_v46 }
  0xfb   : > { %v2758_v48 = vpop.f32.mrb[0].mxu0 }
  0xfc   : > { %v2780_v49 = vpop.f32.mrb[0].mxu1  ;;  %v2759_v51 = vpop.f32.mrb[1].mxu0 }
  0xfd   : > { %v2760_v52 = vadd.f32 %v2759_v51, %v2758_v48  ;;  %v2781_v53 = vpop.f32.mrb[1].mxu1  ;;  %v2761_v54 = vpop.f32.mrb[2].mxu0 }
  0xfe   : > { %v2782_v55 = vadd.f32 %v2781_v53, %v2780_v49  ;;  %v2783_v56 = vpop.f32.mrb[2].mxu1  ;;  %v2762_v57 = vpop.f32.mrb[3].mxu0 }
  0xff   : > { %v1951_v58 = vadd.f32 %v2760_v52, %v2523_v50  ;;  %v2763_v59 = vadd.f32 %v2762_v57, %v2761_v54  ;;  %v2784_v60 = vpop.f32.mrb[3].mxu1 }
 0x100   : > { %v2785_v61 = vadd.f32 %v2784_v60, %v2783_v56 }
 0x101   : > { %v1992_v62 = vadd.f32 %v2782_v55, %v1951_v58  ;;  %v1954_v63 = vadd.f32 %v2763_v59, %v2523_v50 }
 0x103   : > { %v1995_v0 = vadd.f32 %v2785_v61, %v1954_v63 }
 0x11b   : > { %v2802_v1 = vpop.f32.mrb[4].mxu0 }
 0x11c   : > { %v2824_v2 = vpop.f32.mrb[4].mxu1  ;;  %v2803_v3 = vpop.f32.mrb[5].mxu0 }
 0x11d   : > { %v2804_v4 = vadd.f32 %v2803_v3, %v2802_v1  ;;  %v2825_v5 = vpop.f32.mrb[5].mxu1  ;;  %v2805_v6 = vpop.f32.mrb[6].mxu0 }
 0x11e   : > { %v2826_v7 = vadd.f32 %v2825_v5, %v2824_v2  ;;  %v2827_v8 = vpop.f32.mrb[6].mxu1  ;;  %v2806_v9 = vpop.f32.mrb[7].mxu0 }
 0x11f   : > { %v2033_v10 = vadd.f32 %v2804_v4, %v1992_v62  ;;  %v2807_v11 = vadd.f32 %v2806_v9, %v2805_v6  ;;  %v2828_v12 = vpop.f32.mrb[7].mxu1 }
 0x120   : > { %v2829_v13 = vadd.f32 %v2828_v12, %v2827_v8 }
 0x121   : > { %v2074_v14 = vadd.f32 %v2826_v7, %v2033_v10  ;;  %v2036_v15 = vadd.f32 %v2807_v11, %v1995_v0 }
 0x123   : > { %v2077_v16 = vadd.f32 %v2829_v13, %v2036_v15 }
 0x13b   : > { %v2846_v17 = vpop.f32.mrb[8].mxu0 }
 0x13c   : > { %v2868_v18 = vpop.f32.mrb[8].mxu1  ;;  %v2847_v19 = vpop.f32.mrb[9].mxu0 }
 0x13d   : > { %v2869_v20 = vpop.f32.mrb[9].mxu1  ;;  %v2848_v21 = vadd.f32 %v2847_v19, %v2846_v17  ;;  %v2849_v23 = vpop.f32.mrb[10].mxu0 }
 0x13e   : > { %v2870_v22 = vadd.f32 %v2869_v20, %v2868_v18  ;;  %v2871_v24 = vpop.f32.mrb[10].mxu1  ;;  %v2850_v25 = vpop.f32.mrb[11].mxu0 }
 0x13f   : > { %v2872_v26 = vpop.f32.mrb[11].mxu1  ;;  %v2115_v27 = vadd.f32 %v2848_v21, %v2074_v14  ;;  %v2851_v28 = vadd.f32 %v2850_v25, %v2849_v23 }
 0x140   : > { %v2873_v29 = vadd.f32 %v2872_v26, %v2871_v24 }
 0x141   : > { %v2156_v30 = vadd.f32 %v2870_v22, %v2115_v27  ;;  %v2118_v31 = vadd.f32 %v2851_v28, %v2077_v16 }
 0x143   : > { %v2159_v32 = vadd.f32 %v2873_v29, %v2118_v31 }
 0x15b   : > { %v2890_v33 = vpop.f32.mrb[12].mxu0 }
 0x15c   : > { %v2912_v34 = vpop.f32.mrb[12].mxu1  ;;  %v2891_v35 = vpop.f32.mrb[13].mxu0 }
 0x15d   : > { %v2892_v36 = vadd.f32 %v2891_v35, %v2890_v33  ;;  %v2913_v37 = vpop.f32.mrb[13].mxu1  ;;  %v2893_v38 = vpop.f32.mrb[14].mxu0 }
 0x15e   : > { %v2914_v39 = vadd.f32 %v2913_v37, %v2912_v34  ;;  %v2915_v40 = vpop.f32.mrb[14].mxu1  ;;  %v2894_v41 = vpop.f32.mrb[15].mxu0 }
 0x15f   : > { %v2197_v42 = vadd.f32 %v2892_v36, %v2156_v30  ;;  %v2895_v43 = vadd.f32 %v2894_v41, %v2893_v38  ;;  %v2916_v44 = vpop.f32.mrb[15].mxu1 }
 0x160   : > { %v2917_v45 = vadd.f32 %v2916_v44, %v2915_v40 }
 0x161   : > { %v2238_v46 = vadd.f32 %v2914_v39, %v2197_v42  ;;  %v2200_v47 = vadd.f32 %v2895_v43, %v2159_v32 }
 0x163   : > { %v2241_v48 = vadd.f32 %v2917_v45, %v2200_v47 }
 0x17b   : > { %v2934_v49 = vpop.f32.mrb[16].mxu0 }
 0x17c   : > { %v2956_v50 = vpop.f32.mrb[16].mxu1  ;;  %v2935_v51 = vpop.f32.mrb[17].mxu0 }
 0x17d   : > { %v2936_v52 = vadd.f32 %v2935_v51, %v2934_v49  ;;  %v2957_v53 = vpop.f32.mrb[17].mxu1  ;;  %v2937_v54 = vpop.f32.mrb[18].mxu0 }
 0x17e   : > { %v2958_v55 = vadd.f32 %v2957_v53, %v2956_v50  ;;  %v2959_v56 = vpop.f32.mrb[18].mxu1  ;;  %v2938_v57 = vpop.f32.mrb[19].mxu0 }
 0x17f   : > { %v2279_v58 = vadd.f32 %v2936_v52, %v2238_v46  ;;  %v2939_v59 = vadd.f32 %v2938_v57, %v2937_v54  ;;  %v2960_v60 = vpop.f32.mrb[19].mxu1 }
 0x180   : > { %v2961_v61 = vadd.f32 %v2960_v60, %v2959_v56 }
 0x181   : > { %v2320_v62 = vadd.f32 %v2958_v55, %v2279_v58  ;;  %v2282_v63 = vadd.f32 %v2939_v59, %v2241_v48 }
 0x183   : > { %v2323_v0 = vadd.f32 %v2961_v61, %v2282_v63 }
 0x19b   : > { %v2978_v1 = vpop.f32.mrb[20].mxu0 }
 0x19c   : > { %v3000_v2 = vpop.f32.mrb[20].mxu1  ;;  %v2979_v3 = vpop.f32.mrb[21].mxu0 }
 0x19d   : > { %v3001_v4 = vpop.f32.mrb[21].mxu1  ;;  %v2980_v5 = vadd.f32 %v2979_v3, %v2978_v1  ;;  %v2981_v7 = vpop.f32.mrb[22].mxu0 }
 0x19e   : > { %v3002_v6 = vadd.f32 %v3001_v4, %v3000_v2  ;;  %v3003_v8 = vpop.f32.mrb[22].mxu1  ;;  %v2982_v9 = vpop.f32.mrb[23].mxu0 }
 0x19f   : > { %v3004_v10 = vpop.f32.mrb[23].mxu1  ;;  %v2361_v11 = vadd.f32 %v2980_v5, %v2320_v62  ;;  %v2983_v12 = vadd.f32 %v2982_v9, %v2981_v7 }
 0x1a0   : > { %v3005_v13 = vadd.f32 %v3004_v10, %v3003_v8 }
 0x1a1   : > { %v2402_v14 = vadd.f32 %v3002_v6, %v2361_v11  ;;  %v2364_v15 = vadd.f32 %v2983_v12, %v2323_v0 }
 0x1a3   : > { %2408 = vst [vmem:[%s226_s12] sm:$0xff] %v2402_v14  ;;  %v2405_v16 = vadd.f32 %v3005_v13, %v2364_v15 }
 0x1a5   : > { %2409 = vst [vmem:[%s226_s12 + $0x8] sm:$0xff] %v2405_v16 }
 0x1a6 PF: > { %s13_s14 = sadd.s32 1, %s3245_s14   ;;  %s3916_s12 = smov %s3241_s13 }
 0x1a7   : > { %p10_p5 = scmp.ge.s32.totalorder %s13_s14, 4   ;;  %s3917_s13 = smov %s3919_s15 }
 0x1a9   :  { %12 = sbr.rel (!%p10_p5) target bundleno = 2 (0x2), region = 68 }

</bundles_post_ra>
